<compile_context>
chip_gen: v6e
topology: v6e:2x2x1
jax: 0.10.0
libtpu: 0.0.40
codegen_flags: <defaults>
</compile_context>

<pallas_src>
import functools

import jax
import jax.numpy as jnp
from jax.experimental import pallas as pl
from jax.experimental.pallas import tpu as pltpu

# ---- static problem sizes (small, consistent with the module) ----------------
N = 16                 # total nodes in the batch (2 graphs x 8 nodes)
F_IN = 4               # raw node feature dim
F_IN_PAD = 8           # x padded to 8 zero-extended feature columns (8-row aligned W_enc)
H = 32                 # cfg.MODEL.HIDDEN_DIM
O = 1                  # decoder output dim ('outputs' head, scalar per node)
MSG_PASSING_STEPS = 1  # cfg.MODEL.MSG_PASSING_STEPS
GRU_ENABLE = True      # cfg.MODEL.GRU.ENABLE
MAX_STEPS = 8          # static upper bound on batch.length (pl.when skips unused steps)

LANES = 4 * H          # 128: packed GRU gate width == slab lane width

# ---- weight-slab row layout (all sections 8-row aligned) ----------------------
ROW_BIAS = 0                       # row0 b_enc | row1 bp | row2 b_gates[128] | row3 b_dec
ROW_WENC = 8                       # [F_IN_PAD, H]  encoder weight (zero rows beyond F_IN)
ROW_WZ = ROW_WENC + F_IN_PAD       # 16:  [H, H]    processor z-weight
ROW_WHM = ROW_WZ + H               # 48:  [2H, H]   vstack([Ws, Wm])
ROW_WG = ROW_WHM + 2 * H           # 112: [2H, 4H]  packed GRU gate weights
ROW_WDA = ROW_WG + 2 * H           # 176: [H, O]    decoder weight for z
ROW_WDHL = ROW_WDA + H             # 208: [2H, O]   vstack([Wdec_b, Wdec_c])
SLAB_ROWS = ROW_WDHL + 2 * H       # 272


# ---- fused Pallas kernel -----------------------------------------------------
def _make_kernel(max_steps):
    def kernel(max_len_ref, node_len_ref, x_ref, adj_ref, slab_ref,
               out_ref, hid_ref, hterm_scr, lhterm_scr):
        f32 = jnp.float32
        dot = functools.partial(jnp.dot, preferred_element_type=f32)

        # ---- one-shot loads: everything stays VMEM/vreg resident -------------
        max_len = max_len_ref[0]                         # int32 scalar (SMEM)
        node_len = node_len_ref[...]                     # [N, 1] int32
        adj = adj_ref[...]                               # [N, N] dense weighted adjacency

        bias_blk = slab_ref[0:8, :]                      # [8, 128] bias block (one load)
        b_enc = bias_blk[0:1, 0:H]
        bp = bias_blk[1:2, 0:H]
        b_g = bias_blk[2:3, 0:LANES]
        b_dec = bias_blk[3:4, 0:O]
        w_enc = slab_ref[ROW_WENC:ROW_WENC + F_IN_PAD, 0:H]      # [8, H]
        wz = slab_ref[ROW_WZ:ROW_WZ + H, 0:H]                    # [H, H]
        w_hm = slab_ref[ROW_WHM:ROW_WHM + 2 * H, 0:H]            # [2H, H]
        w_g = slab_ref[ROW_WG:ROW_WG + 2 * H, 0:LANES]           # [2H, 4H]
        w_da = slab_ref[ROW_WDA:ROW_WDA + H, 0:O]                # [H, O]
        w_dhl = slab_ref[ROW_WDHL:ROW_WDHL + 2 * H, 0:O]         # [2H, O]

        # ---- encoder (once) + loop-invariant hoists ---------------------------
        z = dot(x_ref[...], w_enc) + b_enc               # [N, H] input_hidden
        zp = dot(z, wz) + bp                             # z-contribution to processor
        zd = dot(z, w_da) + b_dec                        # z-contribution to decoder
        bg = jnp.broadcast_to(b_g, (N, LANES))           # gate bias broadcast, hoisted

        hid_ref[...] = z                                 # running hidden lives in out ref
        hterm_scr[...] = jnp.zeros((N, H), f32)          # hidden at terminating step
        lhterm_scr[...] = jnp.zeros((N, H), f32)         # last_hidden at terminating step

        for step in range(max_steps):                    # static unroll; inactive steps skipped
            def _step(step=step):
                last_hidden = hid_ref[...]
                h = last_hidden
                for _ in range(MSG_PASSING_STEPS):
                    # message aggregation: msg[i] = sum_j A[i, j] * h[j]
                    msg = dot(adj, h)                                     # [N, H]
                    # processor: relu(z@Wz + h@Ws + msg@Wm + b)  (packed matmul)
                    hm = jnp.concatenate([h, msg], axis=-1)               # [N, 2H]
                    p = jnp.maximum(zp + dot(hm, w_hm), 0.0)              # [N, H]
                    if GRU_ENABLE:
                        # torch.nn.GRUCell (gate order r, z, n): ONE packed matmul,
                        # result lane-sliced at 0 / H / 2H / 3H.
                        plh = jnp.concatenate([p, last_hidden], axis=-1)  # [N, 2H]
                        g = dot(plh, w_g) + bg                            # [N, 4H]
                        r = jax.nn.sigmoid(g[:, 0:H])
                        u = jax.nn.sigmoid(g[:, H:2 * H])
                        n = jnp.tanh(g[:, 2 * H:3 * H] + r * g[:, 3 * H:4 * H])
                        h = (1.0 - u) * n + u * last_hidden
                    else:
                        h = p
                hid_ref[...] = h
                # capture terminal (hidden, last_hidden) for the deferred decoder
                term = node_len == (step + 1)                             # [N, 1] bool
                hterm_scr[...] = jnp.where(term, h, hterm_scr[...])
                lhterm_scr[...] = jnp.where(term, last_hidden, lhterm_scr[...])

            pl.when(step < max_len)(_step)

        # ---- decoder: once, after the loop, masked to terminated nodes --------
        hl = jnp.concatenate([hterm_scr[...], lhterm_scr[...]], axis=-1)  # [N, 2H]
        dec = zd + dot(hl, w_dhl)                                         # [N, O]
        fin = jnp.logical_and(node_len >= 1, node_len <= max_steps)       # [N, 1]
        out_ref[...] = jnp.where(fin, dec, 0.0)

    return kernel


# ---- jitted wrapper (single pallas_call, whole arrays in VMEM, scalar in SMEM) -
@functools.partial(jax.jit, static_argnames=("max_steps",))
def _forward(x, adj, lengths, batch_assignment, slab, *, max_steps):
    node_len = lengths[batch_assignment].astype(jnp.int32).reshape(N, 1)   # [N, 1]
    max_len = jnp.max(lengths).astype(jnp.int32).reshape(1)                # [1] (no host sync)
    x_pad = jnp.zeros((N, F_IN_PAD), jnp.float32).at[:, :F_IN].set(x)      # zero-extended cols

    vmem = pl.BlockSpec(memory_space=pltpu.MemorySpace.VMEM)
    smem = pl.BlockSpec(memory_space=pltpu.MemorySpace.SMEM)

    output, hidden = pl.pallas_call(
        _make_kernel(max_steps),
        out_shape=(jax.ShapeDtypeStruct((N, O), jnp.float32),
                   jax.ShapeDtypeStruct((N, H), jnp.float32)),
        in_specs=[smem, vmem, vmem, vmem, vmem],
        out_specs=(vmem, vmem),
        scratch_shapes=[pltpu.VMEM((N, H), jnp.float32),   # hidden at terminate step
                        pltpu.VMEM((N, H), jnp.float32)],  # last_hidden at terminate step
        cost_estimate=pl.CostEstimate(flops=3_000_000,
                                      transcendentals=MAX_STEPS * 3 * N * H,
                                      bytes_accessed=150_000),
    )(max_len, node_len, x_pad, adj, slab)
    return output, hidden


def encode_process_decode(x, adj, lengths, batch_assignment, slab, max_steps=MAX_STEPS):
    """Mirrors EncodeProcessDecode.forward in eval mode. Returns (output, hints, hidden)."""
    output, hidden = _forward(x, adj, lengths, batch_assignment, slab, max_steps=max_steps)
    hints = {}  # stack_hints([]) == {}  (eval mode / HINT_LOSS_WEIGHT == 0)
    return output, hints, hidden


# ---- parameters: raw (torch-like layout) + packed single slab (kernel layout) --
def make_params(key):
    ks = jax.random.split(key, 12)
    u = lambda k, s, scale: (scale * jax.random.normal(k, s)).astype(jnp.float32)
    return {
        "w_enc": u(ks[0], (F_IN, H), 0.2),
        "b_enc": u(ks[1], (1, H), 0.05),
        "wz": u(ks[2], (H, H), 0.1),
        "ws": u(ks[3], (H, H), 0.1),
        "wm": u(ks[4], (H, H), 0.1),
        "bp": u(ks[5], (1, H), 0.05),
        "wih": u(ks[6], (H, 3 * H), 0.1),     # GRU input weights, gate order (r, z, n)
        "whh": u(ks[7], (H, 3 * H), 0.1),     # GRU hidden weights
        "bih": u(ks[8], (1, 3 * H), 0.05),
        "bhh": u(ks[9], (1, 3 * H), 0.05),
        "wdec_a": u(ks[10], (H, O), 0.1),
        "wdec_b": u(ks[11], (H, O), 0.1),
        "wdec_c": u(jax.random.fold_in(key, 99), (H, O), 0.1),
        "bdec": jnp.zeros((1, O), jnp.float32),
    }


def pack_params(raw):
    """Pack ALL weights/biases into one contiguous [SLAB_ROWS, 128] f32 slab (one DMA)."""
    wih, whh, bih, bhh = raw["wih"], raw["whh"], raw["bih"], raw["bhh"]
    slab = jnp.zeros((SLAB_ROWS, LANES), jnp.float32)

    # --- bias block (row 0..3) ---
    slab = slab.at[ROW_BIAS + 0, 0:H].set(raw["b_enc"][0])
    slab = slab.at[ROW_BIAS + 1, 0:H].set(raw["bp"][0])
    b_gates = jnp.concatenate([
        bih[0, 0:H] + bhh[0, 0:H],            # r gate bias
        bih[0, H:2 * H] + bhh[0, H:2 * H],    # u (z) gate bias
        bih[0, 2 * H:3 * H],                  # n gate, input half
        bhh[0, 2 * H:3 * H],                  # n gate, hidden half
    ], axis=0)                                # [4H]
    slab = slab.at[ROW_BIAS + 2, :].set(b_gates)
    slab = slab.at[ROW_BIAS + 3, 0:O].set(raw["bdec"][0])

    # --- encoder / processor weights ---
    slab = slab.at[ROW_WENC:ROW_WENC + F_IN, 0:H].set(raw["w_enc"])   # zero rows beyond F_IN
    slab = slab.at[ROW_WZ:ROW_WZ + H, 0:H].set(raw["wz"])
    slab = slab.at[ROW_WHM:ROW_WHM + H, 0:H].set(raw["ws"])
    slab = slab.at[ROW_WHM + H:ROW_WHM + 2 * H, 0:H].set(raw["wm"])

    # --- packed GRU gate weights [2H, 4H]:
    #     rows 0:H   (p half):          [ Wih_r | Wih_u | Win | 0   ]
    #     rows H:2H  (last_hidden half):[ Whh_r | Whh_u | 0   | Whn ]
    slab = slab.at[ROW_WG:ROW_WG + H, 0:H].set(wih[:, 0:H])
    slab = slab.at[ROW_WG:ROW_WG + H, H:2 * H].set(wih[:, H:2 * H])
    slab = slab.at[ROW_WG:ROW_WG + H, 2 * H:3 * H].set(wih[:, 2 * H:3 * H])
    slab = slab.at[ROW_WG + H:ROW_WG + 2 * H, 0:H].set(whh[:, 0:H])
    slab = slab.at[ROW_WG + H:ROW_WG + 2 * H, H:2 * H].set(whh[:, H:2 * H])
    slab = slab.at[ROW_WG + H:ROW_WG + 2 * H, 3 * H:4 * H].set(whh[:, 2 * H:3 * H])

    # --- decoder weights ---
    slab = slab.at[ROW_WDA:ROW_WDA + H, 0:O].set(raw["wdec_a"])
    slab = slab.at[ROW_WDHL:ROW_WDHL + H, 0:O].set(raw["wdec_b"])
    slab = slab.at[ROW_WDHL + H:ROW_WDHL + 2 * H, 0:O].set(raw["wdec_c"])
    return slab


# ---- deterministic inputs ------------------------------------------------------
def make_batch(key):
    kx, ka = jax.random.split(key)
    x = jax.random.normal(kx, (N, F_IN), jnp.float32)
    # two graphs of 8 nodes each; block-diagonal weighted adjacency
    n_per = N // 2
    w = jax.random.uniform(ka, (N, N), jnp.float32)
    block = jnp.zeros((N, N), jnp.float32)
    block = block.at[:n_per, :n_per].set(1.0)
    block = block.at[n_per:, n_per:].set(1.0)
    adj = (w * block).astype(jnp.float32)
    lengths = jnp.array([3, 5], dtype=jnp.int32)                          # batch.length
    batch_assignment = jnp.repeat(jnp.arange(2, dtype=jnp.int32), n_per)  # batch.batch
    return x, adj, lengths, batch_assignment


# ---- pure-JAX reference (mirrors the torch module literally) -------------------
def _reference_forward(x, adj, lengths, batch_assignment, raw):
    dot = jnp.dot
    z = dot(x, raw["w_enc"]) + raw["b_enc"]
    hidden = z
    output = jnp.zeros((N, O), jnp.float32)
    for step in range(int(lengths.max())):
        last_hidden = hidden
        for _ in range(MSG_PASSING_STEPS):
            msg = dot(adj, hidden)
            p = jnp.maximum(dot(z, raw["wz"]) + dot(hidden, raw["ws"])
                            + dot(msg, raw["wm"]) + raw["bp"], 0.0)
            if GRU_ENABLE:
                gi = dot(p, raw["wih"]) + raw["bih"]
                gh = dot(last_hidden, raw["whh"]) + raw["bhh"]
                r = jax.nn.sigmoid(gi[:, 0:H] + gh[:, 0:H])
                u = jax.nn.sigmoid(gi[:, H:2 * H] + gh[:, H:2 * H])
                n = jnp.tanh(gi[:, 2 * H:] + r * gh[:, 2 * H:])
                hidden = (1.0 - u) * n + u * last_hidden
            else:
                hidden = p
        dec = (dot(z, raw["wdec_a"]) + dot(hidden, raw["wdec_b"])
               + dot(last_hidden, raw["wdec_c"]) + raw["bdec"])
        terminate = (lengths[batch_assignment] == step + 1)
        output = jnp.where(terminate[:, None], dec, output)
    return output, hidden


if __name__ == "__main__":
    key = jax.random.PRNGKey(0)
    raw = make_params(jax.random.fold_in(key, 1))
    x, adj, lengths, batch_assignment = make_batch(jax.random.fold_in(key, 2))
    slab = pack_params(raw)

    output, hints, hidden = encode_process_decode(x, adj, lengths, batch_assignment, slab)
    jax.block_until_ready(output)
    jax.block_until_ready(hidden)

    assert output.shape == (N, O)
    assert hidden.shape == (N, H)
    assert hints == {}
    assert bool(jnp.all(jnp.isfinite(output))) and bool(jnp.all(jnp.isfinite(hidden)))

    # numerical check against the unfused pure-JAX reference (loose tolerance covers
    # MXU default-precision f32 matmuls vs XLA's default dot precision)
    ref_out, ref_hid = _reference_forward(x, adj, lengths, batch_assignment, raw)
    assert bool(jnp.allclose(output, ref_out, atol=2e-2, rtol=2e-2))
    assert bool(jnp.allclose(hidden, ref_hid, atol=2e-2, rtol=2e-2))

    print("KERNEL_OK")
</pallas_src>

<mosaic_0001>
module attributes {stable_mosaic.version = 11 : i64} {
  func.func @kernel(%arg0: memref<1xi32, #tpu.memory_space<smem>>, %arg1: memref<16x1xi32, #tpu.memory_space<vmem>>, %arg2: memref<16x8xf32, #tpu.memory_space<vmem>>, %arg3: memref<16x16xf32, #tpu.memory_space<vmem>>, %arg4: memref<272x128xf32, #tpu.memory_space<vmem>>, %arg5: memref<16x1xf32, #tpu.memory_space<vmem>>, %arg6: memref<16x32xf32, #tpu.memory_space<vmem>>, %arg7: memref<16x32xf32, #tpu.memory_space<vmem>>, %arg8: memref<16x32xf32, #tpu.memory_space<vmem>>) attributes {dimension_semantics = [], scalar_prefetch = 0 : i64, scratch_operands = 2 : i64, tpu.core_type = #tpu.core_type<tc>} {
    %c0 = arith.constant 0 : index
    %0 = memref.load %arg0[%c0] : memref<1xi32, #tpu.memory_space<smem>>
    %c0_0 = arith.constant 0 : index
    %c0_1 = arith.constant 0 : index
    %1 = vector.load %arg1[%c0_0, %c0_1] : memref<16x1xi32, #tpu.memory_space<vmem>>, vector<16x1xi32>
    %c0_2 = arith.constant 0 : index
    %c0_3 = arith.constant 0 : index
    %2 = vector.load %arg3[%c0_2, %c0_3] : memref<16x16xf32, #tpu.memory_space<vmem>>, vector<16x16xf32>
    %c0_4 = arith.constant 0 : index
    %c0_5 = arith.constant 0 : index
    %3 = vector.load %arg4[%c0_4, %c0_5] : memref<272x128xf32, #tpu.memory_space<vmem>>, vector<8x128xf32>
    %4 = vector.extract_strided_slice %3 {offsets = [0, 0], sizes = [1, 32], strides = [1, 1]} : vector<8x128xf32> to vector<1x32xf32>
    %5 = vector.extract_strided_slice %3 {offsets = [1, 0], sizes = [1, 32], strides = [1, 1]} : vector<8x128xf32> to vector<1x32xf32>
    %6 = vector.extract_strided_slice %3 {offsets = [2, 0], sizes = [1, 128], strides = [1, 1]} : vector<8x128xf32> to vector<1x128xf32>
    %7 = vector.extract_strided_slice %3 {offsets = [3, 0], sizes = [1, 1], strides = [1, 1]} : vector<8x128xf32> to vector<1x1xf32>
    %c8 = arith.constant 8 : index
    %c0_6 = arith.constant 0 : index
    %8 = vector.load %arg4[%c8, %c0_6] : memref<272x128xf32, #tpu.memory_space<vmem>>, vector<8x32xf32>
    %c16 = arith.constant 16 : index
    %c0_7 = arith.constant 0 : index
    %9 = vector.load %arg4[%c16, %c0_7] : memref<272x128xf32, #tpu.memory_space<vmem>>, vector<32x32xf32>
    %c48 = arith.constant 48 : index
    %c0_8 = arith.constant 0 : index
    %10 = vector.load %arg4[%c48, %c0_8] : memref<272x128xf32, #tpu.memory_space<vmem>>, vector<64x32xf32>
    %c112 = arith.constant 112 : index
    %c0_9 = arith.constant 0 : index
    %11 = vector.load %arg4[%c112, %c0_9] : memref<272x128xf32, #tpu.memory_space<vmem>>, vector<64x128xf32>
    %c176 = arith.constant 176 : index
    %c0_10 = arith.constant 0 : index
    %12 = vector.load %arg4[%c176, %c0_10] : memref<272x128xf32, #tpu.memory_space<vmem>>, vector<32x1xf32>
    %c208 = arith.constant 208 : index
    %c0_11 = arith.constant 0 : index
    %13 = vector.load %arg4[%c208, %c0_11] : memref<272x128xf32, #tpu.memory_space<vmem>>, vector<64x1xf32>
    %c0_12 = arith.constant 0 : index
    %c0_13 = arith.constant 0 : index
    %14 = vector.load %arg2[%c0_12, %c0_13] : memref<16x8xf32, #tpu.memory_space<vmem>>, vector<16x8xf32>
    %cst = arith.constant dense<0.000000e+00> : vector<16x32xf32>
    %15 = tpu.matmul %14, %8, %cst {dimension_numbers = #tpu.dot_dimension_numbers<[1], [0], [0], [1], [0, 0, 1, 1], [], []>} : vector<16x8xf32>, vector<8x32xf32>, vector<16x32xf32> -> vector<16x32xf32>
    %16 = vector.broadcast %4 : vector<1x32xf32> to vector<16x32xf32>
    %17 = arith.addf %15, %16 : vector<16x32xf32>
    %cst_14 = arith.constant dense<0.000000e+00> : vector<16x32xf32>
    %18 = tpu.matmul %17, %9, %cst_14 {dimension_numbers = #tpu.dot_dimension_numbers<[1], [0], [0], [1], [0, 0, 1, 1], [], []>} : vector<16x32xf32>, vector<32x32xf32>, vector<16x32xf32> -> vector<16x32xf32>
    %19 = vector.broadcast %5 : vector<1x32xf32> to vector<16x32xf32>
    %20 = arith.addf %18, %19 : vector<16x32xf32>
    %cst_15 = arith.constant dense<0.000000e+00> : vector<16x1xf32>
    %21 = tpu.matmul %17, %12, %cst_15 {dimension_numbers = #tpu.dot_dimension_numbers<[1], [0], [0], [1], [0, 0, 1, 1], [], []>} : vector<16x32xf32>, vector<32x1xf32>, vector<16x1xf32> -> vector<16x1xf32>
    %22 = vector.broadcast %7 : vector<1x1xf32> to vector<16x1xf32>
    %23 = arith.addf %21, %22 : vector<16x1xf32>
    %24 = vector.shape_cast %6 : vector<1x128xf32> to vector<1x128xf32>
    %25 = vector.broadcast %24 : vector<1x128xf32> to vector<16x128xf32>
    %c0_16 = arith.constant 0 : index
    %c0_17 = arith.constant 0 : index
    %26 = vector.load %arg6[%c0_16, %c0_17] : memref<16x32xf32, #tpu.memory_space<vmem>>, vector<16x32xf32>
    tpu.vector_store %arg6[%c0_16, %c0_17], %17 {strides = array<i32>} : memref<16x32xf32, #tpu.memory_space<vmem>>, vector<16x32xf32>,
    %cst_18 = arith.constant 0.000000e+00 : f32
    %27 = vector.broadcast %cst_18 : f32 to vector<16x32xf32>
    %c0_19 = arith.constant 0 : index
    %c0_20 = arith.constant 0 : index
    %28 = vector.load %arg7[%c0_19, %c0_20] : memref<16x32xf32, #tpu.memory_space<vmem>>, vector<16x32xf32>
    tpu.vector_store %arg7[%c0_19, %c0_20], %27 {strides = array<i32>} : memref<16x32xf32, #tpu.memory_space<vmem>>, vector<16x32xf32>,
    %cst_21 = arith.constant 0.000000e+00 : f32
    %29 = vector.broadcast %cst_21 : f32 to vector<16x32xf32>
    %c0_22 = arith.constant 0 : index
    %c0_23 = arith.constant 0 : index
    %30 = vector.load %arg8[%c0_22, %c0_23] : memref<16x32xf32, #tpu.memory_space<vmem>>, vector<16x32xf32>
    tpu.vector_store %arg8[%c0_22, %c0_23], %29 {strides = array<i32>} : memref<16x32xf32, #tpu.memory_space<vmem>>, vector<16x32xf32>,
    %c0_i32 = arith.constant 0 : i32
    %31 = arith.cmpi sgt, %0, %c0_i32 : i32
    %32 = arith.extui %31 : i1 to i32
    %c0_i32_24 = arith.constant 0 : i32
    %33 = arith.cmpi ne, %32, %c0_i32_24 : i32
    scf.if %33 {
      %c0_41 = arith.constant 0 : index
      %c0_42 = arith.constant 0 : index
      %68 = vector.load %arg6[%c0_41, %c0_42] : memref<16x32xf32, #tpu.memory_space<vmem>>, vector<16x32xf32>
      %cst_43 = arith.constant dense<0.000000e+00> : vector<16x32xf32>
      %69 = tpu.matmul %2, %68, %cst_43 {dimension_numbers = #tpu.dot_dimension_numbers<[1], [0], [0], [1], [0, 0, 1, 1], [], []>} : vector<16x16xf32>, vector<16x32xf32>, vector<16x32xf32> -> vector<16x32xf32>
      %70 = tpu.concatenate %68, %69 in 1 : vector<16x32xf32>, vector<16x32xf32> -> vector<16x64xf32>
      %cst_44 = arith.constant dense<0.000000e+00> : vector<16x32xf32>
      %71 = tpu.matmul %70, %10, %cst_44 {dimension_numbers = #tpu.dot_dimension_numbers<[1], [0], [0], [1], [0, 0, 1, 1], [], []>} : vector<16x64xf32>, vector<64x32xf32>, vector<16x32xf32> -> vector<16x32xf32>
      %72 = arith.addf %20, %71 : vector<16x32xf32>
      %cst_45 = arith.constant 0.000000e+00 : f32
      %73 = vector.broadcast %cst_45 : f32 to vector<16x32xf32>
      %74 = arith.maximumf %72, %73 : vector<16x32xf32>
      %75 = tpu.concatenate %74, %68 in 1 : vector<16x32xf32>, vector<16x32xf32> -> vector<16x64xf32>
      %cst_46 = arith.constant dense<0.000000e+00> : vector<16x128xf32>
      %76 = tpu.matmul %75, %11, %cst_46 {dimension_numbers = #tpu.dot_dimension_numbers<[1], [0], [0], [1], [0, 0, 1, 1], [], []>} : vector<16x64xf32>, vector<64x128xf32>, vector<16x128xf32> -> vector<16x128xf32>
      %77 = arith.addf %76, %25 : vector<16x128xf32>
      %78 = vector.extract_strided_slice %77 {offsets = [0, 0], sizes = [16, 32], strides = [1, 1]} : vector<16x128xf32> to vector<16x32xf32>
      %79 = arith.negf %78 : vector<16x32xf32>
      %80 = math.exp %79 : vector<16x32xf32>
      %cst_47 = arith.constant 1.000000e+00 : f32
      %81 = vector.broadcast %cst_47 : f32 to vector<16x32xf32>
      %82 = arith.addf %81, %80 : vector<16x32xf32>
      %83 = arith.divf %81, %82 : vector<16x32xf32>
      %84 = vector.extract_strided_slice %77 {offsets = [0, 32], sizes = [16, 32], strides = [1, 1]} : vector<16x128xf32> to vector<16x32xf32>
      %85 = arith.negf %84 : vector<16x32xf32>
      %86 = math.exp %85 : vector<16x32xf32>
      %cst_48 = arith.constant 1.000000e+00 : f32
      %87 = vector.broadcast %cst_48 : f32 to vector<16x32xf32>
      %88 = arith.addf %87, %86 : vector<16x32xf32>
      %89 = arith.divf %87, %88 : vector<16x32xf32>
      %90 = vector.extract_strided_slice %77 {offsets = [0, 64], sizes = [16, 32], strides = [1, 1]} : vector<16x128xf32> to vector<16x32xf32>
      %91 = vector.extract_strided_slice %77 {offsets = [0, 96], sizes = [16, 32], strides = [1, 1]} : vector<16x128xf32> to vector<16x32xf32>
      %92 = arith.mulf %83, %91 : vector<16x32xf32>
      %93 = arith.addf %90, %92 : vector<16x32xf32>
      %94 = math.tanh %93 : vector<16x32xf32>
      %cst_49 = arith.constant 1.000000e+00 : f32
      %95 = vector.broadcast %cst_49 : f32 to vector<16x32xf32>
      %96 = arith.subf %95, %89 : vector<16x32xf32>
      %97 = arith.mulf %96, %94 : vector<16x32xf32>
      %98 = arith.mulf %89, %68 : vector<16x32xf32>
      %99 = arith.addf %97, %98 : vector<16x32xf32>
      %c0_50 = arith.constant 0 : index
      %c0_51 = arith.constant 0 : index
      %100 = vector.load %arg6[%c0_50, %c0_51] : memref<16x32xf32, #tpu.memory_space<vmem>>, vector<16x32xf32>
      tpu.vector_store %arg6[%c0_50, %c0_51], %99 {strides = array<i32>} : memref<16x32xf32, #tpu.memory_space<vmem>>, vector<16x32xf32>,
      %c1_i32_52 = arith.constant 1 : i32
      %101 = vector.broadcast %c1_i32_52 : i32 to vector<16x1xi32>
      %102 = arith.cmpi eq, %1, %101 : vector<16x1xi32>
      %c0_53 = arith.constant 0 : index
      %c0_54 = arith.constant 0 : index
      %103 = vector.load %arg7[%c0_53, %c0_54] : memref<16x32xf32, #tpu.memory_space<vmem>>, vector<16x32xf32>
      %104 = vector.shape_cast %102 : vector<16x1xi1> to vector<16x1xi1>
      %105 = vector.broadcast %104 : vector<16x1xi1> to vector<16x32xi1>
      %106 = arith.select %105, %99, %103 : vector<16x32xi1>, vector<16x32xf32>
      %c0_55 = arith.constant 0 : index
      %c0_56 = arith.constant 0 : index
      %107 = vector.load %arg7[%c0_55, %c0_56] : memref<16x32xf32, #tpu.memory_space<vmem>>, vector<16x32xf32>
      tpu.vector_store %arg7[%c0_55, %c0_56], %106 {strides = array<i32>} : memref<16x32xf32, #tpu.memory_space<vmem>>, vector<16x32xf32>,
      %c0_57 = arith.constant 0 : index
      %c0_58 = arith.constant 0 : index
      %108 = vector.load %arg8[%c0_57, %c0_58] : memref<16x32xf32, #tpu.memory_space<vmem>>, vector<16x32xf32>
      %109 = vector.shape_cast %102 : vector<16x1xi1> to vector<16x1xi1>
      %110 = vector.broadcast %109 : vector<16x1xi1> to vector<16x32xi1>
      %111 = arith.select %110, %68, %108 : vector<16x32xi1>, vector<16x32xf32>
      %c0_59 = arith.constant 0 : index
      %c0_60 = arith.constant 0 : index
      %112 = vector.load %arg8[%c0_59, %c0_60] : memref<16x32xf32, #tpu.memory_space<vmem>>, vector<16x32xf32>
      tpu.vector_store %arg8[%c0_59, %c0_60], %111 {strides = array<i32>} : memref<16x32xf32, #tpu.memory_space<vmem>>, vector<16x32xf32>,
    } else {
    }
    %c1_i32 = arith.constant 1 : i32
    %34 = arith.cmpi sgt, %0, %c1_i32 : i32
    %35 = arith.extui %34 : i1 to i32
    %c0_i32_25 = arith.constant 0 : i32
    %36 = arith.cmpi ne, %35, %c0_i32_25 : i32
    scf.if %36 {
      %c0_41 = arith.constant 0 : index
      %c0_42 = arith.constant 0 : index
      %68 = vector.load %arg6[%c0_41, %c0_42] : memref<16x32xf32, #tpu.memory_space<vmem>>, vector<16x32xf32>
      %cst_43 = arith.constant dense<0.000000e+00> : vector<16x32xf32>
      %69 = tpu.matmul %2, %68, %cst_43 {dimension_numbers = #tpu.dot_dimension_numbers<[1], [0], [0], [1], [0, 0, 1, 1], [], []>} : vector<16x16xf32>, vector<16x32xf32>, vector<16x32xf32> -> vector<16x32xf32>
      %70 = tpu.concatenate %68, %69 in 1 : vector<16x32xf32>, vector<16x32xf32> -> vector<16x64xf32>
      %cst_44 = arith.constant dense<0.000000e+00> : vector<16x32xf32>
      %71 = tpu.matmul %70, %10, %cst_44 {dimension_numbers = #tpu.dot_dimension_numbers<[1], [0], [0], [1], [0, 0, 1, 1], [], []>} : vector<16x64xf32>, vector<64x32xf32>, vector<16x32xf32> -> vector<16x32xf32>
      %72 = arith.addf %20, %71 : vector<16x32xf32>
      %cst_45 = arith.constant 0.000000e+00 : f32
      %73 = vector.broadcast %cst_45 : f32 to vector<16x32xf32>
      %74 = arith.maximumf %72, %73 : vector<16x32xf32>
      %75 = tpu.concatenate %74, %68 in 1 : vector<16x32xf32>, vector<16x32xf32> -> vector<16x64xf32>
      %cst_46 = arith.constant dense<0.000000e+00> : vector<16x128xf32>
      %76 = tpu.matmul %75, %11, %cst_46 {dimension_numbers = #tpu.dot_dimension_numbers<[1], [0], [0], [1], [0, 0, 1, 1], [], []>} : vector<16x64xf32>, vector<64x128xf32>, vector<16x128xf32> -> vector<16x128xf32>
      %77 = arith.addf %76, %25 : vector<16x128xf32>
      %78 = vector.extract_strided_slice %77 {offsets = [0, 0], sizes = [16, 32], strides = [1, 1]} : vector<16x128xf32> to vector<16x32xf32>
      %79 = arith.negf %78 : vector<16x32xf32>
      %80 = math.exp %79 : vector<16x32xf32>
      %cst_47 = arith.constant 1.000000e+00 : f32
      %81 = vector.broadcast %cst_47 : f32 to vector<16x32xf32>
      %82 = arith.addf %81, %80 : vector<16x32xf32>
      %83 = arith.divf %81, %82 : vector<16x32xf32>
      %84 = vector.extract_strided_slice %77 {offsets = [0, 32], sizes = [16, 32], strides = [1, 1]} : vector<16x128xf32> to vector<16x32xf32>
      %85 = arith.negf %84 : vector<16x32xf32>
      %86 = math.exp %85 : vector<16x32xf32>
      %cst_48 = arith.constant 1.000000e+00 : f32
      %87 = vector.broadcast %cst_48 : f32 to vector<16x32xf32>
      %88 = arith.addf %87, %86 : vector<16x32xf32>
      %89 = arith.divf %87, %88 : vector<16x32xf32>
      %90 = vector.extract_strided_slice %77 {offsets = [0, 64], sizes = [16, 32], strides = [1, 1]} : vector<16x128xf32> to vector<16x32xf32>
      %91 = vector.extract_strided_slice %77 {offsets = [0, 96], sizes = [16, 32], strides = [1, 1]} : vector<16x128xf32> to vector<16x32xf32>
      %92 = arith.mulf %83, %91 : vector<16x32xf32>
      %93 = arith.addf %90, %92 : vector<16x32xf32>
      %94 = math.tanh %93 : vector<16x32xf32>
      %cst_49 = arith.constant 1.000000e+00 : f32
      %95 = vector.broadcast %cst_49 : f32 to vector<16x32xf32>
      %96 = arith.subf %95, %89 : vector<16x32xf32>
      %97 = arith.mulf %96, %94 : vector<16x32xf32>
      %98 = arith.mulf %89, %68 : vector<16x32xf32>
      %99 = arith.addf %97, %98 : vector<16x32xf32>
      %c0_50 = arith.constant 0 : index
      %c0_51 = arith.constant 0 : index
      %100 = vector.load %arg6[%c0_50, %c0_51] : memref<16x32xf32, #tpu.memory_space<vmem>>, vector<16x32xf32>
      tpu.vector_store %arg6[%c0_50, %c0_51], %99 {strides = array<i32>} : memref<16x32xf32, #tpu.memory_space<vmem>>, vector<16x32xf32>,
      %c2_i32_52 = arith.constant 2 : i32
      %101 = vector.broadcast %c2_i32_52 : i32 to vector<16x1xi32>
      %102 = arith.cmpi eq, %1, %101 : vector<16x1xi32>
      %c0_53 = arith.constant 0 : index
      %c0_54 = arith.constant 0 : index
      %103 = vector.load %arg7[%c0_53, %c0_54] : memref<16x32xf32, #tpu.memory_space<vmem>>, vector<16x32xf32>
      %104 = vector.shape_cast %102 : vector<16x1xi1> to vector<16x1xi1>
      %105 = vector.broadcast %104 : vector<16x1xi1> to vector<16x32xi1>
      %106 = arith.select %105, %99, %103 : vector<16x32xi1>, vector<16x32xf32>
      %c0_55 = arith.constant 0 : index
      %c0_56 = arith.constant 0 : index
      %107 = vector.load %arg7[%c0_55, %c0_56] : memref<16x32xf32, #tpu.memory_space<vmem>>, vector<16x32xf32>
      tpu.vector_store %arg7[%c0_55, %c0_56], %106 {strides = array<i32>} : memref<16x32xf32, #tpu.memory_space<vmem>>, vector<16x32xf32>,
      %c0_57 = arith.constant 0 : index
      %c0_58 = arith.constant 0 : index
      %108 = vector.load %arg8[%c0_57, %c0_58] : memref<16x32xf32, #tpu.memory_space<vmem>>, vector<16x32xf32>
      %109 = vector.shape_cast %102 : vector<16x1xi1> to vector<16x1xi1>
      %110 = vector.broadcast %109 : vector<16x1xi1> to vector<16x32xi1>
      %111 = arith.select %110, %68, %108 : vector<16x32xi1>, vector<16x32xf32>
      %c0_59 = arith.constant 0 : index
      %c0_60 = arith.constant 0 : index
      %112 = vector.load %arg8[%c0_59, %c0_60] : memref<16x32xf32, #tpu.memory_space<vmem>>, vector<16x32xf32>
      tpu.vector_store %arg8[%c0_59, %c0_60], %111 {strides = array<i32>} : memref<16x32xf32, #tpu.memory_space<vmem>>, vector<16x32xf32>,
    } else {
    }
    %c2_i32 = arith.constant 2 : i32
    %37 = arith.cmpi sgt, %0, %c2_i32 : i32
    %38 = arith.extui %37 : i1 to i32
    %c0_i32_26 = arith.constant 0 : i32
    %39 = arith.cmpi ne, %38, %c0_i32_26 : i32
    scf.if %39 {
      %c0_41 = arith.constant 0 : index
      %c0_42 = arith.constant 0 : index
      %68 = vector.load %arg6[%c0_41, %c0_42] : memref<16x32xf32, #tpu.memory_space<vmem>>, vector<16x32xf32>
      %cst_43 = arith.constant dense<0.000000e+00> : vector<16x32xf32>
      %69 = tpu.matmul %2, %68, %cst_43 {dimension_numbers = #tpu.dot_dimension_numbers<[1], [0], [0], [1], [0, 0, 1, 1], [], []>} : vector<16x16xf32>, vector<16x32xf32>, vector<16x32xf32> -> vector<16x32xf32>
      %70 = tpu.concatenate %68, %69 in 1 : vector<16x32xf32>, vector<16x32xf32> -> vector<16x64xf32>
      %cst_44 = arith.constant dense<0.000000e+00> : vector<16x32xf32>
      %71 = tpu.matmul %70, %10, %cst_44 {dimension_numbers = #tpu.dot_dimension_numbers<[1], [0], [0], [1], [0, 0, 1, 1], [], []>} : vector<16x64xf32>, vector<64x32xf32>, vector<16x32xf32> -> vector<16x32xf32>
      %72 = arith.addf %20, %71 : vector<16x32xf32>
      %cst_45 = arith.constant 0.000000e+00 : f32
      %73 = vector.broadcast %cst_45 : f32 to vector<16x32xf32>
      %74 = arith.maximumf %72, %73 : vector<16x32xf32>
      %75 = tpu.concatenate %74, %68 in 1 : vector<16x32xf32>, vector<16x32xf32> -> vector<16x64xf32>
      %cst_46 = arith.constant dense<0.000000e+00> : vector<16x128xf32>
      %76 = tpu.matmul %75, %11, %cst_46 {dimension_numbers = #tpu.dot_dimension_numbers<[1], [0], [0], [1], [0, 0, 1, 1], [], []>} : vector<16x64xf32>, vector<64x128xf32>, vector<16x128xf32> -> vector<16x128xf32>
      %77 = arith.addf %76, %25 : vector<16x128xf32>
      %78 = vector.extract_strided_slice %77 {offsets = [0, 0], sizes = [16, 32], strides = [1, 1]} : vector<16x128xf32> to vector<16x32xf32>
      %79 = arith.negf %78 : vector<16x32xf32>
      %80 = math.exp %79 : vector<16x32xf32>
      %cst_47 = arith.constant 1.000000e+00 : f32
      %81 = vector.broadcast %cst_47 : f32 to vector<16x32xf32>
      %82 = arith.addf %81, %80 : vector<16x32xf32>
      %83 = arith.divf %81, %82 : vector<16x32xf32>
      %84 = vector.extract_strided_slice %77 {offsets = [0, 32], sizes = [16, 32], strides = [1, 1]} : vector<16x128xf32> to vector<16x32xf32>
      %85 = arith.negf %84 : vector<16x32xf32>
      %86 = math.exp %85 : vector<16x32xf32>
      %cst_48 = arith.constant 1.000000e+00 : f32
      %87 = vector.broadcast %cst_48 : f32 to vector<16x32xf32>
      %88 = arith.addf %87, %86 : vector<16x32xf32>
      %89 = arith.divf %87, %88 : vector<16x32xf32>
      %90 = vector.extract_strided_slice %77 {offsets = [0, 64], sizes = [16, 32], strides = [1, 1]} : vector<16x128xf32> to vector<16x32xf32>
      %91 = vector.extract_strided_slice %77 {offsets = [0, 96], sizes = [16, 32], strides = [1, 1]} : vector<16x128xf32> to vector<16x32xf32>
      %92 = arith.mulf %83, %91 : vector<16x32xf32>
      %93 = arith.addf %90, %92 : vector<16x32xf32>
      %94 = math.tanh %93 : vector<16x32xf32>
      %cst_49 = arith.constant 1.000000e+00 : f32
      %95 = vector.broadcast %cst_49 : f32 to vector<16x32xf32>
      %96 = arith.subf %95, %89 : vector<16x32xf32>
      %97 = arith.mulf %96, %94 : vector<16x32xf32>
      %98 = arith.mulf %89, %68 : vector<16x32xf32>
      %99 = arith.addf %97, %98 : vector<16x32xf32>
      %c0_50 = arith.constant 0 : index
      %c0_51 = arith.constant 0 : index
      %100 = vector.load %arg6[%c0_50, %c0_51] : memref<16x32xf32, #tpu.memory_space<vmem>>, vector<16x32xf32>
      tpu.vector_store %arg6[%c0_50, %c0_51], %99 {strides = array<i32>} : memref<16x32xf32, #tpu.memory_space<vmem>>, vector<16x32xf32>,
      %c3_i32_52 = arith.constant 3 : i32
      %101 = vector.broadcast %c3_i32_52 : i32 to vector<16x1xi32>
      %102 = arith.cmpi eq, %1, %101 : vector<16x1xi32>
      %c0_53 = arith.constant 0 : index
      %c0_54 = arith.constant 0 : index
      %103 = vector.load %arg7[%c0_53, %c0_54] : memref<16x32xf32, #tpu.memory_space<vmem>>, vector<16x32xf32>
      %104 = vector.shape_cast %102 : vector<16x1xi1> to vector<16x1xi1>
      %105 = vector.broadcast %104 : vector<16x1xi1> to vector<16x32xi1>
      %106 = arith.select %105, %99, %103 : vector<16x32xi1>, vector<16x32xf32>
      %c0_55 = arith.constant 0 : index
      %c0_56 = arith.constant 0 : index
      %107 = vector.load %arg7[%c0_55, %c0_56] : memref<16x32xf32, #tpu.memory_space<vmem>>, vector<16x32xf32>
      tpu.vector_store %arg7[%c0_55, %c0_56], %106 {strides = array<i32>} : memref<16x32xf32, #tpu.memory_space<vmem>>, vector<16x32xf32>,
      %c0_57 = arith.constant 0 : index
      %c0_58 = arith.constant 0 : index
      %108 = vector.load %arg8[%c0_57, %c0_58] : memref<16x32xf32, #tpu.memory_space<vmem>>, vector<16x32xf32>
      %109 = vector.shape_cast %102 : vector<16x1xi1> to vector<16x1xi1>
      %110 = vector.broadcast %109 : vector<16x1xi1> to vector<16x32xi1>
      %111 = arith.select %110, %68, %108 : vector<16x32xi1>, vector<16x32xf32>
      %c0_59 = arith.constant 0 : index
      %c0_60 = arith.constant 0 : index
      %112 = vector.load %arg8[%c0_59, %c0_60] : memref<16x32xf32, #tpu.memory_space<vmem>>, vector<16x32xf32>
      tpu.vector_store %arg8[%c0_59, %c0_60], %111 {strides = array<i32>} : memref<16x32xf32, #tpu.memory_space<vmem>>, vector<16x32xf32>,
    } else {
    }
    %c3_i32 = arith.constant 3 : i32
    %40 = arith.cmpi sgt, %0, %c3_i32 : i32
    %41 = arith.extui %40 : i1 to i32
    %c0_i32_27 = arith.constant 0 : i32
    %42 = arith.cmpi ne, %41, %c0_i32_27 : i32
    scf.if %42 {
      %c0_41 = arith.constant 0 : index
      %c0_42 = arith.constant 0 : index
      %68 = vector.load %arg6[%c0_41, %c0_42] : memref<16x32xf32, #tpu.memory_space<vmem>>, vector<16x32xf32>
      %cst_43 = arith.constant dense<0.000000e+00> : vector<16x32xf32>
      %69 = tpu.matmul %2, %68, %cst_43 {dimension_numbers = #tpu.dot_dimension_numbers<[1], [0], [0], [1], [0, 0, 1, 1], [], []>} : vector<16x16xf32>, vector<16x32xf32>, vector<16x32xf32> -> vector<16x32xf32>
      %70 = tpu.concatenate %68, %69 in 1 : vector<16x32xf32>, vector<16x32xf32> -> vector<16x64xf32>
      %cst_44 = arith.constant dense<0.000000e+00> : vector<16x32xf32>
      %71 = tpu.matmul %70, %10, %cst_44 {dimension_numbers = #tpu.dot_dimension_numbers<[1], [0], [0], [1], [0, 0, 1, 1], [], []>} : vector<16x64xf32>, vector<64x32xf32>, vector<16x32xf32> -> vector<16x32xf32>
      %72 = arith.addf %20, %71 : vector<16x32xf32>
      %cst_45 = arith.constant 0.000000e+00 : f32
      %73 = vector.broadcast %cst_45 : f32 to vector<16x32xf32>
      %74 = arith.maximumf %72, %73 : vector<16x32xf32>
      %75 = tpu.concatenate %74, %68 in 1 : vector<16x32xf32>, vector<16x32xf32> -> vector<16x64xf32>
      %cst_46 = arith.constant dense<0.000000e+00> : vector<16x128xf32>
      %76 = tpu.matmul %75, %11, %cst_46 {dimension_numbers = #tpu.dot_dimension_numbers<[1], [0], [0], [1], [0, 0, 1, 1], [], []>} : vector<16x64xf32>, vector<64x128xf32>, vector<16x128xf32> -> vector<16x128xf32>
      %77 = arith.addf %76, %25 : vector<16x128xf32>
      %78 = vector.extract_strided_slice %77 {offsets = [0, 0], sizes = [16, 32], strides = [1, 1]} : vector<16x128xf32> to vector<16x32xf32>
      %79 = arith.negf %78 : vector<16x32xf32>
      %80 = math.exp %79 : vector<16x32xf32>
      %cst_47 = arith.constant 1.000000e+00 : f32
      %81 = vector.broadcast %cst_47 : f32 to vector<16x32xf32>
      %82 = arith.addf %81, %80 : vector<16x32xf32>
      %83 = arith.divf %81, %82 : vector<16x32xf32>
      %84 = vector.extract_strided_slice %77 {offsets = [0, 32], sizes = [16, 32], strides = [1, 1]} : vector<16x128xf32> to vector<16x32xf32>
      %85 = arith.negf %84 : vector<16x32xf32>
      %86 = math.exp %85 : vector<16x32xf32>
      %cst_48 = arith.constant 1.000000e+00 : f32
      %87 = vector.broadcast %cst_48 : f32 to vector<16x32xf32>
      %88 = arith.addf %87, %86 : vector<16x32xf32>
      %89 = arith.divf %87, %88 : vector<16x32xf32>
      %90 = vector.extract_strided_slice %77 {offsets = [0, 64], sizes = [16, 32], strides = [1, 1]} : vector<16x128xf32> to vector<16x32xf32>
      %91 = vector.extract_strided_slice %77 {offsets = [0, 96], sizes = [16, 32], strides = [1, 1]} : vector<16x128xf32> to vector<16x32xf32>
      %92 = arith.mulf %83, %91 : vector<16x32xf32>
      %93 = arith.addf %90, %92 : vector<16x32xf32>
      %94 = math.tanh %93 : vector<16x32xf32>
      %cst_49 = arith.constant 1.000000e+00 : f32
      %95 = vector.broadcast %cst_49 : f32 to vector<16x32xf32>
      %96 = arith.subf %95, %89 : vector<16x32xf32>
      %97 = arith.mulf %96, %94 : vector<16x32xf32>
      %98 = arith.mulf %89, %68 : vector<16x32xf32>
      %99 = arith.addf %97, %98 : vector<16x32xf32>
      %c0_50 = arith.constant 0 : index
      %c0_51 = arith.constant 0 : index
      %100 = vector.load %arg6[%c0_50, %c0_51] : memref<16x32xf32, #tpu.memory_space<vmem>>, vector<16x32xf32>
      tpu.vector_store %arg6[%c0_50, %c0_51], %99 {strides = array<i32>} : memref<16x32xf32, #tpu.memory_space<vmem>>, vector<16x32xf32>,
      %c4_i32_52 = arith.constant 4 : i32
      %101 = vector.broadcast %c4_i32_52 : i32 to vector<16x1xi32>
      %102 = arith.cmpi eq, %1, %101 : vector<16x1xi32>
      %c0_53 = arith.constant 0 : index
      %c0_54 = arith.constant 0 : index
      %103 = vector.load %arg7[%c0_53, %c0_54] : memref<16x32xf32, #tpu.memory_space<vmem>>, vector<16x32xf32>
      %104 = vector.shape_cast %102 : vector<16x1xi1> to vector<16x1xi1>
      %105 = vector.broadcast %104 : vector<16x1xi1> to vector<16x32xi1>
      %106 = arith.select %105, %99, %103 : vector<16x32xi1>, vector<16x32xf32>
      %c0_55 = arith.constant 0 : index
      %c0_56 = arith.constant 0 : index
      %107 = vector.load %arg7[%c0_55, %c0_56] : memref<16x32xf32, #tpu.memory_space<vmem>>, vector<16x32xf32>
      tpu.vector_store %arg7[%c0_55, %c0_56], %106 {strides = array<i32>} : memref<16x32xf32, #tpu.memory_space<vmem>>, vector<16x32xf32>,
      %c0_57 = arith.constant 0 : index
      %c0_58 = arith.constant 0 : index
      %108 = vector.load %arg8[%c0_57, %c0_58] : memref<16x32xf32, #tpu.memory_space<vmem>>, vector<16x32xf32>
      %109 = vector.shape_cast %102 : vector<16x1xi1> to vector<16x1xi1>
      %110 = vector.broadcast %109 : vector<16x1xi1> to vector<16x32xi1>
      %111 = arith.select %110, %68, %108 : vector<16x32xi1>, vector<16x32xf32>
      %c0_59 = arith.constant 0 : index
      %c0_60 = arith.constant 0 : index
      %112 = vector.load %arg8[%c0_59, %c0_60] : memref<16x32xf32, #tpu.memory_space<vmem>>, vector<16x32xf32>
      tpu.vector_store %arg8[%c0_59, %c0_60], %111 {strides = array<i32>} : memref<16x32xf32, #tpu.memory_space<vmem>>, vector<16x32xf32>,
    } else {
    }
    %c4_i32 = arith.constant 4 : i32
    %43 = arith.cmpi sgt, %0, %c4_i32 : i32
    %44 = arith.extui %43 : i1 to i32
    %c0_i32_28 = arith.constant 0 : i32
    %45 = arith.cmpi ne, %44, %c0_i32_28 : i32
    scf.if %45 {
      %c0_41 = arith.constant 0 : index
      %c0_42 = arith.constant 0 : index
      %68 = vector.load %arg6[%c0_41, %c0_42] : memref<16x32xf32, #tpu.memory_space<vmem>>, vector<16x32xf32>
      %cst_43 = arith.constant dense<0.000000e+00> : vector<16x32xf32>
      %69 = tpu.matmul %2, %68, %cst_43 {dimension_numbers = #tpu.dot_dimension_numbers<[1], [0], [0], [1], [0, 0, 1, 1], [], []>} : vector<16x16xf32>, vector<16x32xf32>, vector<16x32xf32> -> vector<16x32xf32>
      %70 = tpu.concatenate %68, %69 in 1 : vector<16x32xf32>, vector<16x32xf32> -> vector<16x64xf32>
      %cst_44 = arith.constant dense<0.000000e+00> : vector<16x32xf32>
      %71 = tpu.matmul %70, %10, %cst_44 {dimension_numbers = #tpu.dot_dimension_numbers<[1], [0], [0], [1], [0, 0, 1, 1], [], []>} : vector<16x64xf32>, vector<64x32xf32>, vector<16x32xf32> -> vector<16x32xf32>
      %72 = arith.addf %20, %71 : vector<16x32xf32>
      %cst_45 = arith.constant 0.000000e+00 : f32
      %73 = vector.broadcast %cst_45 : f32 to vector<16x32xf32>
      %74 = arith.maximumf %72, %73 : vector<16x32xf32>
      %75 = tpu.concatenate %74, %68 in 1 : vector<16x32xf32>, vector<16x32xf32> -> vector<16x64xf32>
      %cst_46 = arith.constant dense<0.000000e+00> : vector<16x128xf32>
      %76 = tpu.matmul %75, %11, %cst_46 {dimension_numbers = #tpu.dot_dimension_numbers<[1], [0], [0], [1], [0, 0, 1, 1], [], []>} : vector<16x64xf32>, vector<64x128xf32>, vector<16x128xf32> -> vector<16x128xf32>
      %77 = arith.addf %76, %25 : vector<16x128xf32>
      %78 = vector.extract_strided_slice %77 {offsets = [0, 0], sizes = [16, 32], strides = [1, 1]} : vector<16x128xf32> to vector<16x32xf32>
      %79 = arith.negf %78 : vector<16x32xf32>
      %80 = math.exp %79 : vector<16x32xf32>
      %cst_47 = arith.constant 1.000000e+00 : f32
      %81 = vector.broadcast %cst_47 : f32 to vector<16x32xf32>
      %82 = arith.addf %81, %80 : vector<16x32xf32>
      %83 = arith.divf %81, %82 : vector<16x32xf32>
      %84 = vector.extract_strided_slice %77 {offsets = [0, 32], sizes = [16, 32], strides = [1, 1]} : vector<16x128xf32> to vector<16x32xf32>
      %85 = arith.negf %84 : vector<16x32xf32>
      %86 = math.exp %85 : vector<16x32xf32>
      %cst_48 = arith.constant 1.000000e+00 : f32
      %87 = vector.broadcast %cst_48 : f32 to vector<16x32xf32>
      %88 = arith.addf %87, %86 : vector<16x32xf32>
      %89 = arith.divf %87, %88 : vector<16x32xf32>
      %90 = vector.extract_strided_slice %77 {offsets = [0, 64], sizes = [16, 32], strides = [1, 1]} : vector<16x128xf32> to vector<16x32xf32>
      %91 = vector.extract_strided_slice %77 {offsets = [0, 96], sizes = [16, 32], strides = [1, 1]} : vector<16x128xf32> to vector<16x32xf32>
      %92 = arith.mulf %83, %91 : vector<16x32xf32>
      %93 = arith.addf %90, %92 : vector<16x32xf32>
      %94 = math.tanh %93 : vector<16x32xf32>
      %cst_49 = arith.constant 1.000000e+00 : f32
      %95 = vector.broadcast %cst_49 : f32 to vector<16x32xf32>
      %96 = arith.subf %95, %89 : vector<16x32xf32>
      %97 = arith.mulf %96, %94 : vector<16x32xf32>
      %98 = arith.mulf %89, %68 : vector<16x32xf32>
      %99 = arith.addf %97, %98 : vector<16x32xf32>
      %c0_50 = arith.constant 0 : index
      %c0_51 = arith.constant 0 : index
      %100 = vector.load %arg6[%c0_50, %c0_51] : memref<16x32xf32, #tpu.memory_space<vmem>>, vector<16x32xf32>
      tpu.vector_store %arg6[%c0_50, %c0_51], %99 {strides = array<i32>} : memref<16x32xf32, #tpu.memory_space<vmem>>, vector<16x32xf32>,
      %c5_i32_52 = arith.constant 5 : i32
      %101 = vector.broadcast %c5_i32_52 : i32 to vector<16x1xi32>
      %102 = arith.cmpi eq, %1, %101 : vector<16x1xi32>
      %c0_53 = arith.constant 0 : index
      %c0_54 = arith.constant 0 : index
      %103 = vector.load %arg7[%c0_53, %c0_54] : memref<16x32xf32, #tpu.memory_space<vmem>>, vector<16x32xf32>
      %104 = vector.shape_cast %102 : vector<16x1xi1> to vector<16x1xi1>
      %105 = vector.broadcast %104 : vector<16x1xi1> to vector<16x32xi1>
      %106 = arith.select %105, %99, %103 : vector<16x32xi1>, vector<16x32xf32>
      %c0_55 = arith.constant 0 : index
      %c0_56 = arith.constant 0 : index
      %107 = vector.load %arg7[%c0_55, %c0_56] : memref<16x32xf32, #tpu.memory_space<vmem>>, vector<16x32xf32>
      tpu.vector_store %arg7[%c0_55, %c0_56], %106 {strides = array<i32>} : memref<16x32xf32, #tpu.memory_space<vmem>>, vector<16x32xf32>,
      %c0_57 = arith.constant 0 : index
      %c0_58 = arith.constant 0 : index
      %108 = vector.load %arg8[%c0_57, %c0_58] : memref<16x32xf32, #tpu.memory_space<vmem>>, vector<16x32xf32>
      %109 = vector.shape_cast %102 : vector<16x1xi1> to vector<16x1xi1>
      %110 = vector.broadcast %109 : vector<16x1xi1> to vector<16x32xi1>
      %111 = arith.select %110, %68, %108 : vector<16x32xi1>, vector<16x32xf32>
      %c0_59 = arith.constant 0 : index
      %c0_60 = arith.constant 0 : index
      %112 = vector.load %arg8[%c0_59, %c0_60] : memref<16x32xf32, #tpu.memory_space<vmem>>, vector<16x32xf32>
      tpu.vector_store %arg8[%c0_59, %c0_60], %111 {strides = array<i32>} : memref<16x32xf32, #tpu.memory_space<vmem>>, vector<16x32xf32>,
    } else {
    }
    %c5_i32 = arith.constant 5 : i32
    %46 = arith.cmpi sgt, %0, %c5_i32 : i32
    %47 = arith.extui %46 : i1 to i32
    %c0_i32_29 = arith.constant 0 : i32
    %48 = arith.cmpi ne, %47, %c0_i32_29 : i32
    scf.if %48 {
      %c0_41 = arith.constant 0 : index
      %c0_42 = arith.constant 0 : index
      %68 = vector.load %arg6[%c0_41, %c0_42] : memref<16x32xf32, #tpu.memory_space<vmem>>, vector<16x32xf32>
      %cst_43 = arith.constant dense<0.000000e+00> : vector<16x32xf32>
      %69 = tpu.matmul %2, %68, %cst_43 {dimension_numbers = #tpu.dot_dimension_numbers<[1], [0], [0], [1], [0, 0, 1, 1], [], []>} : vector<16x16xf32>, vector<16x32xf32>, vector<16x32xf32> -> vector<16x32xf32>
      %70 = tpu.concatenate %68, %69 in 1 : vector<16x32xf32>, vector<16x32xf32> -> vector<16x64xf32>
      %cst_44 = arith.constant dense<0.000000e+00> : vector<16x32xf32>
      %71 = tpu.matmul %70, %10, %cst_44 {dimension_numbers = #tpu.dot_dimension_numbers<[1], [0], [0], [1], [0, 0, 1, 1], [], []>} : vector<16x64xf32>, vector<64x32xf32>, vector<16x32xf32> -> vector<16x32xf32>
      %72 = arith.addf %20, %71 : vector<16x32xf32>
      %cst_45 = arith.constant 0.000000e+00 : f32
      %73 = vector.broadcast %cst_45 : f32 to vector<16x32xf32>
      %74 = arith.maximumf %72, %73 : vector<16x32xf32>
      %75 = tpu.concatenate %74, %68 in 1 : vector<16x32xf32>, vector<16x32xf32> -> vector<16x64xf32>
      %cst_46 = arith.constant dense<0.000000e+00> : vector<16x128xf32>
      %76 = tpu.matmul %75, %11, %cst_46 {dimension_numbers = #tpu.dot_dimension_numbers<[1], [0], [0], [1], [0, 0, 1, 1], [], []>} : vector<16x64xf32>, vector<64x128xf32>, vector<16x128xf32> -> vector<16x128xf32>
      %77 = arith.addf %76, %25 : vector<16x128xf32>
      %78 = vector.extract_strided_slice %77 {offsets = [0, 0], sizes = [16, 32], strides = [1, 1]} : vector<16x128xf32> to vector<16x32xf32>
      %79 = arith.negf %78 : vector<16x32xf32>
      %80 = math.exp %79 : vector<16x32xf32>
      %cst_47 = arith.constant 1.000000e+00 : f32
      %81 = vector.broadcast %cst_47 : f32 to vector<16x32xf32>
      %82 = arith.addf %81, %80 : vector<16x32xf32>
      %83 = arith.divf %81, %82 : vector<16x32xf32>
      %84 = vector.extract_strided_slice %77 {offsets = [0, 32], sizes = [16, 32], strides = [1, 1]} : vector<16x128xf32> to vector<16x32xf32>
      %85 = arith.negf %84 : vector<16x32xf32>
      %86 = math.exp %85 : vector<16x32xf32>
      %cst_48 = arith.constant 1.000000e+00 : f32
      %87 = vector.broadcast %cst_48 : f32 to vector<16x32xf32>
      %88 = arith.addf %87, %86 : vector<16x32xf32>
      %89 = arith.divf %87, %88 : vector<16x32xf32>
      %90 = vector.extract_strided_slice %77 {offsets = [0, 64], sizes = [16, 32], strides = [1, 1]} : vector<16x128xf32> to vector<16x32xf32>
      %91 = vector.extract_strided_slice %77 {offsets = [0, 96], sizes = [16, 32], strides = [1, 1]} : vector<16x128xf32> to vector<16x32xf32>
      %92 = arith.mulf %83, %91 : vector<16x32xf32>
      %93 = arith.addf %90, %92 : vector<16x32xf32>
      %94 = math.tanh %93 : vector<16x32xf32>
      %cst_49 = arith.constant 1.000000e+00 : f32
      %95 = vector.broadcast %cst_49 : f32 to vector<16x32xf32>
      %96 = arith.subf %95, %89 : vector<16x32xf32>
      %97 = arith.mulf %96, %94 : vector<16x32xf32>
      %98 = arith.mulf %89, %68 : vector<16x32xf32>
      %99 = arith.addf %97, %98 : vector<16x32xf32>
      %c0_50 = arith.constant 0 : index
      %c0_51 = arith.constant 0 : index
      %100 = vector.load %arg6[%c0_50, %c0_51] : memref<16x32xf32, #tpu.memory_space<vmem>>, vector<16x32xf32>
      tpu.vector_store %arg6[%c0_50, %c0_51], %99 {strides = array<i32>} : memref<16x32xf32, #tpu.memory_space<vmem>>, vector<16x32xf32>,
      %c6_i32_52 = arith.constant 6 : i32
      %101 = vector.broadcast %c6_i32_52 : i32 to vector<16x1xi32>
      %102 = arith.cmpi eq, %1, %101 : vector<16x1xi32>
      %c0_53 = arith.constant 0 : index
      %c0_54 = arith.constant 0 : index
      %103 = vector.load %arg7[%c0_53, %c0_54] : memref<16x32xf32, #tpu.memory_space<vmem>>, vector<16x32xf32>
      %104 = vector.shape_cast %102 : vector<16x1xi1> to vector<16x1xi1>
      %105 = vector.broadcast %104 : vector<16x1xi1> to vector<16x32xi1>
      %106 = arith.select %105, %99, %103 : vector<16x32xi1>, vector<16x32xf32>
      %c0_55 = arith.constant 0 : index
      %c0_56 = arith.constant 0 : index
      %107 = vector.load %arg7[%c0_55, %c0_56] : memref<16x32xf32, #tpu.memory_space<vmem>>, vector<16x32xf32>
      tpu.vector_store %arg7[%c0_55, %c0_56], %106 {strides = array<i32>} : memref<16x32xf32, #tpu.memory_space<vmem>>, vector<16x32xf32>,
      %c0_57 = arith.constant 0 : index
      %c0_58 = arith.constant 0 : index
      %108 = vector.load %arg8[%c0_57, %c0_58] : memref<16x32xf32, #tpu.memory_space<vmem>>, vector<16x32xf32>
      %109 = vector.shape_cast %102 : vector<16x1xi1> to vector<16x1xi1>
      %110 = vector.broadcast %109 : vector<16x1xi1> to vector<16x32xi1>
      %111 = arith.select %110, %68, %108 : vector<16x32xi1>, vector<16x32xf32>
      %c0_59 = arith.constant 0 : index
      %c0_60 = arith.constant 0 : index
      %112 = vector.load %arg8[%c0_59, %c0_60] : memref<16x32xf32, #tpu.memory_space<vmem>>, vector<16x32xf32>
      tpu.vector_store %arg8[%c0_59, %c0_60], %111 {strides = array<i32>} : memref<16x32xf32, #tpu.memory_space<vmem>>, vector<16x32xf32>,
    } else {
    }
    %c6_i32 = arith.constant 6 : i32
    %49 = arith.cmpi sgt, %0, %c6_i32 : i32
    %50 = arith.extui %49 : i1 to i32
    %c0_i32_30 = arith.constant 0 : i32
    %51 = arith.cmpi ne, %50, %c0_i32_30 : i32
    scf.if %51 {
      %c0_41 = arith.constant 0 : index
      %c0_42 = arith.constant 0 : index
      %68 = vector.load %arg6[%c0_41, %c0_42] : memref<16x32xf32, #tpu.memory_space<vmem>>, vector<16x32xf32>
      %cst_43 = arith.constant dense<0.000000e+00> : vector<16x32xf32>
      %69 = tpu.matmul %2, %68, %cst_43 {dimension_numbers = #tpu.dot_dimension_numbers<[1], [0], [0], [1], [0, 0, 1, 1], [], []>} : vector<16x16xf32>, vector<16x32xf32>, vector<16x32xf32> -> vector<16x32xf32>
      %70 = tpu.concatenate %68, %69 in 1 : vector<16x32xf32>, vector<16x32xf32> -> vector<16x64xf32>
      %cst_44 = arith.constant dense<0.000000e+00> : vector<16x32xf32>
      %71 = tpu.matmul %70, %10, %cst_44 {dimension_numbers = #tpu.dot_dimension_numbers<[1], [0], [0], [1], [0, 0, 1, 1], [], []>} : vector<16x64xf32>, vector<64x32xf32>, vector<16x32xf32> -> vector<16x32xf32>
      %72 = arith.addf %20, %71 : vector<16x32xf32>
      %cst_45 = arith.constant 0.000000e+00 : f32
      %73 = vector.broadcast %cst_45 : f32 to vector<16x32xf32>
      %74 = arith.maximumf %72, %73 : vector<16x32xf32>
      %75 = tpu.concatenate %74, %68 in 1 : vector<16x32xf32>, vector<16x32xf32> -> vector<16x64xf32>
      %cst_46 = arith.constant dense<0.000000e+00> : vector<16x128xf32>
      %76 = tpu.matmul %75, %11, %cst_46 {dimension_numbers = #tpu.dot_dimension_numbers<[1], [0], [0], [1], [0, 0, 1, 1], [], []>} : vector<16x64xf32>, vector<64x128xf32>, vector<16x128xf32> -> vector<16x128xf32>
      %77 = arith.addf %76, %25 : vector<16x128xf32>
      %78 = vector.extract_strided_slice %77 {offsets = [0, 0], sizes = [16, 32], strides = [1, 1]} : vector<16x128xf32> to vector<16x32xf32>
      %79 = arith.negf %78 : vector<16x32xf32>
      %80 = math.exp %79 : vector<16x32xf32>
      %cst_47 = arith.constant 1.000000e+00 : f32
      %81 = vector.broadcast %cst_47 : f32 to vector<16x32xf32>
      %82 = arith.addf %81, %80 : vector<16x32xf32>
      %83 = arith.divf %81, %82 : vector<16x32xf32>
      %84 = vector.extract_strided_slice %77 {offsets = [0, 32], sizes = [16, 32], strides = [1, 1]} : vector<16x128xf32> to vector<16x32xf32>
      %85 = arith.negf %84 : vector<16x32xf32>
      %86 = math.exp %85 : vector<16x32xf32>
      %cst_48 = arith.constant 1.000000e+00 : f32
      %87 = vector.broadcast %cst_48 : f32 to vector<16x32xf32>
      %88 = arith.addf %87, %86 : vector<16x32xf32>
      %89 = arith.divf %87, %88 : vector<16x32xf32>
      %90 = vector.extract_strided_slice %77 {offsets = [0, 64], sizes = [16, 32], strides = [1, 1]} : vector<16x128xf32> to vector<16x32xf32>
      %91 = vector.extract_strided_slice %77 {offsets = [0, 96], sizes = [16, 32], strides = [1, 1]} : vector<16x128xf32> to vector<16x32xf32>
      %92 = arith.mulf %83, %91 : vector<16x32xf32>
      %93 = arith.addf %90, %92 : vector<16x32xf32>
      %94 = math.tanh %93 : vector<16x32xf32>
      %cst_49 = arith.constant 1.000000e+00 : f32
      %95 = vector.broadcast %cst_49 : f32 to vector<16x32xf32>
      %96 = arith.subf %95, %89 : vector<16x32xf32>
      %97 = arith.mulf %96, %94 : vector<16x32xf32>
      %98 = arith.mulf %89, %68 : vector<16x32xf32>
      %99 = arith.addf %97, %98 : vector<16x32xf32>
      %c0_50 = arith.constant 0 : index
      %c0_51 = arith.constant 0 : index
      %100 = vector.load %arg6[%c0_50, %c0_51] : memref<16x32xf32, #tpu.memory_space<vmem>>, vector<16x32xf32>
      tpu.vector_store %arg6[%c0_50, %c0_51], %99 {strides = array<i32>} : memref<16x32xf32, #tpu.memory_space<vmem>>, vector<16x32xf32>,
      %c7_i32_52 = arith.constant 7 : i32
      %101 = vector.broadcast %c7_i32_52 : i32 to vector<16x1xi32>
      %102 = arith.cmpi eq, %1, %101 : vector<16x1xi32>
      %c0_53 = arith.constant 0 : index
      %c0_54 = arith.constant 0 : index
      %103 = vector.load %arg7[%c0_53, %c0_54] : memref<16x32xf32, #tpu.memory_space<vmem>>, vector<16x32xf32>
      %104 = vector.shape_cast %102 : vector<16x1xi1> to vector<16x1xi1>
      %105 = vector.broadcast %104 : vector<16x1xi1> to vector<16x32xi1>
      %106 = arith.select %105, %99, %103 : vector<16x32xi1>, vector<16x32xf32>
      %c0_55 = arith.constant 0 : index
      %c0_56 = arith.constant 0 : index
      %107 = vector.load %arg7[%c0_55, %c0_56] : memref<16x32xf32, #tpu.memory_space<vmem>>, vector<16x32xf32>
      tpu.vector_store %arg7[%c0_55, %c0_56], %106 {strides = array<i32>} : memref<16x32xf32, #tpu.memory_space<vmem>>, vector<16x32xf32>,
      %c0_57 = arith.constant 0 : index
      %c0_58 = arith.constant 0 : index
      %108 = vector.load %arg8[%c0_57, %c0_58] : memref<16x32xf32, #tpu.memory_space<vmem>>, vector<16x32xf32>
      %109 = vector.shape_cast %102 : vector<16x1xi1> to vector<16x1xi1>
      %110 = vector.broadcast %109 : vector<16x1xi1> to vector<16x32xi1>
      %111 = arith.select %110, %68, %108 : vector<16x32xi1>, vector<16x32xf32>
      %c0_59 = arith.constant 0 : index
      %c0_60 = arith.constant 0 : index
      %112 = vector.load %arg8[%c0_59, %c0_60] : memref<16x32xf32, #tpu.memory_space<vmem>>, vector<16x32xf32>
      tpu.vector_store %arg8[%c0_59, %c0_60], %111 {strides = array<i32>} : memref<16x32xf32, #tpu.memory_space<vmem>>, vector<16x32xf32>,
    } else {
    }
    %c7_i32 = arith.constant 7 : i32
    %52 = arith.cmpi sgt, %0, %c7_i32 : i32
    %53 = arith.extui %52 : i1 to i32
    %c0_i32_31 = arith.constant 0 : i32
    %54 = arith.cmpi ne, %53, %c0_i32_31 : i32
    scf.if %54 {
      %c0_41 = arith.constant 0 : index
      %c0_42 = arith.constant 0 : index
      %68 = vector.load %arg6[%c0_41, %c0_42] : memref<16x32xf32, #tpu.memory_space<vmem>>, vector<16x32xf32>
      %cst_43 = arith.constant dense<0.000000e+00> : vector<16x32xf32>
      %69 = tpu.matmul %2, %68, %cst_43 {dimension_numbers = #tpu.dot_dimension_numbers<[1], [0], [0], [1], [0, 0, 1, 1], [], []>} : vector<16x16xf32>, vector<16x32xf32>, vector<16x32xf32> -> vector<16x32xf32>
      %70 = tpu.concatenate %68, %69 in 1 : vector<16x32xf32>, vector<16x32xf32> -> vector<16x64xf32>
      %cst_44 = arith.constant dense<0.000000e+00> : vector<16x32xf32>
      %71 = tpu.matmul %70, %10, %cst_44 {dimension_numbers = #tpu.dot_dimension_numbers<[1], [0], [0], [1], [0, 0, 1, 1], [], []>} : vector<16x64xf32>, vector<64x32xf32>, vector<16x32xf32> -> vector<16x32xf32>
      %72 = arith.addf %20, %71 : vector<16x32xf32>
      %cst_45 = arith.constant 0.000000e+00 : f32
      %73 = vector.broadcast %cst_45 : f32 to vector<16x32xf32>
      %74 = arith.maximumf %72, %73 : vector<16x32xf32>
      %75 = tpu.concatenate %74, %68 in 1 : vector<16x32xf32>, vector<16x32xf32> -> vector<16x64xf32>
      %cst_46 = arith.constant dense<0.000000e+00> : vector<16x128xf32>
      %76 = tpu.matmul %75, %11, %cst_46 {dimension_numbers = #tpu.dot_dimension_numbers<[1], [0], [0], [1], [0, 0, 1, 1], [], []>} : vector<16x64xf32>, vector<64x128xf32>, vector<16x128xf32> -> vector<16x128xf32>
      %77 = arith.addf %76, %25 : vector<16x128xf32>
      %78 = vector.extract_strided_slice %77 {offsets = [0, 0], sizes = [16, 32], strides = [1, 1]} : vector<16x128xf32> to vector<16x32xf32>
      %79 = arith.negf %78 : vector<16x32xf32>
      %80 = math.exp %79 : vector<16x32xf32>
      %cst_47 = arith.constant 1.000000e+00 : f32
      %81 = vector.broadcast %cst_47 : f32 to vector<16x32xf32>
      %82 = arith.addf %81, %80 : vector<16x32xf32>
      %83 = arith.divf %81, %82 : vector<16x32xf32>
      %84 = vector.extract_strided_slice %77 {offsets = [0, 32], sizes = [16, 32], strides = [1, 1]} : vector<16x128xf32> to vector<16x32xf32>
      %85 = arith.negf %84 : vector<16x32xf32>
      %86 = math.exp %85 : vector<16x32xf32>
      %cst_48 = arith.constant 1.000000e+00 : f32
      %87 = vector.broadcast %cst_48 : f32 to vector<16x32xf32>
      %88 = arith.addf %87, %86 : vector<16x32xf32>
      %89 = arith.divf %87, %88 : vector<16x32xf32>
      %90 = vector.extract_strided_slice %77 {offsets = [0, 64], sizes = [16, 32], strides = [1, 1]} : vector<16x128xf32> to vector<16x32xf32>
      %91 = vector.extract_strided_slice %77 {offsets = [0, 96], sizes = [16, 32], strides = [1, 1]} : vector<16x128xf32> to vector<16x32xf32>
      %92 = arith.mulf %83, %91 : vector<16x32xf32>
      %93 = arith.addf %90, %92 : vector<16x32xf32>
      %94 = math.tanh %93 : vector<16x32xf32>
      %cst_49 = arith.constant 1.000000e+00 : f32
      %95 = vector.broadcast %cst_49 : f32 to vector<16x32xf32>
      %96 = arith.subf %95, %89 : vector<16x32xf32>
      %97 = arith.mulf %96, %94 : vector<16x32xf32>
      %98 = arith.mulf %89, %68 : vector<16x32xf32>
      %99 = arith.addf %97, %98 : vector<16x32xf32>
      %c0_50 = arith.constant 0 : index
      %c0_51 = arith.constant 0 : index
      %100 = vector.load %arg6[%c0_50, %c0_51] : memref<16x32xf32, #tpu.memory_space<vmem>>, vector<16x32xf32>
      tpu.vector_store %arg6[%c0_50, %c0_51], %99 {strides = array<i32>} : memref<16x32xf32, #tpu.memory_space<vmem>>, vector<16x32xf32>,
      %c8_i32_52 = arith.constant 8 : i32
      %101 = vector.broadcast %c8_i32_52 : i32 to vector<16x1xi32>
      %102 = arith.cmpi eq, %1, %101 : vector<16x1xi32>
      %c0_53 = arith.constant 0 : index
      %c0_54 = arith.constant 0 : index
      %103 = vector.load %arg7[%c0_53, %c0_54] : memref<16x32xf32, #tpu.memory_space<vmem>>, vector<16x32xf32>
      %104 = vector.shape_cast %102 : vector<16x1xi1> to vector<16x1xi1>
      %105 = vector.broadcast %104 : vector<16x1xi1> to vector<16x32xi1>
      %106 = arith.select %105, %99, %103 : vector<16x32xi1>, vector<16x32xf32>
      %c0_55 = arith.constant 0 : index
      %c0_56 = arith.constant 0 : index
      %107 = vector.load %arg7[%c0_55, %c0_56] : memref<16x32xf32, #tpu.memory_space<vmem>>, vector<16x32xf32>
      tpu.vector_store %arg7[%c0_55, %c0_56], %106 {strides = array<i32>} : memref<16x32xf32, #tpu.memory_space<vmem>>, vector<16x32xf32>,
      %c0_57 = arith.constant 0 : index
      %c0_58 = arith.constant 0 : index
      %108 = vector.load %arg8[%c0_57, %c0_58] : memref<16x32xf32, #tpu.memory_space<vmem>>, vector<16x32xf32>
      %109 = vector.shape_cast %102 : vector<16x1xi1> to vector<16x1xi1>
      %110 = vector.broadcast %109 : vector<16x1xi1> to vector<16x32xi1>
      %111 = arith.select %110, %68, %108 : vector<16x32xi1>, vector<16x32xf32>
      %c0_59 = arith.constant 0 : index
      %c0_60 = arith.constant 0 : index
      %112 = vector.load %arg8[%c0_59, %c0_60] : memref<16x32xf32, #tpu.memory_space<vmem>>, vector<16x32xf32>
      tpu.vector_store %arg8[%c0_59, %c0_60], %111 {strides = array<i32>} : memref<16x32xf32, #tpu.memory_space<vmem>>, vector<16x32xf32>,
    } else {
    }
    %c0_32 = arith.constant 0 : index
    %c0_33 = arith.constant 0 : index
    %55 = vector.load %arg7[%c0_32, %c0_33] : memref<16x32xf32, #tpu.memory_space<vmem>>, vector<16x32xf32>
    %c0_34 = arith.constant 0 : index
    %c0_35 = arith.constant 0 : index
    %56 = vector.load %arg8[%c0_34, %c0_35] : memref<16x32xf32, #tpu.memory_space<vmem>>, vector<16x32xf32>
    %57 = tpu.concatenate %55, %56 in 1 : vector<16x32xf32>, vector<16x32xf32> -> vector<16x64xf32>
    %cst_36 = arith.constant dense<0.000000e+00> : vector<16x1xf32>
    %58 = tpu.matmul %57, %13, %cst_36 {dimension_numbers = #tpu.dot_dimension_numbers<[1], [0], [0], [1], [0, 0, 1, 1], [], []>} : vector<16x64xf32>, vector<64x1xf32>, vector<16x1xf32> -> vector<16x1xf32>
    %59 = arith.addf %23, %58 : vector<16x1xf32>
    %c1_i32_37 = arith.constant 1 : i32
    %60 = vector.broadcast %c1_i32_37 : i32 to vector<16x1xi32>
    %61 = arith.cmpi sge, %1, %60 : vector<16x1xi32>
    %c8_i32 = arith.constant 8 : i32
    %62 = vector.broadcast %c8_i32 : i32 to vector<16x1xi32>
    %63 = arith.cmpi sle, %1, %62 : vector<16x1xi32>
    %64 = arith.andi %61, %63 : vector<16x1xi1>
    %cst_38 = arith.constant 0.000000e+00 : f32
    %65 = vector.broadcast %cst_38 : f32 to vector<16x1xf32>
    %66 = arith.select %64, %59, %65 : vector<16x1xi1>, vector<16x1xf32>
    %c0_39 = arith.constant 0 : index
    %c0_40 = arith.constant 0 : index
    %67 = vector.load %arg5[%c0_39, %c0_40] : memref<16x1xf32, #tpu.memory_space<vmem>>, vector<16x1xf32>
    tpu.vector_store %arg5[%c0_39, %c0_40], %66 {strides = array<i32>} : memref<16x1xf32, #tpu.memory_space<vmem>>, vector<16x1xf32>,
    return
  }
}

</mosaic_0001>

<bundles_post_ra>
// kernel: _forward.1
= control target key start
LH: loop header
LB: loop body
LE: loop exit
PB: predicated region body
PF: predicated region fallthrough
CT: control target
= control target key end

     0   :  { %13 = vsyncpa [#allocation6], 0  ;;  %s5304_s0 = inlined_call_operand.<no memory space> [shape: s32[1], index: 0, kind: input, shape index: {}]   ;;  %s5305_s1 = inlined_call_operand.vmem [shape: s32[16,1], index: 1, kind: input, shape index: {}]   ;;  %s5306_s2 = inlined_call_operand.vmem [shape: f32[16,8], index: 2, kind: input, shape index: {}]   ;;  %s5307_s3 = inlined_call_operand.vmem [shape: f32[16,16], index: 3, kind: input, shape index: {}]   ;;  %s5308_s4 = inlined_call_operand.hbm [shape: f32[272,128], index: 4, kind: input, shape index: {}]   ;;  %s5309_s5 = inlined_call_operand.vmem [shape: f32[16,1], index: 5, kind: output, shape index: {0}]   ;;  %s5310_s6 = inlined_call_operand.hbm [shape: f32[16,32], index: 6, kind: output, shape index: {1}]  }
   0x1   :  { %14 = vsyncpa [#allocation7], 0  ;;  %s4367_s21 = smov [#allocation5]  }
   0x2   :  { %s28_s22 = sshll.u32 %s4367_s21, 4  ;;  %s29_s22 = int_to_ptr.vmem [resolvable:$true] %s28_s22 }
   0x3   :  { %s4331_s23 = scalar_lea.vmem %s29_s22, 4352  ;;  %p4336_p1 = scmp.lt.s32.totalorder %s29_s22, %s29_s22 }
   0x4   :  { %p4332_p0 = scmp.ne.s32.totalorder %s29_s22, %s4331_s23  ;;  %p4337_p2 = scmp.lt.s32.totalorder %s4331_s23, %s4331_s23 }
   0x6   :  { %p4338_p3 = por %p4337_p2, %p4336_p1 }
   0x8   :  { %p4339_p4 = pnand %p4338_p3, %p4332_p0 }
   0xa   :  { %4342 = shalt.err (!%p4339_p4)
}
   0xb   :  { %s4368_s24 = smov 128   ;;  %s4369_s25 = smov 8  }
   0xc   :  { %34 = dma.hbm_to_vmem [thread:$0]  %s5308_s4, 4352, %s29_s22, [#allocation6], %s4368_s24, %s4368_s24, %s4369_s25  }
   0xd   :  { %4363 = dma.done.wait [#allocation6], 4352  }
   0xe   :  { %4364 = vsyncadd [#allocation6], 4294962944  ;;  %v4449_v0 = vld [vmem:[%s5305_s1] sm:$0xff]  ;;  %v4454_v1 = vld [vmem:[%s5305_s1 + $0x8] sm:$0xff]  ;;  %vm83_vm0 = vcmask 64512   ;;  %v79_v33 = vlaneseq  ;;  %vm169_vm1 = vcmask 261120  }
   0xf   :  { %v4459_v2 = vld [vmem:[%s5307_s3] sm:$0xff]  ;;  %v4464_v3 = vld [vmem:[%s5307_s3 + $0x8] sm:$0xff]  ;;  %v4466_v4 = vld [vmem:[#allocation5 + $0x30] sm:$0xff]  ;;  %v4370_v44 = vmov 0.0   ;;  %p3476_p5 = scmp.le.s32.totalorder %s5304_s0, 0 }
  0x10   :  { %v4468_v5 = vld [vmem:[#allocation5 + $0x38] sm:$0xff]  ;;  %v4470_v6 = vld [vmem:[#allocation5 + $0x40] sm:$0xff]  ;;  %v4472_v7 = vld [vmem:[#allocation5 + $0x48] sm:$0xff]  ;;  %v80_v34 = vshrl.u32 %v79_v33, 7  ;;  %336 = vst.msk [vmem:[#allocation2] sm:$0xff] %vm169_vm1, %v4370_v44  ;;  %s4371_s14 = smov (!%p3476_p5), 32  }
  0x11   :  { %v4474_v8 = vld [vmem:[#allocation5 + $0x50] sm:$0xff]  ;;  %v4476_v9 = vld [vmem:[#allocation5 + $0x58] sm:$0xff]  ;;  %v4478_v10 = vld [vmem:[#allocation5 + $0x60] sm:$0xff]  ;;  %337 = vst.msk [vmem:[#allocation2 + $0x8] sm:$0xff] %vm169_vm1, %v4370_v44  ;;  %s4373_s15 = smov (!%p3476_p5), 64   ;;  %s4374_s16 = smov (!%p3476_p5), 96  }
  0x12   :  { %v4480_v11 = vld [vmem:[#allocation5 + $0x68] sm:$0xff]  ;;  %v4482_v12 = vld [vmem:[#allocation5 + $0x70] sm:$0xff]  ;;  %v4484_v13 = vld [vmem:[#allocation5 + $0x78] sm:$0xff]  ;;  %v332_v37 = vsub.s32 2, %v80_v34  ;;  %338 = vst.msk [vmem:[#allocation3] sm:$0xff] %vm169_vm1, %v4370_v44  ;;  %v81_v45 = vsub.s32 0, %v80_v34 }
  0x13   :  { %v4486_v14 = vld [vmem:[#allocation5 + $0x80] sm:$0xff]  ;;  %v4488_v15 = vld [vmem:[#allocation5 + $0x88] sm:$0xff]  ;;  %v4490_v16 = vld [vmem:[#allocation5 + $0x90] sm:$0xff]  ;;  %339 = vst.msk [vmem:[#allocation3 + $0x8] sm:$0xff] %vm169_vm1, %v4370_v44  ;;  %v167_v51 = vsub.s32 1, %v80_v34  ;;  %v253_v52 = vsub.s32 3, %v80_v34 }
  0x14   :  { %v4492_v17 = vld [vmem:[#allocation5 + $0x98] sm:$0xff]  ;;  %v4494_v18 = vld [vmem:[#allocation5 + $0xa0] sm:$0xff]  ;;  %v4496_v19 = vld [vmem:[#allocation5 + $0xa8] sm:$0xff] }
  0x15   :  { %v4498_v20 = vld [vmem:[#allocation5 + $0xd0] sm:$0xff]  ;;  %v4500_v21 = vld [vmem:[#allocation5 + $0xd8] sm:$0xff]  ;;  %v4502_v22 = vld [vmem:[#allocation5 + $0xe0] sm:$0xff] }
  0x16   :  { %v4504_v23 = vld [vmem:[#allocation5 + $0xe8] sm:$0xff]  ;;  %v4506_v24 = vld [vmem:[#allocation5 + $0xf0] sm:$0xff]  ;;  %v4508_v25 = vld [vmem:[#allocation5 + $0xf8] sm:$0xff] }
  0x17   :  { %v4510_v26 = vld [vmem:[#allocation5 + $0x100] sm:$0xff]  ;;  %v4512_v27 = vld [vmem:[#allocation5 + $0x108] sm:$0xff]  ;;  %v46_v38 = vld [vmem:[#allocation5 + $0x18] sm:$0xff] }
  0x18   :  { %v44_v28 = vld [vmem:[#allocation5 + $0x8] sm:$0xff]  ;;  %v77_v29 = vld [vmem:[%s5306_s2] sm:$0xff]  ;;  %v66_v39 = vld [vmem:[#allocation5 + $0xb8] sm:$0xff] }
  0x19   :  { %3767 = vmatprep.subr.mxu0 %v44_v28  ;;  %3769 = vmatprep.mubr.msk.f32.mxu0 %vm83_vm0, %v77_v29  ;;  %v78_v30 = vld [vmem:[%s5306_s2 + $0x8] sm:$0xff]  ;;  %v47_v35 = vld [vmem:[#allocation5 + $0x20] sm:$0xff]  ;;  %v45_v42 = vld [vmem:[#allocation5 + $0x10] sm:$0xff] }
  0x1a   :  { %v48_v31 = vld [vmem:[#allocation5 + $0x28] sm:$0xff]  ;;  %3768 = vmatpush3.msra.mxu0 %v44_v28  ;;  %v67_v36 = vld [vmem:[#allocation5 + $0xc0] sm:$0xff]  ;;  %v65_v43 = vld [vmem:[#allocation5 + $0xb0] sm:$0xff] }
  0x1b   :  { %v68_v32 = vld [vmem:[#allocation5 + $0xc8] sm:$0xff]  ;;  %3772 = vmatprep.subr.mxu1 %v48_v31  ;;  %3770 = vmatmul.mubr.msk.f32.vlgmr.msra.gmra.mxu0 %vm83_vm0, %v78_v30  ;;  %v43_v40 = vld [vmem:[#allocation5] sm:$0xff] }
  0x1c   :  { %3783 = vmatprep.subr.mxu0 %v68_v32  ;;  %3773 = vmatpush3.msra.mxu1 %v48_v31  ;;  %v4520_v41 = vrot.slane %v43_v40, %v332_v37  ;;  %v82_v46 = vrot.slane %v43_v40, %v81_v45  ;;  %v168_v53 = vrot.slane %v43_v40, %v167_v51 }
  0x1d   :  { %3784 = vmatpush3.msra.mxu0 %v68_v32  ;;  %3774 = vmatprep.subr.mxu1 %v47_v35  ;;  %v254_v54 = vrot.slane %v43_v40, %v253_v52 }
  0x1e   :  { %3785 = vmatprep.subr.mxu0 %v67_v36  ;;  %3775 = vmatpush3.msra.mxu1 %v47_v35 }
  0x1f   :  { %3786 = vmatpush3.msra.mxu0 %v67_v36  ;;  %3776 = vmatprep.subr.mxu1 %v46_v38 }
  0x20   :  { %3787 = vmatprep.subr.mxu0 %v66_v39  ;;  %3777 = vmatpush3.msra.mxu1 %v46_v38 }
  0x21   :  { %3788 = vmatpush3.msra.mxu0 %v66_v39  ;;  %3778 = vmatprep.subr.mxu1 %v45_v42 }
  0x22   :  { %3789 = vmatprep.subr.mxu0 %v65_v43  ;;  %3779 = vmatpush3.msra.mxu1 %v45_v42 }
  0x23   :  { %3790 = vmatpush3.msra.mxu0 %v65_v43 }
  0xdb   :  { %v3771_v47 = vpop.f32.mrf.mxu0 }
  0xdc   :  { %v162_v48 = vadd.f32 %v3771_v47, %v82_v46 }
  0xdd   :  { %v156_v49 = vpop.f32.mrf.mxu0 }
  0xde   :  { %335 = vst.msk [vmem:[#allocation8 + $0x8] sm:$0xff] %vm169_vm1, %v162_v48  ;;  %v157_v50 = vadd.f32 %v156_v49, %v82_v46 }
  0xe0   :  { %334 = vst.msk [vmem:[#allocation8] sm:$0xff] %vm169_vm1, %v157_v50  ;;  %3780 = vmatprep.mubr.msk.f32.mxu1 %vm169_vm1, %v157_v50  ;;  %3791 = vmatprep.mubr.msk.f32.mxu0 %vm169_vm1, %v157_v50 }
  0xe1   :  { %3781 = vmatmul.mubr.msk.f32.vlgmr.msra.gmra.mxu1 %vm169_vm1, %v162_v48  ;;  %3792 = vmatmul.mubr.msk.f32.vlgmr.msra.gmra.mxu0 %vm169_vm1, %v162_v48 }
 0x1a0   :  { %343 = sbr.rel (%p3476_p5) target bundleno = 1626 (0x65a), region = 29 }
 0x1a1   :  { %v3782_v55 = vpop.f32.mrf.mxu1  ;;  %v3793_v56 = vpop.f32.mrf.mxu0 }
 0x1a2   :  { %v4532_v57 = vadd.f32 %v3782_v55, %v168_v53  ;;  %v4534_v58 = vadd.f32 %v3793_v56, %v254_v54 }
 0x1a3   :  { %v242_v59 = vpop.f32.mrf.mxu1  ;;  %v321_v60 = vpop.f32.mrf.mxu0 }
 0x1a4   :  { %v4536_v61 = vadd.f32 %v242_v59, %v168_v53  ;;  %v4538_v62 = vadd.f32 %v321_v60, %v254_v54 }
 0x1a5   :  { %v4543_v63 = vld [vmem:[#allocation8 + $0x8] sm:$0xff]  ;;  %v4545_v28 = vld [vmem:[#allocation8] sm:$0xff]  ;;  %vm346_vm2 = vcmask 130048   ;;  %3801 = vmatprep.subr.mxu1 %v4480_v11  ;;  %vm438_vm3 = vcmask 523264   ;;  %v4372_v56 = vmov 0   ;;  %vm676_vm4 = vcmp.eq.s32.totalorder %v4454_v1, 1 }
 0x1a6   :  { %3794 = vmatprep.subr.mxu0 %v4543_v63  ;;  %3798 = vmatprep.mubr.msk.f32.mxu0 %vm346_vm2, %v4459_v2  ;;  %vm675_vm5 = vcmp.eq.s32.totalorder %v4449_v0, 1 }
 0x1a7   :  { %3795 = vmatpush3.msra.mxu0 %v4543_v63  ;;  %3802 = vmatpush3.msra.mxu1 %v4480_v11 }
 0x1a8   :  { %3796 = vmatprep.subr.mxu0 %v4545_v28  ;;  %3803 = vmatprep.subr.mxu1 %v4478_v10 }
 0x1a9   :  { %3797 = vmatpush3.msra.mxu0 %v4545_v28  ;;  %3804 = vmatpush3.msra.mxu1 %v4478_v10 }
 0x1aa   :  { %3799 = vmatmul.mubr.msk.f32.vlgmr.msra.gmra.mxu0 %vm346_vm2, %v4464_v3  ;;  %3805 = vmatprep.subr.mxu1 %v4476_v9 }
 0x1ab   :  { %3806 = vmatpush3.msra.mxu1 %v4476_v9  ;;  %3820 = vmatprep.subr.mxu0 %v4496_v19 }
 0x1ac   :  { %3807 = vmatprep.subr.mxu1 %v4474_v8  ;;  %3821 = vmatpush3.msra.mxu0 %v4496_v19 }
 0x1ad   :  { %3808 = vmatpush3.msra.mxu1 %v4474_v8  ;;  %3822 = vmatprep.subr.mxu0 %v4494_v18 }
 0x1ae   :  { %3809 = vmatprep.subr.mxu1 %v4472_v7  ;;  %3823 = vmatpush3.msra.mxu0 %v4494_v18 }
 0x1af   :  { %3810 = vmatpush3.msra.mxu1 %v4472_v7  ;;  %3824 = vmatprep.subr.mxu0 %v4492_v17 }
 0x1b0   :  { %3811 = vmatprep.subr.mxu1 %v4470_v6  ;;  %3825 = vmatpush3.msra.mxu0 %v4492_v17 }
 0x1b1   :  { %3812 = vmatpush3.msra.mxu1 %v4470_v6  ;;  %3826 = vmatprep.subr.mxu0 %v4490_v16 }
 0x1b2   :  { %3813 = vmatprep.subr.mxu1 %v4468_v5  ;;  %3827 = vmatpush3.msra.mxu0 %v4490_v16 }
 0x1b3   :  { %3814 = vmatpush3.msra.mxu1 %v4468_v5  ;;  %3828 = vmatprep.subr.mxu0 %v4488_v15 }
 0x1b4   :  { %3815 = vmatprep.subr.mxu1 %v4466_v4  ;;  %3829 = vmatpush3.msra.mxu0 %v4488_v15 }
 0x1b5   :  { %3816 = vmatpush3.msra.mxu1 %v4466_v4  ;;  %3830 = vmatprep.subr.mxu0 %v4486_v14 }
 0x1b6   :  { %3831 = vmatpush3.msra.mxu0 %v4486_v14  ;;  %526 = vrot.lane.b32.xlu1 %v4545_v28, %s4371_s14 }
 0x1b7   :  { %3832 = vmatprep.subr.mxu0 %v4484_v13  ;;  %4211 = vset.pattern.permute.xlu0 %v4372_v56 }
 0x1b8   :  { %3833 = vmatpush3.msra.mxu0 %v4484_v13  ;;  %4212 = vset.pattern.permute.xlu1 %v4372_v56 }
 0x1b9   :  { %3834 = vmatprep.subr.mxu0 %v4482_v12 }
 0x1ba   :  { %3835 = vmatpush3.msra.mxu0 %v4482_v12  ;;  %528 = vrot.lane.b32.xlu1 %v4543_v63, %s4371_s14 }
 0x228   :  { %v4597_v35 = vpop.permute.xlu1 %526 }
 0x22c   :  { %v4601_v43 = vpop.permute.xlu1 %528 }
 0x26a   :  { %v3800_v29 = vpop.f32.mrf.mxu0 }
 0x26c   :  { %v419_v30 = vpop.f32.mrf.mxu0 }
 0x26d   :  { %430 = vrot.lane.b32.xlu0 %v419_v30, %s4371_s14 }
 0x271   :  { %432 = vrot.lane.b32.xlu0 %v3800_v29, %s4371_s14 }
 0x2df   :  { %v431_v31 = vpop.permute.xlu0 %430 }
 0x2e0   :  { %v436_v32 = vsel %vm169_vm1, %v4545_v28, %v431_v31 }
 0x2e1   :  { %3817 = vmatprep.mubr.msk.f32.mxu1 %vm438_vm3, %v436_v32 }
 0x2e3   :  { %v433_v33 = vpop.permute.xlu0 %432 }
 0x2e4   :  { %v437_v34 = vsel %vm169_vm1, %v4543_v63, %v433_v33  ;;  %v680_v33 = vsel %vm676_vm4, 1, %v4372_v56 }
 0x2e5   :  { %3818 = vmatmul.mubr.msk.f32.vlgmr.msra.gmra.mxu1 %vm438_vm3, %v437_v34  ;;  %v679_v34 = vsel %vm675_vm5, 1, %v4372_v56 }
 0x3a5   :  { %v3819_v36 = vpop.f32.mrf.mxu1 }
 0x3a6   :  { %v521_v37 = vadd.f32 %v3819_v36, %v4532_v57 }
 0x3a7   :  { %v511_v38 = vpop.f32.mrf.mxu1 }
 0x3a8   :  { %v520_v39 = vadd.f32 %v511_v38, %v4536_v61  ;;  %v523_v40 = vmax.f32 %v521_v37, 0.0 }
 0x3aa   :  { %v522_v42 = vmax.f32 %v520_v39, 0.0  ;;  %v533_v45 = vsel %vm169_vm1, %v523_v40, %v4601_v43  ;;  %v710_v40 = vld [vmem:[#allocation3 + $0x8] sm:$0xff] }
 0x3ac   :  { %v532_v44 = vsel %vm169_vm1, %v522_v42, %v4597_v35 }
 0x3ad   :  { %3836 = vmatprep.mubr.msk.f32.mxu0 %vm438_vm3, %v532_v44  ;;  %v709_v44 = vld [vmem:[#allocation3] sm:$0xff] }
 0x3ae   :  { %3837 = vmatmul.mubr.msk.f32.vlgmr.msra.gmra.mxu0 %vm438_vm3, %v533_v45 }
 0x46e   :  { %v3838_v46 = vpop.f32.mrf.mxu0 }
 0x46f   :  { %v612_v47 = vadd.f32 %v3838_v46, %v4520_v41 }
 0x470   :  { %v606_v48 = vpop.f32.mrf.mxu0 }
 0x471   :  { %v607_v49 = vadd.f32 %v606_v48, %v4520_v41  ;;  %631 = vrot.lane.b32.xlu1 %v612_v47, %s4371_s14  ;;  %v3484_v50 = vmul.f32 -1.442695, %v612_v47 }
 0x473   :  { %629 = vrot.lane.b32.xlu0 %v607_v49, %s4371_s14  ;;  %v3483_v51 = vmul.f32 -1.442695, %v607_v49  ;;  %4213 = vpow2.f32 %v3484_v50 }
 0x475   :  { %4215 = vpow2.f32 %v3483_v51  ;;  %v677_v51 = vld [vmem:[#allocation2] sm:$0xff] }
 0x480   :  { %v4214_v52 = vpop.eup %4213 }
 0x481   :  { %v622_v54 = vadd.f32 1.0, %v4214_v52 }
 0x482   :  { %v4216_v53 = vpop.eup %4215 }
 0x483   :  { %v621_v55 = vadd.f32 1.0, %v4216_v53  ;;  %4217 = vrcp.f32 %v622_v54 }
 0x485   :  { %4219 = vrcp.f32 %v621_v55 }
 0x490   :  { %v4218_v59 = vpop.eup %4217 }
 0x491   :  { %v662_v53 = vmul.f32 %v4218_v59, %v4601_v43 }
 0x492   :  { %v4220_v30 = vpop.eup %4219 }
 0x493   :  { %v649_v55 = vsub.f32 1.0, %v4220_v30 }
 0x4e3   :  { %v632_v60 = vpop.permute.xlu1 %631 }
 0x4e4   :  { %v636_v29 = vmul.f32 %v4218_v59, %v632_v60 }
 0x4e5   :  { %v630_v31 = vpop.permute.xlu0 %629 }
 0x4e6   :  { %v635_v32 = vmul.f32 %v4220_v30, %v630_v31  ;;  %641 = vrot.lane.b32.xlu1 %v636_v29, %s4373_s15 }
 0x4e8   :  { %639 = vrot.lane.b32.xlu0 %v635_v32, %s4373_s15 }
 0x4ea   :  { %685 = vperm.xlu1 %4212, %v680_v33  }
 0x4ec   :  { %682 = vperm.xlu0 %4211, %v679_v34  }
 0x558   :  { %v642_v36 = vpop.permute.xlu1 %641 }
 0x559   :  { %v646_v37 = vadd.f32 %v642_v36, %v612_v47 }
 0x55a   :  { %v640_v38 = vpop.permute.xlu0 %639 }
 0x55b   :  { %4221 = vtanh.f32 %v646_v37  ;;  %v645_v39 = vadd.f32 %v640_v38, %v607_v49  ;;  %v678_v49 = vld [vmem:[#allocation2 + $0x8] sm:$0xff] }
 0x55d   :  { %4223 = vtanh.f32 %v645_v39 }
 0x565   :  { %v686_v42 = vpop.permute.xlu1 %685 }
 0x566   :  { %vm688_vm6 = vcmp.eq.s32.totalorder %v686_v42, 1 }
 0x567   :  { %v683_v45 = vpop.permute.xlu0 %682  ;;  %v712_v46 = vsel %vm688_vm6, %v4543_v63, %v710_v40  ;;  %v650_v63 = vsub.f32 1.0, %v4218_v59 }
 0x568   :  { %v4222_v48 = vpop.eup %4221  ;;  %vm687_vm7 = vcmp.eq.s32.totalorder %v683_v45, 1  ;;  %714 = vst.msk [vmem:[#allocation3 + $0x8] sm:$0xff] %vm169_vm1, %v712_v46 }
 0x569   :  { %655 = vrot.lane.b32.xlu0 %v4222_v48, %s4374_s16  ;;  %v711_v47 = vsel %vm687_vm7, %v4545_v28, %v709_v44  ;;  %v661_v28 = vmul.f32 %v4220_v30, %v4597_v35 }
 0x56a   :  { %v4224_v50 = vpop.eup %4223  ;;  %713 = vst.msk [vmem:[#allocation3] sm:$0xff] %vm169_vm1, %v711_v47 }
 0x56b   :  { %653 = vrot.lane.b32.xlu1 %v4224_v50, %s4374_s16 }
 0x56d   :  { %693 = vrot.lane.b32.xlu0 %v678_v49, %s4371_s14 }
 0x56f   :  { %691 = vrot.lane.b32.xlu1 %v677_v51, %s4371_s14 }
 0x5db   :  { %v656_v52 = vpop.permute.xlu0 %655 }
 0x5dc   :  { %v660_v54 = vmul.f32 %v656_v52, %v650_v63 }
 0x5dd   :  { %v654_v56 = vpop.permute.xlu1 %653 }
 0x5de   :  { %v664_v60 = vadd.f32 %v662_v53, %v660_v54  ;;  %v659_v29 = vmul.f32 %v654_v56, %v649_v55 }
 0x5df   :  { %v694_v32 = vpop.permute.xlu0 %693 }
 0x5e0   :  { %v663_v31 = vadd.f32 %v661_v28, %v659_v29  ;;  %669 = vrot.lane.b32.xlu0 %v664_v60, %s4374_s16  ;;  %v698_v34 = vsel %vm688_vm6, %v664_v60, %v694_v32 }
 0x5e1   :  { %v692_v33 = vpop.permute.xlu1 %691 }
 0x5e2   :  { %667 = vrot.lane.b32.xlu1 %v663_v31, %s4374_s16  ;;  %v697_v36 = vsel %vm687_vm7, %v663_v31, %v692_v33 }
 0x5e4   :  { %703 = vrot.lane.b32.xlu0 %v698_v34, %s4374_s16 }
 0x5e6   :  { %701 = vrot.lane.b32.xlu1 %v697_v36, %s4374_s16 }
 0x652   :  { %v670_v37 = vpop.permute.xlu0 %669 }
 0x653   :  { %674 = vst.msk [vmem:[#allocation8 + $0x8] sm:$0xff] %vm169_vm1, %v670_v37 }
 0x654   :  { %v668_v43 = vpop.permute.xlu1 %667 }
 0x655   :  { %673 = vst.msk [vmem:[#allocation8] sm:$0xff] %vm169_vm1, %v668_v43 }
 0x656   :  { %v704_v59 = vpop.permute.xlu0 %703 }
 0x657   :  { %708 = vst.msk [vmem:[#allocation2 + $0x8] sm:$0xff] %vm169_vm1, %v704_v59 }
 0x658   :  { %v702_v35 = vpop.permute.xlu1 %701 }
 0x659   :  { %707 = vst.msk [vmem:[#allocation2] sm:$0xff] %vm169_vm1, %v702_v35 }
 0x65a PF:  { %p3485_p6 = scmp.le.s32.totalorder %s5304_s0, 1 }
 0x65b   :  { %s4375_s19 = smov (!%p3485_p6), 32   ;;  %s4377_s20 = smov (!%p3485_p6), 64  }
 0x65c   :  { %718 = sbr.rel (%p3485_p6) target bundleno = 2838 (0xb16), region = 33  ;;  %s4378_s21 = smov (!%p3485_p6), 96  }
 0x661   :  { %v4634_v30 = vld [vmem:[#allocation8 + $0x8] sm:$0xff]  ;;  %v4636_v38 = vld [vmem:[#allocation8] sm:$0xff]  ;;  %vm721_vm8 = vcmask 130048   ;;  %3846 = vmatprep.subr.mxu1 %v4480_v11  ;;  %vm813_vm9 = vcmask 523264   ;;  %v4376_v43 = vmov 0   ;;  %vm1051_vm10 = vcmp.eq.s32.totalorder %v4454_v1, 2 }
 0x662   :  { %3839 = vmatprep.subr.mxu0 %v4634_v30  ;;  %3843 = vmatprep.mubr.msk.f32.mxu0 %vm721_vm8, %v4459_v2  ;;  %vm1050_vm11 = vcmp.eq.s32.totalorder %v4449_v0, 2 }
 0x663   :  { %3840 = vmatpush3.msra.mxu0 %v4634_v30  ;;  %3847 = vmatpush3.msra.mxu1 %v4480_v11 }
 0x664   :  { %3841 = vmatprep.subr.mxu0 %v4636_v38  ;;  %3848 = vmatprep.subr.mxu1 %v4478_v10 }
 0x665   :  { %3842 = vmatpush3.msra.mxu0 %v4636_v38  ;;  %3849 = vmatpush3.msra.mxu1 %v4478_v10 }
 0x666   :  { %3844 = vmatmul.mubr.msk.f32.vlgmr.msra.gmra.mxu0 %vm721_vm8, %v4464_v3  ;;  %3850 = vmatprep.subr.mxu1 %v4476_v9 }
 0x667   :  { %3851 = vmatpush3.msra.mxu1 %v4476_v9  ;;  %3865 = vmatprep.subr.mxu0 %v4496_v19 }
 0x668   :  { %3852 = vmatprep.subr.mxu1 %v4474_v8  ;;  %3866 = vmatpush3.msra.mxu0 %v4496_v19 }
 0x669   :  { %3853 = vmatpush3.msra.mxu1 %v4474_v8  ;;  %3867 = vmatprep.subr.mxu0 %v4494_v18 }
 0x66a   :  { %3854 = vmatprep.subr.mxu1 %v4472_v7  ;;  %3868 = vmatpush3.msra.mxu0 %v4494_v18 }
 0x66b   :  { %3855 = vmatpush3.msra.mxu1 %v4472_v7  ;;  %3869 = vmatprep.subr.mxu0 %v4492_v17 }
 0x66c   :  { %3856 = vmatprep.subr.mxu1 %v4470_v6  ;;  %3870 = vmatpush3.msra.mxu0 %v4492_v17 }
 0x66d   :  { %3857 = vmatpush3.msra.mxu1 %v4470_v6  ;;  %3871 = vmatprep.subr.mxu0 %v4490_v16 }
 0x66e   :  { %3858 = vmatprep.subr.mxu1 %v4468_v5  ;;  %3872 = vmatpush3.msra.mxu0 %v4490_v16 }
 0x66f   :  { %3859 = vmatpush3.msra.mxu1 %v4468_v5  ;;  %3873 = vmatprep.subr.mxu0 %v4488_v15 }
 0x670   :  { %3860 = vmatprep.subr.mxu1 %v4466_v4  ;;  %3874 = vmatpush3.msra.mxu0 %v4488_v15 }
 0x671   :  { %3861 = vmatpush3.msra.mxu1 %v4466_v4  ;;  %3875 = vmatprep.subr.mxu0 %v4486_v14 }
 0x672   :  { %3876 = vmatpush3.msra.mxu0 %v4486_v14  ;;  %901 = vrot.lane.b32.xlu1 %v4636_v38, %s4375_s19 }
 0x673   :  { %3877 = vmatprep.subr.mxu0 %v4484_v13  ;;  %4225 = vset.pattern.permute.xlu0 %v4376_v43 }
 0x674   :  { %3878 = vmatpush3.msra.mxu0 %v4484_v13  ;;  %4226 = vset.pattern.permute.xlu1 %v4376_v43 }
 0x675   :  { %3879 = vmatprep.subr.mxu0 %v4482_v12 }
 0x676   :  { %3880 = vmatpush3.msra.mxu0 %v4482_v12  ;;  %903 = vrot.lane.b32.xlu1 %v4634_v30, %s4375_s19 }
 0x6e4   :  { %v4688_v48 = vpop.permute.xlu1 %901 }
 0x6e8   :  { %v4692_v53 = vpop.permute.xlu1 %903 }
 0x726   :  { %v3845_v39 = vpop.f32.mrf.mxu0 }
 0x728   :  { %v794_v40 = vpop.f32.mrf.mxu0 }
 0x729   :  { %805 = vrot.lane.b32.xlu0 %v794_v40, %s4375_s19 }
 0x72d   :  { %807 = vrot.lane.b32.xlu0 %v3845_v39, %s4375_s19 }
 0x79b   :  { %v806_v42 = vpop.permute.xlu0 %805 }
 0x79c   :  { %v811_v44 = vsel %vm169_vm1, %v4636_v38, %v806_v42 }
 0x79d   :  { %3862 = vmatprep.mubr.msk.f32.mxu1 %vm813_vm9, %v811_v44 }
 0x79f   :  { %v808_v45 = vpop.permute.xlu0 %807 }
 0x7a0   :  { %v812_v46 = vsel %vm169_vm1, %v4634_v30, %v808_v45  ;;  %v1055_v45 = vsel %vm1051_vm10, 1, %v4376_v43 }
 0x7a1   :  { %3863 = vmatmul.mubr.msk.f32.vlgmr.msra.gmra.mxu1 %vm813_vm9, %v812_v46  ;;  %v1054_v46 = vsel %vm1050_vm11, 1, %v4376_v43 }
 0x861   :  { %v3864_v47 = vpop.f32.mrf.mxu1 }
 0x862   :  { %v896_v50 = vadd.f32 %v3864_v47, %v4532_v57 }
 0x863   :  { %v886_v49 = vpop.f32.mrf.mxu1 }
 0x864   :  { %v895_v51 = vadd.f32 %v886_v49, %v4536_v61  ;;  %v898_v63 = vmax.f32 %v896_v50, 0.0 }
 0x866   :  { %v897_v52 = vmax.f32 %v895_v51, 0.0  ;;  %v908_v55 = vsel %vm169_vm1, %v898_v63, %v4692_v53  ;;  %v1085_v63 = vld [vmem:[#allocation3 + $0x8] sm:$0xff] }
 0x868   :  { %v907_v54 = vsel %vm169_vm1, %v897_v52, %v4688_v48 }
 0x869   :  { %3881 = vmatprep.mubr.msk.f32.mxu0 %vm813_vm9, %v907_v54  ;;  %v1084_v54 = vld [vmem:[#allocation3] sm:$0xff] }
 0x86a   :  { %3882 = vmatmul.mubr.msk.f32.vlgmr.msra.gmra.mxu0 %vm813_vm9, %v908_v55 }
 0x92a   :  { %v3883_v56 = vpop.f32.mrf.mxu0 }
 0x92b   :  { %v987_v60 = vadd.f32 %v3883_v56, %v4520_v41 }
 0x92c   :  { %v981_v28 = vpop.f32.mrf.mxu0 }
 0x92d   :  { %v982_v29 = vadd.f32 %v981_v28, %v4520_v41  ;;  %1006 = vrot.lane.b32.xlu1 %v987_v60, %s4375_s19  ;;  %v3493_v31 = vmul.f32 -1.442695, %v987_v60 }
 0x92f   :  { %1004 = vrot.lane.b32.xlu0 %v982_v29, %s4375_s19  ;;  %v3492_v32 = vmul.f32 -1.442695, %v982_v29  ;;  %4227 = vpow2.f32 %v3493_v31 }
 0x931   :  { %4229 = vpow2.f32 %v3492_v32  ;;  %v1052_v32 = vld [vmem:[#allocation2] sm:$0xff] }
 0x93c   :  { %v4228_v33 = vpop.eup %4227 }
 0x93d   :  { %v997_v36 = vadd.f32 1.0, %v4228_v33 }
 0x93e   :  { %v4230_v34 = vpop.eup %4229 }
 0x93f   :  { %v996_v37 = vadd.f32 1.0, %v4230_v34  ;;  %4231 = vrcp.f32 %v997_v36 }
 0x941   :  { %4233 = vrcp.f32 %v996_v37 }
 0x94c   :  { %v4232_v59 = vpop.eup %4231 }
 0x94d   :  { %v1037_v34 = vmul.f32 %v4232_v59, %v4692_v53 }
 0x94e   :  { %v4234_v40 = vpop.eup %4233 }
 0x94f   :  { %v1024_v37 = vsub.f32 1.0, %v4234_v40 }
 0x99f   :  { %v1007_v35 = vpop.permute.xlu1 %1006 }
 0x9a0   :  { %v1011_v39 = vmul.f32 %v4232_v59, %v1007_v35 }
 0x9a1   :  { %v1005_v42 = vpop.permute.xlu0 %1004 }
 0x9a2   :  { %v1010_v44 = vmul.f32 %v4234_v40, %v1005_v42  ;;  %1016 = vrot.lane.b32.xlu1 %v1011_v39, %s4377_s20 }
 0x9a4   :  { %1014 = vrot.lane.b32.xlu0 %v1010_v44, %s4377_s20 }
 0x9a6   :  { %1060 = vperm.xlu1 %4226, %v1055_v45  }
 0x9a8   :  { %1057 = vperm.xlu0 %4225, %v1054_v46  }
 0xa14   :  { %v1017_v47 = vpop.permute.xlu1 %1016 }
 0xa15   :  { %v1021_v50 = vadd.f32 %v1017_v47, %v987_v60 }
 0xa16   :  { %v1015_v49 = vpop.permute.xlu0 %1014 }
 0xa17   :  { %4235 = vtanh.f32 %v1021_v50  ;;  %v1020_v51 = vadd.f32 %v1015_v49, %v982_v29  ;;  %v1053_v29 = vld [vmem:[#allocation2 + $0x8] sm:$0xff] }
 0xa19   :  { %4237 = vtanh.f32 %v1020_v51 }
 0xa21   :  { %v1061_v52 = vpop.permute.xlu1 %1060 }
 0xa22   :  { %vm1063_vm12 = vcmp.eq.s32.totalorder %v1061_v52, 1 }
 0xa23   :  { %v1058_v55 = vpop.permute.xlu0 %1057  ;;  %v1087_v56 = vsel %vm1063_vm12, %v4634_v30, %v1085_v63  ;;  %v1025_v30 = vsub.f32 1.0, %v4232_v59 }
 0xa24   :  { %v4236_v28 = vpop.eup %4235  ;;  %vm1062_vm13 = vcmp.eq.s32.totalorder %v1058_v55, 1  ;;  %1089 = vst.msk [vmem:[#allocation3 + $0x8] sm:$0xff] %vm169_vm1, %v1087_v56 }
 0xa25   :  { %1030 = vrot.lane.b32.xlu0 %v4236_v28, %s4378_s21  ;;  %v1086_v60 = vsel %vm1062_vm13, %v4636_v38, %v1084_v54  ;;  %v1036_v38 = vmul.f32 %v4234_v40, %v4688_v48 }
 0xa26   :  { %v4238_v31 = vpop.eup %4237  ;;  %1088 = vst.msk [vmem:[#allocation3] sm:$0xff] %vm169_vm1, %v1086_v60 }
 0xa27   :  { %1028 = vrot.lane.b32.xlu1 %v4238_v31, %s4378_s21 }
 0xa29   :  { %1068 = vrot.lane.b32.xlu0 %v1053_v29, %s4375_s19 }
 0xa2b   :  { %1066 = vrot.lane.b32.xlu1 %v1052_v32, %s4375_s19 }
 0xa97   :  { %v1031_v33 = vpop.permute.xlu0 %1030 }
 0xa98   :  { %v1035_v36 = vmul.f32 %v1031_v33, %v1025_v30 }
 0xa99   :  { %v1029_v43 = vpop.permute.xlu1 %1028 }
 0xa9a   :  { %v1039_v35 = vadd.f32 %v1037_v34, %v1035_v36  ;;  %v1034_v39 = vmul.f32 %v1029_v43, %v1024_v37 }
 0xa9b   :  { %v1069_v44 = vpop.permute.xlu0 %1068 }
 0xa9c   :  { %v1038_v42 = vadd.f32 %v1036_v38, %v1034_v39  ;;  %1044 = vrot.lane.b32.xlu0 %v1039_v35, %s4378_s21  ;;  %v1073_v46 = vsel %vm1063_vm12, %v1039_v35, %v1069_v44 }
 0xa9d   :  { %v1067_v45 = vpop.permute.xlu1 %1066 }
 0xa9e   :  { %1042 = vrot.lane.b32.xlu1 %v1038_v42, %s4378_s21  ;;  %v1072_v47 = vsel %vm1062_vm13, %v1038_v42, %v1067_v45 }
 0xaa0   :  { %1078 = vrot.lane.b32.xlu0 %v1073_v46, %s4378_s21 }
 0xaa2   :  { %1076 = vrot.lane.b32.xlu1 %v1072_v47, %s4378_s21 }
 0xb0e   :  { %v1045_v50 = vpop.permute.xlu0 %1044 }
 0xb0f   :  { %1049 = vst.msk [vmem:[#allocation8 + $0x8] sm:$0xff] %vm169_vm1, %v1045_v50 }
 0xb10   :  { %v1043_v53 = vpop.permute.xlu1 %1042 }
 0xb11   :  { %1048 = vst.msk [vmem:[#allocation8] sm:$0xff] %vm169_vm1, %v1043_v53 }
 0xb12   :  { %v1079_v59 = vpop.permute.xlu0 %1078 }
 0xb13   :  { %1083 = vst.msk [vmem:[#allocation2 + $0x8] sm:$0xff] %vm169_vm1, %v1079_v59 }
 0xb14   :  { %v1077_v48 = vpop.permute.xlu1 %1076 }
 0xb15   :  { %1082 = vst.msk [vmem:[#allocation2] sm:$0xff] %vm169_vm1, %v1077_v48 }
 0xb16 PF:  { %p3494_p7 = scmp.le.s32.totalorder %s5304_s0, 2 }
 0xb17   :  { %s4379_s26 = smov (!%p3494_p7), 32   ;;  %s4381_s27 = smov (!%p3494_p7), 64  }
 0xb18   :  { %1093 = sbr.rel (%p3494_p7) target bundleno = 4050 (0xfd2), region = 37  ;;  %s4382_s28 = smov (!%p3494_p7), 96  }
 0xb1d   :  { %v4725_v40 = vld [vmem:[#allocation8 + $0x8] sm:$0xff]  ;;  %v4727_v49 = vld [vmem:[#allocation8] sm:$0xff]  ;;  %vm1096_vm14 = vcmask 130048   ;;  %3891 = vmatprep.subr.mxu1 %v4480_v11  ;;  %vm1188_vm15 = vcmask 523264   ;;  %v4380_v53 = vmov 0   ;;  %vm1426_vm0 = vcmp.eq.s32.totalorder %v4454_v1, 3 }
 0xb1e   :  { %3884 = vmatprep.subr.mxu0 %v4725_v40  ;;  %3888 = vmatprep.mubr.msk.f32.mxu0 %vm1096_vm14, %v4459_v2  ;;  %vm1425_vm2 = vcmp.eq.s32.totalorder %v4449_v0, 3 }
 0xb1f   :  { %3885 = vmatpush3.msra.mxu0 %v4725_v40  ;;  %3892 = vmatpush3.msra.mxu1 %v4480_v11 }
 0xb20   :  { %3886 = vmatprep.subr.mxu0 %v4727_v49  ;;  %3893 = vmatprep.subr.mxu1 %v4478_v10 }
 0xb21   :  { %3887 = vmatpush3.msra.mxu0 %v4727_v49  ;;  %3894 = vmatpush3.msra.mxu1 %v4478_v10 }
 0xb22   :  { %3889 = vmatmul.mubr.msk.f32.vlgmr.msra.gmra.mxu0 %vm1096_vm14, %v4464_v3  ;;  %3895 = vmatprep.subr.mxu1 %v4476_v9 }
 0xb23   :  { %3896 = vmatpush3.msra.mxu1 %v4476_v9  ;;  %3910 = vmatprep.subr.mxu0 %v4496_v19 }
 0xb24   :  { %3897 = vmatprep.subr.mxu1 %v4474_v8  ;;  %3911 = vmatpush3.msra.mxu0 %v4496_v19 }
 0xb25   :  { %3898 = vmatpush3.msra.mxu1 %v4474_v8  ;;  %3912 = vmatprep.subr.mxu0 %v4494_v18 }
 0xb26   :  { %3899 = vmatprep.subr.mxu1 %v4472_v7  ;;  %3913 = vmatpush3.msra.mxu0 %v4494_v18 }
 0xb27   :  { %3900 = vmatpush3.msra.mxu1 %v4472_v7  ;;  %3914 = vmatprep.subr.mxu0 %v4492_v17 }
 0xb28   :  { %3901 = vmatprep.subr.mxu1 %v4470_v6  ;;  %3915 = vmatpush3.msra.mxu0 %v4492_v17 }
 0xb29   :  { %3902 = vmatpush3.msra.mxu1 %v4470_v6  ;;  %3916 = vmatprep.subr.mxu0 %v4490_v16 }
 0xb2a   :  { %3903 = vmatprep.subr.mxu1 %v4468_v5  ;;  %3917 = vmatpush3.msra.mxu0 %v4490_v16 }
 0xb2b   :  { %3904 = vmatpush3.msra.mxu1 %v4468_v5  ;;  %3918 = vmatprep.subr.mxu0 %v4488_v15 }
 0xb2c   :  { %3905 = vmatprep.subr.mxu1 %v4466_v4  ;;  %3919 = vmatpush3.msra.mxu0 %v4488_v15 }
 0xb2d   :  { %3906 = vmatpush3.msra.mxu1 %v4466_v4  ;;  %3920 = vmatprep.subr.mxu0 %v4486_v14 }
 0xb2e   :  { %3921 = vmatpush3.msra.mxu0 %v4486_v14  ;;  %1276 = vrot.lane.b32.xlu1 %v4727_v49, %s4379_s26 }
 0xb2f   :  { %3922 = vmatprep.subr.mxu0 %v4484_v13  ;;  %4239 = vset.pattern.permute.xlu0 %v4380_v53 }
 0xb30   :  { %3923 = vmatpush3.msra.mxu0 %v4484_v13  ;;  %4240 = vset.pattern.permute.xlu1 %v4380_v53 }
 0xb31   :  { %3924 = vmatprep.subr.mxu0 %v4482_v12 }
 0xb32   :  { %3925 = vmatpush3.msra.mxu0 %v4482_v12  ;;  %1278 = vrot.lane.b32.xlu1 %v4725_v40, %s4379_s26 }
 0xba0   :  { %v4779_v28 = vpop.permute.xlu1 %1276 }
 0xba4   :  { %v4783_v34 = vpop.permute.xlu1 %1278 }
 0xbe2   :  { %v3890_v51 = vpop.f32.mrf.mxu0 }
 0xbe4   :  { %v1169_v63 = vpop.f32.mrf.mxu0 }
 0xbe5   :  { %1180 = vrot.lane.b32.xlu0 %v1169_v63, %s4379_s26 }
 0xbe9   :  { %1182 = vrot.lane.b32.xlu0 %v3890_v51, %s4379_s26 }
 0xc57   :  { %v1181_v52 = vpop.permute.xlu0 %1180 }
 0xc58   :  { %v1186_v54 = vsel %vm169_vm1, %v4727_v49, %v1181_v52 }
 0xc59   :  { %3907 = vmatprep.mubr.msk.f32.mxu1 %vm1188_vm15, %v1186_v54 }
 0xc5b   :  { %v1183_v55 = vpop.permute.xlu0 %1182 }
 0xc5c   :  { %v1187_v56 = vsel %vm169_vm1, %v4725_v40, %v1183_v55  ;;  %v1430_v55 = vsel %vm1426_vm0, 1, %v4380_v53 }
 0xc5d   :  { %3908 = vmatmul.mubr.msk.f32.vlgmr.msra.gmra.mxu1 %vm1188_vm15, %v1187_v56  ;;  %v1429_v56 = vsel %vm1425_vm2, 1, %v4380_v53 }
 0xd1d   :  { %v3909_v60 = vpop.f32.mrf.mxu1 }
 0xd1e   :  { %v1271_v31 = vadd.f32 %v3909_v60, %v4532_v57 }
 0xd1f   :  { %v1261_v29 = vpop.f32.mrf.mxu1 }
 0xd20   :  { %v1270_v32 = vadd.f32 %v1261_v29, %v4536_v61  ;;  %v1273_v30 = vmax.f32 %v1271_v31, 0.0 }
 0xd22   :  { %v1272_v33 = vmax.f32 %v1270_v32, 0.0  ;;  %v1283_v37 = vsel %vm169_vm1, %v1273_v30, %v4783_v34  ;;  %v1460_v30 = vld [vmem:[#allocation3 + $0x8] sm:$0xff] }
 0xd24   :  { %v1282_v36 = vsel %vm169_vm1, %v1272_v33, %v4779_v28 }
 0xd25   :  { %3926 = vmatprep.mubr.msk.f32.mxu0 %vm1188_vm15, %v1282_v36  ;;  %v1459_v36 = vld [vmem:[#allocation3] sm:$0xff] }
 0xd26   :  { %3927 = vmatmul.mubr.msk.f32.vlgmr.msra.gmra.mxu0 %vm1188_vm15, %v1283_v37 }
 0xde6   :  { %v3928_v43 = vpop.f32.mrf.mxu0 }
 0xde7   :  { %v1362_v35 = vadd.f32 %v3928_v43, %v4520_v41 }
 0xde8   :  { %v1356_v38 = vpop.f32.mrf.mxu0 }
 0xde9   :  { %v1357_v39 = vadd.f32 %v1356_v38, %v4520_v41  ;;  %1381 = vrot.lane.b32.xlu1 %v1362_v35, %s4379_s26  ;;  %v3502_v42 = vmul.f32 -1.442695, %v1362_v35 }
 0xdeb   :  { %1379 = vrot.lane.b32.xlu0 %v1357_v39, %s4379_s26  ;;  %v3501_v44 = vmul.f32 -1.442695, %v1357_v39  ;;  %4241 = vpow2.f32 %v3502_v42 }
 0xded   :  { %4243 = vpow2.f32 %v3501_v44  ;;  %v1427_v44 = vld [vmem:[#allocation2] sm:$0xff] }
 0xdf8   :  { %v4242_v45 = vpop.eup %4241 }
 0xdf9   :  { %v1372_v47 = vadd.f32 1.0, %v4242_v45 }
 0xdfa   :  { %v4244_v46 = vpop.eup %4243 }
 0xdfb   :  { %v1371_v50 = vadd.f32 1.0, %v4244_v46  ;;  %4245 = vrcp.f32 %v1372_v47 }
 0xdfd   :  { %4247 = vrcp.f32 %v1371_v50 }
 0xe08   :  { %v4246_v59 = vpop.eup %4245 }
 0xe09   :  { %v1412_v46 = vmul.f32 %v4246_v59, %v4783_v34 }
 0xe0a   :  { %v4248_v63 = vpop.eup %4247 }
 0xe0b   :  { %v1399_v50 = vsub.f32 1.0, %v4248_v63 }
 0xe5b   :  { %v1382_v48 = vpop.permute.xlu1 %1381 }
 0xe5c   :  { %v1386_v51 = vmul.f32 %v4246_v59, %v1382_v48 }
 0xe5d   :  { %v1380_v52 = vpop.permute.xlu0 %1379 }
 0xe5e   :  { %v1385_v54 = vmul.f32 %v4248_v63, %v1380_v52  ;;  %1391 = vrot.lane.b32.xlu1 %v1386_v51, %s4381_s27 }
 0xe60   :  { %1389 = vrot.lane.b32.xlu0 %v1385_v54, %s4381_s27 }
 0xe62   :  { %1435 = vperm.xlu1 %4240, %v1430_v55  }
 0xe64   :  { %1432 = vperm.xlu0 %4239, %v1429_v56  }
 0xed0   :  { %v1392_v60 = vpop.permute.xlu1 %1391 }
 0xed1   :  { %v1396_v31 = vadd.f32 %v1392_v60, %v1362_v35 }
 0xed2   :  { %v1390_v29 = vpop.permute.xlu0 %1389 }
 0xed3   :  { %4249 = vtanh.f32 %v1396_v31  ;;  %v1395_v32 = vadd.f32 %v1390_v29, %v1357_v39  ;;  %v1428_v39 = vld [vmem:[#allocation2 + $0x8] sm:$0xff] }
 0xed5   :  { %4251 = vtanh.f32 %v1395_v32 }
 0xedd   :  { %v1436_v33 = vpop.permute.xlu1 %1435 }
 0xede   :  { %vm1438_vm3 = vcmp.eq.s32.totalorder %v1436_v33, 1 }
 0xedf   :  { %v1433_v37 = vpop.permute.xlu0 %1432  ;;  %v1462_v43 = vsel %vm1438_vm3, %v4725_v40, %v1460_v30  ;;  %v1400_v40 = vsub.f32 1.0, %v4246_v59 }
 0xee0   :  { %v4250_v38 = vpop.eup %4249  ;;  %vm1437_vm4 = vcmp.eq.s32.totalorder %v1433_v37, 1  ;;  %1464 = vst.msk [vmem:[#allocation3 + $0x8] sm:$0xff] %vm169_vm1, %v1462_v43 }
 0xee1   :  { %1405 = vrot.lane.b32.xlu0 %v4250_v38, %s4382_s28  ;;  %v1461_v35 = vsel %vm1437_vm4, %v4727_v49, %v1459_v36  ;;  %v1411_v49 = vmul.f32 %v4248_v63, %v4779_v28 }
 0xee2   :  { %v4252_v42 = vpop.eup %4251  ;;  %1463 = vst.msk [vmem:[#allocation3] sm:$0xff] %vm169_vm1, %v1461_v35 }
 0xee3   :  { %1403 = vrot.lane.b32.xlu1 %v4252_v42, %s4382_s28 }
 0xee5   :  { %1443 = vrot.lane.b32.xlu0 %v1428_v39, %s4379_s26 }
 0xee7   :  { %1441 = vrot.lane.b32.xlu1 %v1427_v44, %s4379_s26 }
 0xf53   :  { %v1406_v45 = vpop.permute.xlu0 %1405 }
 0xf54   :  { %v1410_v47 = vmul.f32 %v1406_v45, %v1400_v40 }
 0xf55   :  { %v1404_v53 = vpop.permute.xlu1 %1403 }
 0xf56   :  { %v1414_v48 = vadd.f32 %v1412_v46, %v1410_v47  ;;  %v1409_v51 = vmul.f32 %v1404_v53, %v1399_v50 }
 0xf57   :  { %v1444_v54 = vpop.permute.xlu0 %1443 }
 0xf58   :  { %v1413_v52 = vadd.f32 %v1411_v49, %v1409_v51  ;;  %1419 = vrot.lane.b32.xlu0 %v1414_v48, %s4382_s28  ;;  %v1448_v56 = vsel %vm1438_vm3, %v1414_v48, %v1444_v54 }
 0xf59   :  { %v1442_v55 = vpop.permute.xlu1 %1441 }
 0xf5a   :  { %1417 = vrot.lane.b32.xlu1 %v1413_v52, %s4382_s28  ;;  %v1447_v60 = vsel %vm1437_vm4, %v1413_v52, %v1442_v55 }
 0xf5c   :  { %1453 = vrot.lane.b32.xlu0 %v1448_v56, %s4382_s28 }
 0xf5e   :  { %1451 = vrot.lane.b32.xlu1 %v1447_v60, %s4382_s28 }
 0xfca   :  { %v1420_v31 = vpop.permute.xlu0 %1419 }
 0xfcb   :  { %1424 = vst.msk [vmem:[#allocation8 + $0x8] sm:$0xff] %vm169_vm1, %v1420_v31 }
 0xfcc   :  { %v1418_v34 = vpop.permute.xlu1 %1417 }
 0xfcd   :  { %1423 = vst.msk [vmem:[#allocation8] sm:$0xff] %vm169_vm1, %v1418_v34 }
 0xfce   :  { %v1454_v59 = vpop.permute.xlu0 %1453 }
 0xfcf   :  { %1458 = vst.msk [vmem:[#allocation2 + $0x8] sm:$0xff] %vm169_vm1, %v1454_v59 }
 0xfd0   :  { %v1452_v28 = vpop.permute.xlu1 %1451 }
 0xfd1   :  { %1457 = vst.msk [vmem:[#allocation2] sm:$0xff] %vm169_vm1, %v1452_v28 }
 0xfd2 PF:  { %p3503_p8 = scmp.le.s32.totalorder %s5304_s0, 3 }
 0xfd3   :  { %s4383_s7 = smov (!%p3503_p8), 32   ;;  %s4385_s8 = smov (!%p3503_p8), 64  }
 0xfd4   :  { %1468 = sbr.rel (%p3503_p8) target bundleno = 5262 (0x148e), region = 41  ;;  %s4386_s9 = smov (!%p3503_p8), 96  }
 0xfd9   :  { %v4816_v63 = vld [vmem:[#allocation8 + $0x8] sm:$0xff]  ;;  %v4818_v29 = vld [vmem:[#allocation8] sm:$0xff]  ;;  %vm1471_vm5 = vcmask 130048   ;;  %3936 = vmatprep.subr.mxu1 %v4480_v11  ;;  %vm1563_vm6 = vcmask 523264   ;;  %v4384_v34 = vmov 0   ;;  %vm1801_vm7 = vcmp.eq.s32.totalorder %v4454_v1, 4 }
 0xfda   :  { %3929 = vmatprep.subr.mxu0 %v4816_v63  ;;  %3933 = vmatprep.mubr.msk.f32.mxu0 %vm1471_vm5, %v4459_v2  ;;  %vm1800_vm8 = vcmp.eq.s32.totalorder %v4449_v0, 4 }
 0xfdb   :  { %3930 = vmatpush3.msra.mxu0 %v4816_v63  ;;  %3937 = vmatpush3.msra.mxu1 %v4480_v11 }
 0xfdc   :  { %3931 = vmatprep.subr.mxu0 %v4818_v29  ;;  %3938 = vmatprep.subr.mxu1 %v4478_v10 }
 0xfdd   :  { %3932 = vmatpush3.msra.mxu0 %v4818_v29  ;;  %3939 = vmatpush3.msra.mxu1 %v4478_v10 }
 0xfde   :  { %3934 = vmatmul.mubr.msk.f32.vlgmr.msra.gmra.mxu0 %vm1471_vm5, %v4464_v3  ;;  %3940 = vmatprep.subr.mxu1 %v4476_v9 }
 0xfdf   :  { %3941 = vmatpush3.msra.mxu1 %v4476_v9  ;;  %3955 = vmatprep.subr.mxu0 %v4496_v19 }
 0xfe0   :  { %3942 = vmatprep.subr.mxu1 %v4474_v8  ;;  %3956 = vmatpush3.msra.mxu0 %v4496_v19 }
 0xfe1   :  { %3943 = vmatpush3.msra.mxu1 %v4474_v8  ;;  %3957 = vmatprep.subr.mxu0 %v4494_v18 }
 0xfe2   :  { %3944 = vmatprep.subr.mxu1 %v4472_v7  ;;  %3958 = vmatpush3.msra.mxu0 %v4494_v18 }
 0xfe3   :  { %3945 = vmatpush3.msra.mxu1 %v4472_v7  ;;  %3959 = vmatprep.subr.mxu0 %v4492_v17 }
 0xfe4   :  { %3946 = vmatprep.subr.mxu1 %v4470_v6  ;;  %3960 = vmatpush3.msra.mxu0 %v4492_v17 }
 0xfe5   :  { %3947 = vmatpush3.msra.mxu1 %v4470_v6  ;;  %3961 = vmatprep.subr.mxu0 %v4490_v16 }
 0xfe6   :  { %3948 = vmatprep.subr.mxu1 %v4468_v5  ;;  %3962 = vmatpush3.msra.mxu0 %v4490_v16 }
 0xfe7   :  { %3949 = vmatpush3.msra.mxu1 %v4468_v5  ;;  %3963 = vmatprep.subr.mxu0 %v4488_v15 }
 0xfe8   :  { %3950 = vmatprep.subr.mxu1 %v4466_v4  ;;  %3964 = vmatpush3.msra.mxu0 %v4488_v15 }
 0xfe9   :  { %3951 = vmatpush3.msra.mxu1 %v4466_v4  ;;  %3965 = vmatprep.subr.mxu0 %v4486_v14 }
 0xfea   :  { %3966 = vmatpush3.msra.mxu0 %v4486_v14  ;;  %1651 = vrot.lane.b32.xlu1 %v4818_v29, %s4383_s7 }
 0xfeb   :  { %3967 = vmatprep.subr.mxu0 %v4484_v13  ;;  %4253 = vset.pattern.permute.xlu0 %v4384_v34 }
 0xfec   :  { %3968 = vmatpush3.msra.mxu0 %v4484_v13  ;;  %4254 = vset.pattern.permute.xlu1 %v4384_v34 }
 0xfed   :  { %3969 = vmatprep.subr.mxu0 %v4482_v12 }
 0xfee   :  { %3970 = vmatpush3.msra.mxu0 %v4482_v12  ;;  %1653 = vrot.lane.b32.xlu1 %v4816_v63, %s4383_s7 }
0x105c   :  { %v4870_v38 = vpop.permute.xlu1 %1651 }
0x1060   :  { %v4874_v46 = vpop.permute.xlu1 %1653 }
0x109e   :  { %v3935_v32 = vpop.f32.mrf.mxu0 }
0x10a0   :  { %v1544_v30 = vpop.f32.mrf.mxu0 }
0x10a1   :  { %1555 = vrot.lane.b32.xlu0 %v1544_v30, %s4383_s7 }
0x10a5   :  { %1557 = vrot.lane.b32.xlu0 %v3935_v32, %s4383_s7 }
0x1113   :  { %v1556_v33 = vpop.permute.xlu0 %1555 }
0x1114   :  { %v1561_v36 = vsel %vm169_vm1, %v4818_v29, %v1556_v33 }
0x1115   :  { %3952 = vmatprep.mubr.msk.f32.mxu1 %vm1563_vm6, %v1561_v36 }
0x1117   :  { %v1558_v37 = vpop.permute.xlu0 %1557 }
0x1118   :  { %v1562_v43 = vsel %vm169_vm1, %v4816_v63, %v1558_v37  ;;  %v1805_v37 = vsel %vm1801_vm7, 1, %v4384_v34 }
0x1119   :  { %3953 = vmatmul.mubr.msk.f32.vlgmr.msra.gmra.mxu1 %vm1563_vm6, %v1562_v43  ;;  %v1804_v43 = vsel %vm1800_vm8, 1, %v4384_v34 }
0x11d9   :  { %v3954_v35 = vpop.f32.mrf.mxu1 }
0x11da   :  { %v1646_v42 = vadd.f32 %v3954_v35, %v4532_v57 }
0x11db   :  { %v1636_v39 = vpop.f32.mrf.mxu1 }
0x11dc   :  { %v1645_v44 = vadd.f32 %v1636_v39, %v4536_v61  ;;  %v1648_v40 = vmax.f32 %v1646_v42, 0.0 }
0x11de   :  { %v1647_v45 = vmax.f32 %v1645_v44, 0.0  ;;  %v1658_v50 = vsel %vm169_vm1, %v1648_v40, %v4874_v46  ;;  %v1835_v40 = vld [vmem:[#allocation3 + $0x8] sm:$0xff] }
0x11e0   :  { %v1657_v47 = vsel %vm169_vm1, %v1647_v45, %v4870_v38 }
0x11e1   :  { %3971 = vmatprep.mubr.msk.f32.mxu0 %vm1563_vm6, %v1657_v47  ;;  %v1834_v47 = vld [vmem:[#allocation3] sm:$0xff] }
0x11e2   :  { %3972 = vmatmul.mubr.msk.f32.vlgmr.msra.gmra.mxu0 %vm1563_vm6, %v1658_v50 }
0x12a2   :  { %v3973_v53 = vpop.f32.mrf.mxu0 }
0x12a3   :  { %v1737_v48 = vadd.f32 %v3973_v53, %v4520_v41 }
0x12a4   :  { %v1731_v49 = vpop.f32.mrf.mxu0 }
0x12a5   :  { %v1732_v51 = vadd.f32 %v1731_v49, %v4520_v41  ;;  %1756 = vrot.lane.b32.xlu1 %v1737_v48, %s4383_s7  ;;  %v3511_v52 = vmul.f32 -1.442695, %v1737_v48 }
0x12a7   :  { %1754 = vrot.lane.b32.xlu0 %v1732_v51, %s4383_s7  ;;  %v3510_v54 = vmul.f32 -1.442695, %v1732_v51  ;;  %4255 = vpow2.f32 %v3511_v52 }
0x12a9   :  { %4257 = vpow2.f32 %v3510_v54  ;;  %v1802_v54 = vld [vmem:[#allocation2] sm:$0xff] }
0x12b4   :  { %v4256_v55 = vpop.eup %4255 }
0x12b5   :  { %v1747_v60 = vadd.f32 1.0, %v4256_v55 }
0x12b6   :  { %v4258_v56 = vpop.eup %4257 }
0x12b7   :  { %v1746_v31 = vadd.f32 1.0, %v4258_v56  ;;  %4259 = vrcp.f32 %v1747_v60 }
0x12b9   :  { %4261 = vrcp.f32 %v1746_v31 }
0x12c4   :  { %v4260_v59 = vpop.eup %4259 }
0x12c5   :  { %v1787_v56 = vmul.f32 %v4260_v59, %v4874_v46 }
0x12c6   :  { %v4262_v30 = vpop.eup %4261 }
0x12c7   :  { %v1774_v31 = vsub.f32 1.0, %v4262_v30 }
0x1317   :  { %v1757_v28 = vpop.permute.xlu1 %1756 }
0x1318   :  { %v1761_v32 = vmul.f32 %v4260_v59, %v1757_v28 }
0x1319   :  { %v1755_v33 = vpop.permute.xlu0 %1754 }
0x131a   :  { %v1760_v36 = vmul.f32 %v4262_v30, %v1755_v33  ;;  %1766 = vrot.lane.b32.xlu1 %v1761_v32, %s4385_s8 }
0x131c   :  { %1764 = vrot.lane.b32.xlu0 %v1760_v36, %s4385_s8 }
0x131e   :  { %1810 = vperm.xlu1 %4254, %v1805_v37  }
0x1320   :  { %1807 = vperm.xlu0 %4253, %v1804_v43  }
0x138c   :  { %v1767_v35 = vpop.permute.xlu1 %1766 }
0x138d   :  { %v1771_v42 = vadd.f32 %v1767_v35, %v1737_v48 }
0x138e   :  { %v1765_v39 = vpop.permute.xlu0 %1764 }
0x138f   :  { %4263 = vtanh.f32 %v1771_v42  ;;  %v1770_v44 = vadd.f32 %v1765_v39, %v1732_v51  ;;  %v1803_v51 = vld [vmem:[#allocation2 + $0x8] sm:$0xff] }
0x1391   :  { %4265 = vtanh.f32 %v1770_v44 }
0x1399   :  { %v1811_v45 = vpop.permute.xlu1 %1810 }
0x139a   :  { %vm1813_vm9 = vcmp.eq.s32.totalorder %v1811_v45, 1 }
0x139b   :  { %v1808_v50 = vpop.permute.xlu0 %1807  ;;  %v1837_v53 = vsel %vm1813_vm9, %v4816_v63, %v1835_v40  ;;  %v1775_v63 = vsub.f32 1.0, %v4260_v59 }
0x139c   :  { %v4264_v49 = vpop.eup %4263  ;;  %vm1812_vm10 = vcmp.eq.s32.totalorder %v1808_v50, 1  ;;  %1839 = vst.msk [vmem:[#allocation3 + $0x8] sm:$0xff] %vm169_vm1, %v1837_v53 }
0x139d   :  { %1780 = vrot.lane.b32.xlu0 %v4264_v49, %s4386_s9  ;;  %v1836_v48 = vsel %vm1812_vm10, %v4818_v29, %v1834_v47  ;;  %v1786_v29 = vmul.f32 %v4262_v30, %v4870_v38 }
0x139e   :  { %v4266_v52 = vpop.eup %4265  ;;  %1838 = vst.msk [vmem:[#allocation3] sm:$0xff] %vm169_vm1, %v1836_v48 }
0x139f   :  { %1778 = vrot.lane.b32.xlu1 %v4266_v52, %s4386_s9 }
0x13a1   :  { %1818 = vrot.lane.b32.xlu0 %v1803_v51, %s4383_s7 }
0x13a3   :  { %1816 = vrot.lane.b32.xlu1 %v1802_v54, %s4383_s7 }
0x140f   :  { %v1781_v55 = vpop.permute.xlu0 %1780 }
0x1410   :  { %v1785_v60 = vmul.f32 %v1781_v55, %v1775_v63 }
0x1411   :  { %v1779_v34 = vpop.permute.xlu1 %1778 }
0x1412   :  { %v1789_v28 = vadd.f32 %v1787_v56, %v1785_v60  ;;  %v1784_v32 = vmul.f32 %v1779_v34, %v1774_v31 }
0x1413   :  { %v1819_v36 = vpop.permute.xlu0 %1818 }
0x1414   :  { %v1788_v33 = vadd.f32 %v1786_v29, %v1784_v32  ;;  %1794 = vrot.lane.b32.xlu0 %v1789_v28, %s4386_s9  ;;  %v1823_v43 = vsel %vm1813_vm9, %v1789_v28, %v1819_v36 }
0x1415   :  { %v1817_v37 = vpop.permute.xlu1 %1816 }
0x1416   :  { %1792 = vrot.lane.b32.xlu1 %v1788_v33, %s4386_s9  ;;  %v1822_v35 = vsel %vm1812_vm10, %v1788_v33, %v1817_v37 }
0x1418   :  { %1828 = vrot.lane.b32.xlu0 %v1823_v43, %s4386_s9 }
0x141a   :  { %1826 = vrot.lane.b32.xlu1 %v1822_v35, %s4386_s9 }
0x1486   :  { %v1795_v42 = vpop.permute.xlu0 %1794 }
0x1487   :  { %1799 = vst.msk [vmem:[#allocation8 + $0x8] sm:$0xff] %vm169_vm1, %v1795_v42 }
0x1488   :  { %v1793_v46 = vpop.permute.xlu1 %1792 }
0x1489   :  { %1798 = vst.msk [vmem:[#allocation8] sm:$0xff] %vm169_vm1, %v1793_v46 }
0x148a   :  { %v1829_v59 = vpop.permute.xlu0 %1828 }
0x148b   :  { %1833 = vst.msk [vmem:[#allocation2 + $0x8] sm:$0xff] %vm169_vm1, %v1829_v59 }
0x148c   :  { %v1827_v38 = vpop.permute.xlu1 %1826 }
0x148d   :  { %1832 = vst.msk [vmem:[#allocation2] sm:$0xff] %vm169_vm1, %v1827_v38 }
0x148e PF:  { %p3512_p9 = scmp.le.s32.totalorder %s5304_s0, 4 }
0x148f   :  { %s4387_s1 = smov (!%p3512_p9), 32   ;;  %s4389_s3 = smov (!%p3512_p9), 64  }
0x1490   :  { %1843 = sbr.rel (%p3512_p9) target bundleno = 6474 (0x194a), region = 45  ;;  %s4390_s4 = smov (!%p3512_p9), 96  }
0x1495   :  { %v4907_v30 = vld [vmem:[#allocation8 + $0x8] sm:$0xff]  ;;  %v4909_v39 = vld [vmem:[#allocation8] sm:$0xff]  ;;  %vm1846_vm11 = vcmask 130048   ;;  %3981 = vmatprep.subr.mxu1 %v4480_v11  ;;  %vm1938_vm12 = vcmask 523264   ;;  %v4388_v46 = vmov 0   ;;  %vm2176_vm13 = vcmp.eq.s32.totalorder %v4454_v1, 5 }
0x1496   :  { %3974 = vmatprep.subr.mxu0 %v4907_v30  ;;  %3978 = vmatprep.mubr.msk.f32.mxu0 %vm1846_vm11, %v4459_v2  ;;  %vm2175_vm14 = vcmp.eq.s32.totalorder %v4449_v0, 5 }
0x1497   :  { %3975 = vmatpush3.msra.mxu0 %v4907_v30  ;;  %3982 = vmatpush3.msra.mxu1 %v4480_v11 }
0x1498   :  { %3976 = vmatprep.subr.mxu0 %v4909_v39  ;;  %3983 = vmatprep.subr.mxu1 %v4478_v10 }
0x1499   :  { %3977 = vmatpush3.msra.mxu0 %v4909_v39  ;;  %3984 = vmatpush3.msra.mxu1 %v4478_v10 }
0x149a   :  { %3979 = vmatmul.mubr.msk.f32.vlgmr.msra.gmra.mxu0 %vm1846_vm11, %v4464_v3  ;;  %3985 = vmatprep.subr.mxu1 %v4476_v9 }
0x149b   :  { %3986 = vmatpush3.msra.mxu1 %v4476_v9  ;;  %4000 = vmatprep.subr.mxu0 %v4496_v19 }
0x149c   :  { %3987 = vmatprep.subr.mxu1 %v4474_v8  ;;  %4001 = vmatpush3.msra.mxu0 %v4496_v19 }
0x149d   :  { %3988 = vmatpush3.msra.mxu1 %v4474_v8  ;;  %4002 = vmatprep.subr.mxu0 %v4494_v18 }
0x149e   :  { %3989 = vmatprep.subr.mxu1 %v4472_v7  ;;  %4003 = vmatpush3.msra.mxu0 %v4494_v18 }
0x149f   :  { %3990 = vmatpush3.msra.mxu1 %v4472_v7  ;;  %4004 = vmatprep.subr.mxu0 %v4492_v17 }
0x14a0   :  { %3991 = vmatprep.subr.mxu1 %v4470_v6  ;;  %4005 = vmatpush3.msra.mxu0 %v4492_v17 }
0x14a1   :  { %3992 = vmatpush3.msra.mxu1 %v4470_v6  ;;  %4006 = vmatprep.subr.mxu0 %v4490_v16 }
0x14a2   :  { %3993 = vmatprep.subr.mxu1 %v4468_v5  ;;  %4007 = vmatpush3.msra.mxu0 %v4490_v16 }
0x14a3   :  { %3994 = vmatpush3.msra.mxu1 %v4468_v5  ;;  %4008 = vmatprep.subr.mxu0 %v4488_v15 }
0x14a4   :  { %3995 = vmatprep.subr.mxu1 %v4466_v4  ;;  %4009 = vmatpush3.msra.mxu0 %v4488_v15 }
0x14a5   :  { %3996 = vmatpush3.msra.mxu1 %v4466_v4  ;;  %4010 = vmatprep.subr.mxu0 %v4486_v14 }
0x14a6   :  { %4011 = vmatpush3.msra.mxu0 %v4486_v14  ;;  %2026 = vrot.lane.b32.xlu1 %v4909_v39, %s4387_s1 }
0x14a7   :  { %4012 = vmatprep.subr.mxu0 %v4484_v13  ;;  %4267 = vset.pattern.permute.xlu0 %v4388_v46 }
0x14a8   :  { %4013 = vmatpush3.msra.mxu0 %v4484_v13  ;;  %4268 = vset.pattern.permute.xlu1 %v4388_v46 }
0x14a9   :  { %4014 = vmatprep.subr.mxu0 %v4482_v12 }
0x14aa   :  { %4015 = vmatpush3.msra.mxu0 %v4482_v12  ;;  %2028 = vrot.lane.b32.xlu1 %v4907_v30, %s4387_s1 }
0x1518   :  { %v4961_v49 = vpop.permute.xlu1 %2026 }
0x151c   :  { %v4965_v56 = vpop.permute.xlu1 %2028 }
0x155a   :  { %v3980_v44 = vpop.f32.mrf.mxu0 }
0x155c   :  { %v1919_v40 = vpop.f32.mrf.mxu0 }
0x155d   :  { %1930 = vrot.lane.b32.xlu0 %v1919_v40, %s4387_s1 }
0x1561   :  { %1932 = vrot.lane.b32.xlu0 %v3980_v44, %s4387_s1 }
0x15cf   :  { %v1931_v45 = vpop.permute.xlu0 %1930 }
0x15d0   :  { %v1936_v47 = vsel %vm169_vm1, %v4909_v39, %v1931_v45 }
0x15d1   :  { %3997 = vmatprep.mubr.msk.f32.mxu1 %vm1938_vm12, %v1936_v47 }
0x15d3   :  { %v1933_v50 = vpop.permute.xlu0 %1932 }
0x15d4   :  { %v1937_v53 = vsel %vm169_vm1, %v4907_v30, %v1933_v50  ;;  %v2180_v50 = vsel %vm2176_vm13, 1, %v4388_v46 }
0x15d5   :  { %3998 = vmatmul.mubr.msk.f32.vlgmr.msra.gmra.mxu1 %vm1938_vm12, %v1937_v53  ;;  %v2179_v53 = vsel %vm2175_vm14, 1, %v4388_v46 }
0x1695   :  { %v3999_v48 = vpop.f32.mrf.mxu1 }
0x1696   :  { %v2021_v52 = vadd.f32 %v3999_v48, %v4532_v57 }
0x1697   :  { %v2011_v51 = vpop.f32.mrf.mxu1 }
0x1698   :  { %v2020_v54 = vadd.f32 %v2011_v51, %v4536_v61  ;;  %v2023_v63 = vmax.f32 %v2021_v52, 0.0 }
0x169a   :  { %v2022_v55 = vmax.f32 %v2020_v54, 0.0  ;;  %v2033_v31 = vsel %vm169_vm1, %v2023_v63, %v4965_v56  ;;  %v2210_v63 = vld [vmem:[#allocation3 + $0x8] sm:$0xff] }
0x169c   :  { %v2032_v60 = vsel %vm169_vm1, %v2022_v55, %v4961_v49 }
0x169d   :  { %4016 = vmatprep.mubr.msk.f32.mxu0 %vm1938_vm12, %v2032_v60  ;;  %v2209_v60 = vld [vmem:[#allocation3] sm:$0xff] }
0x169e   :  { %4017 = vmatmul.mubr.msk.f32.vlgmr.msra.gmra.mxu0 %vm1938_vm12, %v2033_v31 }
0x175e   :  { %v4018_v34 = vpop.f32.mrf.mxu0 }
0x175f   :  { %v2112_v28 = vadd.f32 %v4018_v34, %v4520_v41 }
0x1760   :  { %v2106_v29 = vpop.f32.mrf.mxu0 }
0x1761   :  { %v2107_v32 = vadd.f32 %v2106_v29, %v4520_v41  ;;  %2131 = vrot.lane.b32.xlu1 %v2112_v28, %s4387_s1  ;;  %v3520_v33 = vmul.f32 -1.442695, %v2112_v28 }
0x1763   :  { %2129 = vrot.lane.b32.xlu0 %v2107_v32, %s4387_s1  ;;  %v3519_v36 = vmul.f32 -1.442695, %v2107_v32  ;;  %4269 = vpow2.f32 %v3520_v33 }
0x1765   :  { %4271 = vpow2.f32 %v3519_v36  ;;  %v2177_v36 = vld [vmem:[#allocation2] sm:$0xff] }
0x1770   :  { %v4270_v37 = vpop.eup %4269 }
0x1771   :  { %v2122_v35 = vadd.f32 1.0, %v4270_v37 }
0x1772   :  { %v4272_v43 = vpop.eup %4271 }
0x1773   :  { %v2121_v42 = vadd.f32 1.0, %v4272_v43  ;;  %4273 = vrcp.f32 %v2122_v35 }
0x1775   :  { %4275 = vrcp.f32 %v2121_v42 }
0x1780   :  { %v4274_v59 = vpop.eup %4273 }
0x1781   :  { %v2162_v43 = vmul.f32 %v4274_v59, %v4965_v56 }
0x1782   :  { %v4276_v40 = vpop.eup %4275 }
0x1783   :  { %v2149_v42 = vsub.f32 1.0, %v4276_v40 }
0x17d3   :  { %v2132_v38 = vpop.permute.xlu1 %2131 }
0x17d4   :  { %v2136_v44 = vmul.f32 %v4274_v59, %v2132_v38 }
0x17d5   :  { %v2130_v45 = vpop.permute.xlu0 %2129 }
0x17d6   :  { %v2135_v47 = vmul.f32 %v4276_v40, %v2130_v45  ;;  %2141 = vrot.lane.b32.xlu1 %v2136_v44, %s4389_s3 }
0x17d8   :  { %2139 = vrot.lane.b32.xlu0 %v2135_v47, %s4389_s3 }
0x17da   :  { %2185 = vperm.xlu1 %4268, %v2180_v50  }
0x17dc   :  { %2182 = vperm.xlu0 %4267, %v2179_v53  }
0x1848   :  { %v2142_v48 = vpop.permute.xlu1 %2141 }
0x1849   :  { %v2146_v52 = vadd.f32 %v2142_v48, %v2112_v28 }
0x184a   :  { %v2140_v51 = vpop.permute.xlu0 %2139 }
0x184b   :  { %4277 = vtanh.f32 %v2146_v52  ;;  %v2145_v54 = vadd.f32 %v2140_v51, %v2107_v32  ;;  %v2178_v32 = vld [vmem:[#allocation2 + $0x8] sm:$0xff] }
0x184d   :  { %4279 = vtanh.f32 %v2145_v54 }
0x1855   :  { %v2186_v55 = vpop.permute.xlu1 %2185 }
0x1856   :  { %vm2188_vm15 = vcmp.eq.s32.totalorder %v2186_v55, 1 }
0x1857   :  { %v2183_v31 = vpop.permute.xlu0 %2182  ;;  %v2212_v34 = vsel %vm2188_vm15, %v4907_v30, %v2210_v63  ;;  %v2150_v30 = vsub.f32 1.0, %v4274_v59 }
0x1858   :  { %v4278_v29 = vpop.eup %4277  ;;  %vm2187_vm0 = vcmp.eq.s32.totalorder %v2183_v31, 1  ;;  %2214 = vst.msk [vmem:[#allocation3 + $0x8] sm:$0xff] %vm169_vm1, %v2212_v34 }
0x1859   :  { %2155 = vrot.lane.b32.xlu0 %v4278_v29, %s4390_s4  ;;  %v2211_v28 = vsel %vm2187_vm0, %v4909_v39, %v2209_v60  ;;  %v2161_v39 = vmul.f32 %v4276_v40, %v4961_v49 }
0x185a   :  { %v4280_v33 = vpop.eup %4279  ;;  %2213 = vst.msk [vmem:[#allocation3] sm:$0xff] %vm169_vm1, %v2211_v28 }
0x185b   :  { %2153 = vrot.lane.b32.xlu1 %v4280_v33, %s4390_s4 }
0x185d   :  { %2193 = vrot.lane.b32.xlu0 %v2178_v32, %s4387_s1 }
0x185f   :  { %2191 = vrot.lane.b32.xlu1 %v2177_v36, %s4387_s1 }
0x18cb   :  { %v2156_v37 = vpop.permute.xlu0 %2155 }
0x18cc   :  { %v2160_v35 = vmul.f32 %v2156_v37, %v2150_v30 }
0x18cd   :  { %v2154_v46 = vpop.permute.xlu1 %2153 }
0x18ce   :  { %v2164_v38 = vadd.f32 %v2162_v43, %v2160_v35  ;;  %v2159_v44 = vmul.f32 %v2154_v46, %v2149_v42 }
0x18cf   :  { %v2194_v47 = vpop.permute.xlu0 %2193 }
0x18d0   :  { %v2163_v45 = vadd.f32 %v2161_v39, %v2159_v44  ;;  %2169 = vrot.lane.b32.xlu0 %v2164_v38, %s4390_s4  ;;  %v2198_v53 = vsel %vm2188_vm15, %v2164_v38, %v2194_v47 }
0x18d1   :  { %v2192_v50 = vpop.permute.xlu1 %2191 }
0x18d2   :  { %2167 = vrot.lane.b32.xlu1 %v2163_v45, %s4390_s4  ;;  %v2197_v48 = vsel %vm2187_vm0, %v2163_v45, %v2192_v50 }
0x18d4   :  { %2203 = vrot.lane.b32.xlu0 %v2198_v53, %s4390_s4 }
0x18d6   :  { %2201 = vrot.lane.b32.xlu1 %v2197_v48, %s4390_s4 }
0x1942   :  { %v2170_v52 = vpop.permute.xlu0 %2169 }
0x1943   :  { %2174 = vst.msk [vmem:[#allocation8 + $0x8] sm:$0xff] %vm169_vm1, %v2170_v52 }
0x1944   :  { %v2168_v56 = vpop.permute.xlu1 %2167 }
0x1945   :  { %2173 = vst.msk [vmem:[#allocation8] sm:$0xff] %vm169_vm1, %v2168_v56 }
0x1946   :  { %v2204_v59 = vpop.permute.xlu0 %2203 }
0x1947   :  { %2208 = vst.msk [vmem:[#allocation2 + $0x8] sm:$0xff] %vm169_vm1, %v2204_v59 }
0x1948   :  { %v2202_v49 = vpop.permute.xlu1 %2201 }
0x1949   :  { %2207 = vst.msk [vmem:[#allocation2] sm:$0xff] %vm169_vm1, %v2202_v49 }
0x194a PF:  { %p3521_p10 = scmp.le.s32.totalorder %s5304_s0, 5 }
0x194b   :  { %s4391_s13 = smov (!%p3521_p10), 32   ;;  %s4393_s14 = smov (!%p3521_p10), 64  }
0x194c   :  { %2218 = sbr.rel (%p3521_p10) target bundleno = 7686 (0x1e06), region = 49  ;;  %s4394_s15 = smov (!%p3521_p10), 96  }
0x1951   :  { %v4998_v40 = vld [vmem:[#allocation8 + $0x8] sm:$0xff]  ;;  %v5000_v51 = vld [vmem:[#allocation8] sm:$0xff]  ;;  %vm2221_vm2 = vcmask 130048   ;;  %4026 = vmatprep.subr.mxu1 %v4480_v11  ;;  %vm2313_vm3 = vcmask 523264   ;;  %v4392_v56 = vmov 0   ;;  %vm2551_vm4 = vcmp.eq.s32.totalorder %v4454_v1, 6 }
0x1952   :  { %4019 = vmatprep.subr.mxu0 %v4998_v40  ;;  %4023 = vmatprep.mubr.msk.f32.mxu0 %vm2221_vm2, %v4459_v2  ;;  %vm2550_vm5 = vcmp.eq.s32.totalorder %v4449_v0, 6 }
0x1953   :  { %4020 = vmatpush3.msra.mxu0 %v4998_v40  ;;  %4027 = vmatpush3.msra.mxu1 %v4480_v11 }
0x1954   :  { %4021 = vmatprep.subr.mxu0 %v5000_v51  ;;  %4028 = vmatprep.subr.mxu1 %v4478_v10 }
0x1955   :  { %4022 = vmatpush3.msra.mxu0 %v5000_v51  ;;  %4029 = vmatpush3.msra.mxu1 %v4478_v10 }
0x1956   :  { %4024 = vmatmul.mubr.msk.f32.vlgmr.msra.gmra.mxu0 %vm2221_vm2, %v4464_v3  ;;  %4030 = vmatprep.subr.mxu1 %v4476_v9 }
0x1957   :  { %4031 = vmatpush3.msra.mxu1 %v4476_v9  ;;  %4045 = vmatprep.subr.mxu0 %v4496_v19 }
0x1958   :  { %4032 = vmatprep.subr.mxu1 %v4474_v8  ;;  %4046 = vmatpush3.msra.mxu0 %v4496_v19 }
0x1959   :  { %4033 = vmatpush3.msra.mxu1 %v4474_v8  ;;  %4047 = vmatprep.subr.mxu0 %v4494_v18 }
0x195a   :  { %4034 = vmatprep.subr.mxu1 %v4472_v7  ;;  %4048 = vmatpush3.msra.mxu0 %v4494_v18 }
0x195b   :  { %4035 = vmatpush3.msra.mxu1 %v4472_v7  ;;  %4049 = vmatprep.subr.mxu0 %v4492_v17 }
0x195c   :  { %4036 = vmatprep.subr.mxu1 %v4470_v6  ;;  %4050 = vmatpush3.msra.mxu0 %v4492_v17 }
0x195d   :  { %4037 = vmatpush3.msra.mxu1 %v4470_v6  ;;  %4051 = vmatprep.subr.mxu0 %v4490_v16 }
0x195e   :  { %4038 = vmatprep.subr.mxu1 %v4468_v5  ;;  %4052 = vmatpush3.msra.mxu0 %v4490_v16 }
0x195f   :  { %4039 = vmatpush3.msra.mxu1 %v4468_v5  ;;  %4053 = vmatprep.subr.mxu0 %v4488_v15 }
0x1960   :  { %4040 = vmatprep.subr.mxu1 %v4466_v4  ;;  %4054 = vmatpush3.msra.mxu0 %v4488_v15 }
0x1961   :  { %4041 = vmatpush3.msra.mxu1 %v4466_v4  ;;  %4055 = vmatprep.subr.mxu0 %v4486_v14 }
0x1962   :  { %4056 = vmatpush3.msra.mxu0 %v4486_v14  ;;  %2401 = vrot.lane.b32.xlu1 %v5000_v51, %s4391_s13 }
0x1963   :  { %4057 = vmatprep.subr.mxu0 %v4484_v13  ;;  %4281 = vset.pattern.permute.xlu0 %v4392_v56 }
0x1964   :  { %4058 = vmatpush3.msra.mxu0 %v4484_v13  ;;  %4282 = vset.pattern.permute.xlu1 %v4392_v56 }
0x1965   :  { %4059 = vmatprep.subr.mxu0 %v4482_v12 }
0x1966   :  { %4060 = vmatpush3.msra.mxu0 %v4482_v12  ;;  %2403 = vrot.lane.b32.xlu1 %v4998_v40, %s4391_s13 }
0x19d4   :  { %v5052_v29 = vpop.permute.xlu1 %2401 }
0x19d8   :  { %v5056_v43 = vpop.permute.xlu1 %2403 }
0x1a16   :  { %v4025_v54 = vpop.f32.mrf.mxu0 }
0x1a18   :  { %v2294_v63 = vpop.f32.mrf.mxu0 }
0x1a19   :  { %2305 = vrot.lane.b32.xlu0 %v2294_v63, %s4391_s13 }
0x1a1d   :  { %2307 = vrot.lane.b32.xlu0 %v4025_v54, %s4391_s13 }
0x1a8b   :  { %v2306_v55 = vpop.permute.xlu0 %2305 }
0x1a8c   :  { %v2311_v60 = vsel %vm169_vm1, %v5000_v51, %v2306_v55 }
0x1a8d   :  { %4042 = vmatprep.mubr.msk.f32.mxu1 %vm2313_vm3, %v2311_v60 }
0x1a8f   :  { %v2308_v31 = vpop.permute.xlu0 %2307 }
0x1a90   :  { %v2312_v34 = vsel %vm169_vm1, %v4998_v40, %v2308_v31  ;;  %v2555_v31 = vsel %vm2551_vm4, 1, %v4392_v56 }
0x1a91   :  { %4043 = vmatmul.mubr.msk.f32.vlgmr.msra.gmra.mxu1 %vm2313_vm3, %v2312_v34  ;;  %v2554_v34 = vsel %vm2550_vm5, 1, %v4392_v56 }
0x1b51   :  { %v4044_v28 = vpop.f32.mrf.mxu1 }
0x1b52   :  { %v2396_v33 = vadd.f32 %v4044_v28, %v4532_v57 }
0x1b53   :  { %v2386_v32 = vpop.f32.mrf.mxu1 }
0x1b54   :  { %v2395_v36 = vadd.f32 %v2386_v32, %v4536_v61  ;;  %v2398_v30 = vmax.f32 %v2396_v33, 0.0 }
0x1b56   :  { %v2397_v37 = vmax.f32 %v2395_v36, 0.0  ;;  %v2408_v42 = vsel %vm169_vm1, %v2398_v30, %v5056_v43  ;;  %v2585_v30 = vld [vmem:[#allocation3 + $0x8] sm:$0xff] }
0x1b58   :  { %v2407_v35 = vsel %vm169_vm1, %v2397_v37, %v5052_v29 }
0x1b59   :  { %4061 = vmatprep.mubr.msk.f32.mxu0 %vm2313_vm3, %v2407_v35  ;;  %v2584_v35 = vld [vmem:[#allocation3] sm:$0xff] }
0x1b5a   :  { %4062 = vmatmul.mubr.msk.f32.vlgmr.msra.gmra.mxu0 %vm2313_vm3, %v2408_v42 }
0x1c1a   :  { %v4063_v46 = vpop.f32.mrf.mxu0 }
0x1c1b   :  { %v2487_v38 = vadd.f32 %v4063_v46, %v4520_v41 }
0x1c1c   :  { %v2481_v39 = vpop.f32.mrf.mxu0 }
0x1c1d   :  { %v2482_v44 = vadd.f32 %v2481_v39, %v4520_v41  ;;  %2506 = vrot.lane.b32.xlu1 %v2487_v38, %s4391_s13  ;;  %v3529_v45 = vmul.f32 -1.442695, %v2487_v38 }
0x1c1f   :  { %2504 = vrot.lane.b32.xlu0 %v2482_v44, %s4391_s13  ;;  %v3528_v47 = vmul.f32 -1.442695, %v2482_v44  ;;  %4283 = vpow2.f32 %v3529_v45 }
0x1c21   :  { %4285 = vpow2.f32 %v3528_v47  ;;  %v2552_v47 = vld [vmem:[#allocation2] sm:$0xff] }
0x1c2c   :  { %v4284_v50 = vpop.eup %4283 }
0x1c2d   :  { %v2497_v48 = vadd.f32 1.0, %v4284_v50 }
0x1c2e   :  { %v4286_v53 = vpop.eup %4285 }
0x1c2f   :  { %v2496_v52 = vadd.f32 1.0, %v4286_v53  ;;  %4287 = vrcp.f32 %v2497_v48 }
0x1c31   :  { %4289 = vrcp.f32 %v2496_v52 }
0x1c3c   :  { %v4288_v59 = vpop.eup %4287 }
0x1c3d   :  { %v2537_v53 = vmul.f32 %v4288_v59, %v5056_v43 }
0x1c3e   :  { %v4290_v63 = vpop.eup %4289 }
0x1c3f   :  { %v2524_v52 = vsub.f32 1.0, %v4290_v63 }
0x1c8f   :  { %v2507_v49 = vpop.permute.xlu1 %2506 }
0x1c90   :  { %v2511_v54 = vmul.f32 %v4288_v59, %v2507_v49 }
0x1c91   :  { %v2505_v55 = vpop.permute.xlu0 %2504 }
0x1c92   :  { %v2510_v60 = vmul.f32 %v4290_v63, %v2505_v55  ;;  %2516 = vrot.lane.b32.xlu1 %v2511_v54, %s4393_s14 }
0x1c94   :  { %2514 = vrot.lane.b32.xlu0 %v2510_v60, %s4393_s14 }
0x1c96   :  { %2560 = vperm.xlu1 %4282, %v2555_v31  }
0x1c98   :  { %2557 = vperm.xlu0 %4281, %v2554_v34  }
0x1d04   :  { %v2517_v28 = vpop.permute.xlu1 %2516 }
0x1d05   :  { %v2521_v33 = vadd.f32 %v2517_v28, %v2487_v38 }
0x1d06   :  { %v2515_v32 = vpop.permute.xlu0 %2514 }
0x1d07   :  { %4291 = vtanh.f32 %v2521_v33  ;;  %v2520_v36 = vadd.f32 %v2515_v32, %v2482_v44  ;;  %v2553_v44 = vld [vmem:[#allocation2 + $0x8] sm:$0xff] }
0x1d09   :  { %4293 = vtanh.f32 %v2520_v36 }
0x1d11   :  { %v2561_v37 = vpop.permute.xlu1 %2560 }
0x1d12   :  { %vm2563_vm6 = vcmp.eq.s32.totalorder %v2561_v37, 1 }
0x1d13   :  { %v2558_v42 = vpop.permute.xlu0 %2557  ;;  %v2587_v46 = vsel %vm2563_vm6, %v4998_v40, %v2585_v30  ;;  %v2525_v40 = vsub.f32 1.0, %v4288_v59 }
0x1d14   :  { %v4292_v39 = vpop.eup %4291  ;;  %vm2562_vm7 = vcmp.eq.s32.totalorder %v2558_v42, 1  ;;  %2589 = vst.msk [vmem:[#allocation3 + $0x8] sm:$0xff] %vm169_vm1, %v2587_v46 }
0x1d15   :  { %2530 = vrot.lane.b32.xlu0 %v4292_v39, %s4394_s15  ;;  %v2586_v38 = vsel %vm2562_vm7, %v5000_v51, %v2584_v35  ;;  %v2536_v51 = vmul.f32 %v4290_v63, %v5052_v29 }
0x1d16   :  { %v4294_v45 = vpop.eup %4293  ;;  %2588 = vst.msk [vmem:[#allocation3] sm:$0xff] %vm169_vm1, %v2586_v38 }
0x1d17   :  { %2528 = vrot.lane.b32.xlu1 %v4294_v45, %s4394_s15 }
0x1d19   :  { %2568 = vrot.lane.b32.xlu0 %v2553_v44, %s4391_s13 }
0x1d1b   :  { %2566 = vrot.lane.b32.xlu1 %v2552_v47, %s4391_s13 }
0x1d87   :  { %v2531_v50 = vpop.permute.xlu0 %2530 }
0x1d88   :  { %v2535_v48 = vmul.f32 %v2531_v50, %v2525_v40 }
0x1d89   :  { %v2529_v56 = vpop.permute.xlu1 %2528 }
0x1d8a   :  { %v2539_v49 = vadd.f32 %v2537_v53, %v2535_v48  ;;  %v2534_v54 = vmul.f32 %v2529_v56, %v2524_v52 }
0x1d8b   :  { %v2569_v60 = vpop.permute.xlu0 %2568 }
0x1d8c   :  { %v2538_v55 = vadd.f32 %v2536_v51, %v2534_v54  ;;  %2544 = vrot.lane.b32.xlu0 %v2539_v49, %s4394_s15  ;;  %v2573_v34 = vsel %vm2563_vm6, %v2539_v49, %v2569_v60 }
0x1d8d   :  { %v2567_v31 = vpop.permute.xlu1 %2566 }
0x1d8e   :  { %2542 = vrot.lane.b32.xlu1 %v2538_v55, %s4394_s15  ;;  %v2572_v28 = vsel %vm2562_vm7, %v2538_v55, %v2567_v31 }
0x1d90   :  { %2578 = vrot.lane.b32.xlu0 %v2573_v34, %s4394_s15 }
0x1d92   :  { %2576 = vrot.lane.b32.xlu1 %v2572_v28, %s4394_s15 }
0x1dfe   :  { %v2545_v33 = vpop.permute.xlu0 %2544 }
0x1dff   :  { %2549 = vst.msk [vmem:[#allocation8 + $0x8] sm:$0xff] %vm169_vm1, %v2545_v33 }
0x1e00   :  { %v2543_v43 = vpop.permute.xlu1 %2542 }
0x1e01   :  { %2548 = vst.msk [vmem:[#allocation8] sm:$0xff] %vm169_vm1, %v2543_v43 }
0x1e02   :  { %v2579_v59 = vpop.permute.xlu0 %2578 }
0x1e03   :  { %2583 = vst.msk [vmem:[#allocation2 + $0x8] sm:$0xff] %vm169_vm1, %v2579_v59 }
0x1e04   :  { %v2577_v29 = vpop.permute.xlu1 %2576 }
0x1e05   :  { %2582 = vst.msk [vmem:[#allocation2] sm:$0xff] %vm169_vm1, %v2577_v29 }
0x1e06 PF:  { %p3530_p11 = scmp.le.s32.totalorder %s5304_s0, 6 }
0x1e07   :  { %s4395_s18 = smov (!%p3530_p11), 32   ;;  %s4397_s19 = smov (!%p3530_p11), 64  }
0x1e08   :  { %2593 = sbr.rel (%p3530_p11) target bundleno = 8898 (0x22c2), region = 53  ;;  %s4398_s20 = smov (!%p3530_p11), 96  }
0x1e0d   :  { %v5089_v63 = vld [vmem:[#allocation8 + $0x8] sm:$0xff]  ;;  %v5091_v32 = vld [vmem:[#allocation8] sm:$0xff]  ;;  %vm2596_vm8 = vcmask 130048   ;;  %4071 = vmatprep.subr.mxu1 %v4480_v11  ;;  %vm2688_vm9 = vcmask 523264   ;;  %v4396_v43 = vmov 0   ;;  %vm2926_vm10 = vcmp.eq.s32.totalorder %v4454_v1, 7 }
0x1e0e   :  { %4064 = vmatprep.subr.mxu0 %v5089_v63  ;;  %4068 = vmatprep.mubr.msk.f32.mxu0 %vm2596_vm8, %v4459_v2  ;;  %vm2925_vm11 = vcmp.eq.s32.totalorder %v4449_v0, 7 }
0x1e0f   :  { %4065 = vmatpush3.msra.mxu0 %v5089_v63  ;;  %4072 = vmatpush3.msra.mxu1 %v4480_v11 }
0x1e10   :  { %4066 = vmatprep.subr.mxu0 %v5091_v32  ;;  %4073 = vmatprep.subr.mxu1 %v4478_v10 }
0x1e11   :  { %4067 = vmatpush3.msra.mxu0 %v5091_v32  ;;  %4074 = vmatpush3.msra.mxu1 %v4478_v10 }
0x1e12   :  { %4069 = vmatmul.mubr.msk.f32.vlgmr.msra.gmra.mxu0 %vm2596_vm8, %v4464_v3  ;;  %4075 = vmatprep.subr.mxu1 %v4476_v9 }
0x1e13   :  { %4076 = vmatpush3.msra.mxu1 %v4476_v9  ;;  %4090 = vmatprep.subr.mxu0 %v4496_v19 }
0x1e14   :  { %4077 = vmatprep.subr.mxu1 %v4474_v8  ;;  %4091 = vmatpush3.msra.mxu0 %v4496_v19 }
0x1e15   :  { %4078 = vmatpush3.msra.mxu1 %v4474_v8  ;;  %4092 = vmatprep.subr.mxu0 %v4494_v18 }
0x1e16   :  { %4079 = vmatprep.subr.mxu1 %v4472_v7  ;;  %4093 = vmatpush3.msra.mxu0 %v4494_v18 }
0x1e17   :  { %4080 = vmatpush3.msra.mxu1 %v4472_v7  ;;  %4094 = vmatprep.subr.mxu0 %v4492_v17 }
0x1e18   :  { %4081 = vmatprep.subr.mxu1 %v4470_v6  ;;  %4095 = vmatpush3.msra.mxu0 %v4492_v17 }
0x1e19   :  { %4082 = vmatpush3.msra.mxu1 %v4470_v6  ;;  %4096 = vmatprep.subr.mxu0 %v4490_v16 }
0x1e1a   :  { %4083 = vmatprep.subr.mxu1 %v4468_v5  ;;  %4097 = vmatpush3.msra.mxu0 %v4490_v16 }
0x1e1b   :  { %4084 = vmatpush3.msra.mxu1 %v4468_v5  ;;  %4098 = vmatprep.subr.mxu0 %v4488_v15 }
0x1e1c   :  { %4085 = vmatprep.subr.mxu1 %v4466_v4  ;;  %4099 = vmatpush3.msra.mxu0 %v4488_v15 }
0x1e1d   :  { %4086 = vmatpush3.msra.mxu1 %v4466_v4  ;;  %4100 = vmatprep.subr.mxu0 %v4486_v14 }
0x1e1e   :  { %4101 = vmatpush3.msra.mxu0 %v4486_v14  ;;  %2776 = vrot.lane.b32.xlu1 %v5091_v32, %s4395_s18 }
0x1e1f   :  { %4102 = vmatprep.subr.mxu0 %v4484_v13  ;;  %4295 = vset.pattern.permute.xlu0 %v4396_v43 }
0x1e20   :  { %4103 = vmatpush3.msra.mxu0 %v4484_v13  ;;  %4296 = vset.pattern.permute.xlu1 %v4396_v43 }
0x1e21   :  { %4104 = vmatprep.subr.mxu0 %v4482_v12 }
0x1e22   :  { %4105 = vmatpush3.msra.mxu0 %v4482_v12  ;;  %2778 = vrot.lane.b32.xlu1 %v5089_v63, %s4395_s18 }
0x1e90   :  { %v5143_v39 = vpop.permute.xlu1 %2776 }
0x1e94   :  { %v5147_v53 = vpop.permute.xlu1 %2778 }
0x1ed2   :  { %v4070_v36 = vpop.f32.mrf.mxu0 }
0x1ed4   :  { %v2669_v30 = vpop.f32.mrf.mxu0 }
0x1ed5   :  { %2680 = vrot.lane.b32.xlu0 %v2669_v30, %s4395_s18 }
0x1ed9   :  { %2682 = vrot.lane.b32.xlu0 %v4070_v36, %s4395_s18 }
0x1f47   :  { %v2681_v37 = vpop.permute.xlu0 %2680 }
0x1f48   :  { %v2686_v35 = vsel %vm169_vm1, %v5091_v32, %v2681_v37 }
0x1f49   :  { %4087 = vmatprep.mubr.msk.f32.mxu1 %vm2688_vm9, %v2686_v35 }
0x1f4b   :  { %v2683_v42 = vpop.permute.xlu0 %2682 }
0x1f4c   :  { %v2687_v46 = vsel %vm169_vm1, %v5089_v63, %v2683_v42  ;;  %v2930_v42 = vsel %vm2926_vm10, 1, %v4396_v43 }
0x1f4d   :  { %4088 = vmatmul.mubr.msk.f32.vlgmr.msra.gmra.mxu1 %vm2688_vm9, %v2687_v46  ;;  %v2929_v46 = vsel %vm2925_vm11, 1, %v4396_v43 }
0x200d   :  { %v4089_v38 = vpop.f32.mrf.mxu1 }
0x200e   :  { %v2771_v45 = vadd.f32 %v4089_v38, %v4532_v57 }
0x200f   :  { %v2761_v44 = vpop.f32.mrf.mxu1 }
0x2010   :  { %v2770_v47 = vadd.f32 %v2761_v44, %v4536_v61  ;;  %v2773_v40 = vmax.f32 %v2771_v45, 0.0 }
0x2012   :  { %v2772_v50 = vmax.f32 %v2770_v47, 0.0  ;;  %v2783_v52 = vsel %vm169_vm1, %v2773_v40, %v5147_v53  ;;  %v2960_v40 = vld [vmem:[#allocation3 + $0x8] sm:$0xff] }
0x2014   :  { %v2782_v48 = vsel %vm169_vm1, %v2772_v50, %v5143_v39 }
0x2015   :  { %4106 = vmatprep.mubr.msk.f32.mxu0 %vm2688_vm9, %v2782_v48  ;;  %v2959_v48 = vld [vmem:[#allocation3] sm:$0xff] }
0x2016   :  { %4107 = vmatmul.mubr.msk.f32.vlgmr.msra.gmra.mxu0 %vm2688_vm9, %v2783_v52 }
0x20d6   :  { %v4108_v56 = vpop.f32.mrf.mxu0 }
0x20d7   :  { %v2862_v49 = vadd.f32 %v4108_v56, %v4520_v41 }
0x20d8   :  { %v2856_v51 = vpop.f32.mrf.mxu0 }
0x20d9   :  { %v2857_v54 = vadd.f32 %v2856_v51, %v4520_v41  ;;  %2881 = vrot.lane.b32.xlu1 %v2862_v49, %s4395_s18  ;;  %v3538_v55 = vmul.f32 -1.442695, %v2862_v49 }
0x20db   :  { %2879 = vrot.lane.b32.xlu0 %v2857_v54, %s4395_s18  ;;  %v3537_v60 = vmul.f32 -1.442695, %v2857_v54  ;;  %4297 = vpow2.f32 %v3538_v55 }
0x20dd   :  { %4299 = vpow2.f32 %v3537_v60  ;;  %v2927_v60 = vld [vmem:[#allocation2] sm:$0xff] }
0x20e8   :  { %v4298_v31 = vpop.eup %4297 }
0x20e9   :  { %v2872_v28 = vadd.f32 1.0, %v4298_v31 }
0x20ea   :  { %v4300_v34 = vpop.eup %4299 }
0x20eb   :  { %v2871_v33 = vadd.f32 1.0, %v4300_v34  ;;  %4301 = vrcp.f32 %v2872_v28 }
0x20ed   :  { %4303 = vrcp.f32 %v2871_v33 }
0x20f8   :  { %v4302_v59 = vpop.eup %4301 }
0x20f9   :  { %v2912_v34 = vmul.f32 %v4302_v59, %v5147_v53 }
0x20fa   :  { %v4304_v30 = vpop.eup %4303 }
0x20fb   :  { %v2899_v33 = vsub.f32 1.0, %v4304_v30 }
0x214b   :  { %v2882_v29 = vpop.permute.xlu1 %2881 }
0x214c   :  { %v2886_v36 = vmul.f32 %v4302_v59, %v2882_v29 }
0x214d   :  { %v2880_v37 = vpop.permute.xlu0 %2879 }
0x214e   :  { %v2885_v35 = vmul.f32 %v4304_v30, %v2880_v37  ;;  %2891 = vrot.lane.b32.xlu1 %v2886_v36, %s4397_s19 }
0x2150   :  { %2889 = vrot.lane.b32.xlu0 %v2885_v35, %s4397_s19 }
0x2152   :  { %2935 = vperm.xlu1 %4296, %v2930_v42  }
0x2154   :  { %2932 = vperm.xlu0 %4295, %v2929_v46  }
0x21c0   :  { %v2892_v38 = vpop.permute.xlu1 %2891 }
0x21c1   :  { %v2896_v45 = vadd.f32 %v2892_v38, %v2862_v49 }
0x21c2   :  { %v2890_v44 = vpop.permute.xlu0 %2889 }
0x21c3   :  { %4305 = vtanh.f32 %v2896_v45  ;;  %v2895_v47 = vadd.f32 %v2890_v44, %v2857_v54  ;;  %v2928_v54 = vld [vmem:[#allocation2 + $0x8] sm:$0xff] }
0x21c5   :  { %4307 = vtanh.f32 %v2895_v47 }
0x21cd   :  { %v2936_v50 = vpop.permute.xlu1 %2935 }
0x21ce   :  { %vm2938_vm12 = vcmp.eq.s32.totalorder %v2936_v50, 1 }
0x21cf   :  { %v2933_v52 = vpop.permute.xlu0 %2932  ;;  %v2962_v56 = vsel %vm2938_vm12, %v5089_v63, %v2960_v40  ;;  %v2900_v63 = vsub.f32 1.0, %v4302_v59 }
0x21d0   :  { %v4306_v51 = vpop.eup %4305  ;;  %vm2937_vm13 = vcmp.eq.s32.totalorder %v2933_v52, 1  ;;  %2964 = vst.msk [vmem:[#allocation3 + $0x8] sm:$0xff] %vm169_vm1, %v2962_v56 }
0x21d1   :  { %2905 = vrot.lane.b32.xlu0 %v4306_v51, %s4398_s20  ;;  %v2961_v49 = vsel %vm2937_vm13, %v5091_v32, %v2959_v48  ;;  %v2911_v32 = vmul.f32 %v4304_v30, %v5143_v39 }
0x21d2   :  { %v4308_v55 = vpop.eup %4307  ;;  %2963 = vst.msk [vmem:[#allocation3] sm:$0xff] %vm169_vm1, %v2961_v49 }
0x21d3   :  { %2903 = vrot.lane.b32.xlu1 %v4308_v55, %s4398_s20 }
0x21d5   :  { %2943 = vrot.lane.b32.xlu0 %v2928_v54, %s4395_s18 }
0x21d7   :  { %2941 = vrot.lane.b32.xlu1 %v2927_v60, %s4395_s18 }
0x2243   :  { %v2906_v31 = vpop.permute.xlu0 %2905 }
0x2244   :  { %v2910_v28 = vmul.f32 %v2906_v31, %v2900_v63 }
0x2245   :  { %v2904_v43 = vpop.permute.xlu1 %2903 }
0x2246   :  { %v2914_v29 = vadd.f32 %v2912_v34, %v2910_v28  ;;  %v2909_v36 = vmul.f32 %v2904_v43, %v2899_v33 }
0x2247   :  { %v2944_v35 = vpop.permute.xlu0 %2943 }
0x2248   :  { %v2913_v37 = vadd.f32 %v2911_v32, %v2909_v36  ;;  %2919 = vrot.lane.b32.xlu0 %v2914_v29, %s4398_s20  ;;  %v2948_v46 = vsel %vm2938_vm12, %v2914_v29, %v2944_v35 }
0x2249   :  { %v2942_v42 = vpop.permute.xlu1 %2941 }
0x224a   :  { %2917 = vrot.lane.b32.xlu1 %v2913_v37, %s4398_s20  ;;  %v2947_v38 = vsel %vm2937_vm13, %v2913_v37, %v2942_v42 }
0x224c   :  { %2953 = vrot.lane.b32.xlu0 %v2948_v46, %s4398_s20 }
0x224e   :  { %2951 = vrot.lane.b32.xlu1 %v2947_v38, %s4398_s20 }
0x22ba   :  { %v2920_v45 = vpop.permute.xlu0 %2919 }
0x22bb   :  { %2924 = vst.msk [vmem:[#allocation8 + $0x8] sm:$0xff] %vm169_vm1, %v2920_v45 }
0x22bc   :  { %v2918_v53 = vpop.permute.xlu1 %2917 }
0x22bd   :  { %2923 = vst.msk [vmem:[#allocation8] sm:$0xff] %vm169_vm1, %v2918_v53 }
0x22be   :  { %v2954_v59 = vpop.permute.xlu0 %2953 }
0x22bf   :  { %2958 = vst.msk [vmem:[#allocation2 + $0x8] sm:$0xff] %vm169_vm1, %v2954_v59 }
0x22c0   :  { %v2952_v39 = vpop.permute.xlu1 %2951 }
0x22c1   :  { %2957 = vst.msk [vmem:[#allocation2] sm:$0xff] %vm169_vm1, %v2952_v39 }
0x22c2 PF:  { %p3539_p12 = scmp.le.s32.totalorder %s5304_s0, 7 }
0x22c3   :  { %s4399_s0 = smov (!%p3539_p12), 32   ;;  %s4401_s23 = smov (!%p3539_p12), 64  }
0x22c4   :  { %2968 = sbr.rel (%p3539_p12) target bundleno = 10110 (0x277e), region = 57  ;;  %s4402_s26 = smov (!%p3539_p12), 96  }
0x22c9   :  { %v5180_v30 = vld [vmem:[#allocation8 + $0x8] sm:$0xff]  ;;  %v5182_v44 = vld [vmem:[#allocation8] sm:$0xff]  ;;  %vm2971_vm14 = vcmask 130048   ;;  %4116 = vmatprep.subr.mxu1 %v4480_v11  ;;  %vm3063_vm15 = vcmask 523264   ;;  %v4400_v51 = vmov 0   ;;  %vm3301_vm0 = vcmp.eq.s32.totalorder %v4454_v1, 8 }
0x22ca   :  { %4109 = vmatprep.subr.mxu0 %v5180_v30  ;;  %4113 = vmatprep.mubr.msk.f32.mxu0 %vm2971_vm14, %v4459_v2  ;;  %vm3300_vm2 = vcmp.eq.s32.totalorder %v4449_v0, 8  ;;  %v3305_v31 = vsel %vm3301_vm0, 1, %v4400_v51  ;;  %v3335_v32 = vld [vmem:[#allocation3 + $0x8] sm:$0xff]  ;;  %v3334_v37 = vld [vmem:[#allocation3] sm:$0xff]  ;;  %v3303_v53 = vld [vmem:[#allocation2 + $0x8] sm:$0xff] }
0x22cb   :  { %4110 = vmatpush3.msra.mxu0 %v5180_v30  ;;  %4117 = vmatpush3.msra.mxu1 %v4480_v11  ;;  %v3304_v34 = vsel %vm3300_vm2, 1, %v4400_v51  ;;  %v3302_v59 = vld [vmem:[#allocation2] sm:$0xff] }
0x22cc   :  { %4111 = vmatprep.subr.mxu0 %v5182_v44  ;;  %4118 = vmatprep.subr.mxu1 %v4478_v10 }
0x22cd   :  { %4112 = vmatpush3.msra.mxu0 %v5182_v44  ;;  %4119 = vmatpush3.msra.mxu1 %v4478_v10 }
0x22ce   :  { %4114 = vmatmul.mubr.msk.f32.vlgmr.msra.gmra.mxu0 %vm2971_vm14, %v4464_v3  ;;  %4120 = vmatprep.subr.mxu1 %v4476_v9 }
0x22cf   :  { %4121 = vmatpush3.msra.mxu1 %v4476_v9  ;;  %4135 = vmatprep.subr.mxu0 %v4496_v19 }
0x22d0   :  { %4122 = vmatprep.subr.mxu1 %v4474_v8  ;;  %4136 = vmatpush3.msra.mxu0 %v4496_v19 }
0x22d1   :  { %4123 = vmatpush3.msra.mxu1 %v4474_v8  ;;  %4137 = vmatprep.subr.mxu0 %v4494_v18 }
0x22d2   :  { %4124 = vmatprep.subr.mxu1 %v4472_v7  ;;  %4138 = vmatpush3.msra.mxu0 %v4494_v18 }
0x22d3   :  { %4125 = vmatpush3.msra.mxu1 %v4472_v7  ;;  %4139 = vmatprep.subr.mxu0 %v4492_v17 }
0x22d4   :  { %4126 = vmatprep.subr.mxu1 %v4470_v6  ;;  %4140 = vmatpush3.msra.mxu0 %v4492_v17 }
0x22d5   :  { %4127 = vmatpush3.msra.mxu1 %v4470_v6  ;;  %4141 = vmatprep.subr.mxu0 %v4490_v16 }
0x22d6   :  { %4128 = vmatprep.subr.mxu1 %v4468_v5  ;;  %4142 = vmatpush3.msra.mxu0 %v4490_v16 }
0x22d7   :  { %4129 = vmatpush3.msra.mxu1 %v4468_v5  ;;  %4143 = vmatprep.subr.mxu0 %v4488_v15 }
0x22d8   :  { %4130 = vmatprep.subr.mxu1 %v4466_v4  ;;  %4144 = vmatpush3.msra.mxu0 %v4488_v15 }
0x22d9   :  { %4131 = vmatpush3.msra.mxu1 %v4466_v4  ;;  %4145 = vmatprep.subr.mxu0 %v4486_v14 }
0x22da   :  { %4146 = vmatpush3.msra.mxu0 %v4486_v14  ;;  %3151 = vrot.lane.b32.xlu1 %v5182_v44, %s4399_s0 }
0x22db   :  { %4147 = vmatprep.subr.mxu0 %v4484_v13  ;;  %4309 = vset.pattern.permute.xlu0 %v4400_v51 }
0x22dc   :  { %4148 = vmatpush3.msra.mxu0 %v4484_v13  ;;  %4310 = vset.pattern.permute.xlu1 %v4400_v51 }
0x22dd   :  { %4149 = vmatprep.subr.mxu0 %v4482_v12 }
0x22de   :  { %4150 = vmatpush3.msra.mxu0 %v4482_v12  ;;  %3153 = vrot.lane.b32.xlu1 %v5180_v30, %s4399_s0 }
0x234c   :  { %v5234_v8 = vpop.permute.xlu1 %3151 }
0x2350   :  { %v5238_v15 = vpop.permute.xlu1 %3153 }
0x238e   :  { %v4115_v2 = vpop.f32.mrf.mxu0 }
0x2390   :  { %v3044_v3 = vpop.f32.mrf.mxu0 }
0x2391   :  { %3055 = vrot.lane.b32.xlu0 %v3044_v3, %s4399_s0 }
0x2395   :  { %3057 = vrot.lane.b32.xlu0 %v4115_v2, %s4399_s0 }
0x2403   :  { %v3056_v4 = vpop.permute.xlu0 %3055 }
0x2404   :  { %v3061_v5 = vsel %vm169_vm1, %v5182_v44, %v3056_v4 }
0x2405   :  { %4132 = vmatprep.mubr.msk.f32.mxu1 %vm3063_vm15, %v3061_v5 }
0x2407   :  { %v3058_v6 = vpop.permute.xlu0 %3057 }
0x2408   :  { %v3062_v7 = vsel %vm169_vm1, %v5180_v30, %v3058_v6 }
0x2409   :  { %4133 = vmatmul.mubr.msk.f32.vlgmr.msra.gmra.mxu1 %vm3063_vm15, %v3062_v7 }
0x24c9   :  { %v4134_v9 = vpop.f32.mrf.mxu1 }
0x24ca   :  { %v3146_v10 = vadd.f32 %v4134_v9, %v4532_v57 }
0x24cb   :  { %v3136_v11 = vpop.f32.mrf.mxu1 }
0x24cc   :  { %v3145_v12 = vadd.f32 %v3136_v11, %v4536_v61  ;;  %v3148_v13 = vmax.f32 %v3146_v10, 0.0 }
0x24ce   :  { %v3147_v14 = vmax.f32 %v3145_v12, 0.0  ;;  %v3158_v17 = vsel %vm169_vm1, %v3148_v13, %v5238_v15 }
0x24d0   :  { %v3157_v16 = vsel %vm169_vm1, %v3147_v14, %v5234_v8 }
0x24d1   :  { %4151 = vmatprep.mubr.msk.f32.mxu0 %vm3063_vm15, %v3157_v16 }
0x24d2   :  { %4152 = vmatmul.mubr.msk.f32.vlgmr.msra.gmra.mxu0 %vm3063_vm15, %v3158_v17 }
0x2592   :  { %v4153_v18 = vpop.f32.mrf.mxu0 }
0x2593   :  { %v3237_v19 = vadd.f32 %v4153_v18, %v4520_v41 }
0x2594   :  { %v3231_v57 = vpop.f32.mrf.mxu0 }
0x2595   :  { %v3232_v61 = vadd.f32 %v3231_v57, %v4520_v41  ;;  %3256 = vrot.lane.b32.xlu1 %v3237_v19, %s4399_s0  ;;  %v3547_v47 = vmul.f32 -1.442695, %v3237_v19 }
0x2597   :  { %3254 = vrot.lane.b32.xlu0 %v3232_v61, %s4399_s0  ;;  %v3546_v40 = vmul.f32 -1.442695, %v3232_v61  ;;  %4311 = vpow2.f32 %v3547_v47 }
0x2599   :  { %4313 = vpow2.f32 %v3546_v40 }
0x25a4   :  { %v4312_v50 = vpop.eup %4311 }
0x25a5   :  { %v3247_v52 = vadd.f32 1.0, %v4312_v50 }
0x25a6   :  { %v4314_v48 = vpop.eup %4313 }
0x25a7   :  { %v3246_v56 = vadd.f32 1.0, %v4314_v48  ;;  %4315 = vrcp.f32 %v3247_v52 }
0x25a9   :  { %4317 = vrcp.f32 %v3246_v56 }
0x25b4   :  { %v4316_v49 = vpop.eup %4315 }
0x25b5   :  { %v3275_v39 = vsub.f32 1.0, %v4316_v49  ;;  %v3287_v2 = vmul.f32 %v4316_v49, %v5238_v15 }
0x25b6   :  { %v4318_v54 = vpop.eup %4317 }
0x25b7   :  { %v3274_v4 = vsub.f32 1.0, %v4318_v54 }
0x2607   :  { %v3257_v55 = vpop.permute.xlu1 %3256 }
0x2608   :  { %v3261_v41 = vmul.f32 %v4316_v49, %v3257_v55 }
0x2609   :  { %v3255_v60 = vpop.permute.xlu0 %3254 }
0x260a   :  { %v3260_v63 = vmul.f32 %v4318_v54, %v3255_v60  ;;  %3266 = vrot.lane.b32.xlu1 %v3261_v41, %s4401_s23 }
0x260c   :  { %3264 = vrot.lane.b32.xlu0 %v3260_v63, %s4401_s23 }
0x260e   :  { %3310 = vperm.xlu1 %4310, %v3305_v31  }
0x2610   :  { %3307 = vperm.xlu0 %4309, %v3304_v34  }
0x267c   :  { %v3267_v28 = vpop.permute.xlu1 %3266 }
0x267d   :  { %v3271_v33 = vadd.f32 %v3267_v28, %v3237_v19 }
0x267e   :  { %v3265_v43 = vpop.permute.xlu0 %3264 }
0x267f   :  { %4319 = vtanh.f32 %v3271_v33  ;;  %v3270_v29 = vadd.f32 %v3265_v43, %v3232_v61 }
0x2681   :  { %4321 = vtanh.f32 %v3270_v29 }
0x2689   :  { %v3311_v36 = vpop.permute.xlu1 %3310 }
0x268a   :  { %vm3313_vm3 = vcmp.eq.s32.totalorder %v3311_v36, 1 }
0x268b   :  { %v3308_v35 = vpop.permute.xlu0 %3307  ;;  %v3337_v42 = vsel %vm3313_vm3, %v5180_v30, %v3335_v32 }
0x268c   :  { %v4320_v46 = vpop.eup %4319  ;;  %vm3312_vm4 = vcmp.eq.s32.totalorder %v3308_v35, 1  ;;  %3339 = vst.msk [vmem:[#allocation3 + $0x8] sm:$0xff] %vm169_vm1, %v3337_v42 }
0x268d   :  { %3280 = vrot.lane.b32.xlu0 %v4320_v46, %s4402_s26  ;;  %v3336_v38 = vsel %vm3312_vm4, %v5182_v44, %v3334_v37  ;;  %v3286_v44 = vmul.f32 %v4318_v54, %v5234_v8 }
0x268e   :  { %v4322_v45 = vpop.eup %4321  ;;  %3338 = vst.msk [vmem:[#allocation3] sm:$0xff] %vm169_vm1, %v3336_v38 }
0x268f   :  { %3278 = vrot.lane.b32.xlu1 %v4322_v45, %s4402_s26 }
0x2691   :  { %3318 = vrot.lane.b32.xlu0 %v3303_v53, %s4399_s0 }
0x2693   :  { %3316 = vrot.lane.b32.xlu1 %v3302_v59, %s4399_s0 }
0x26ff   :  { %v3281_v30 = vpop.permute.xlu0 %3280 }
0x2700   :  { %v3285_v3 = vmul.f32 %v3281_v30, %v3275_v39 }
0x2701   :  { %v3279_v5 = vpop.permute.xlu1 %3278 }
0x2702   :  { %v3289_v6 = vadd.f32 %v3287_v2, %v3285_v3  ;;  %v3284_v7 = vmul.f32 %v3279_v5, %v3274_v4 }
0x2703   :  { %v3319_v10 = vpop.permute.xlu0 %3318 }
0x2704   :  { %v3288_v9 = vadd.f32 %v3286_v44, %v3284_v7  ;;  %3294 = vrot.lane.b32.xlu0 %v3289_v6, %s4402_s26  ;;  %v3323_v12 = vsel %vm3313_vm3, %v3289_v6, %v3319_v10 }
0x2705   :  { %v3317_v11 = vpop.permute.xlu1 %3316 }
0x2706   :  { %3292 = vrot.lane.b32.xlu1 %v3288_v9, %s4402_s26  ;;  %v3322_v13 = vsel %vm3312_vm4, %v3288_v9, %v3317_v11 }
0x2708   :  { %3328 = vrot.lane.b32.xlu0 %v3323_v12, %s4402_s26 }
0x270a   :  { %3326 = vrot.lane.b32.xlu1 %v3322_v13, %s4402_s26 }
0x2776   :  { %v3295_v14 = vpop.permute.xlu0 %3294 }
0x2777   :  { %3299 = vst.msk [vmem:[#allocation8 + $0x8] sm:$0xff] %vm169_vm1, %v3295_v14 }
0x2778   :  { %v3293_v15 = vpop.permute.xlu1 %3292 }
0x2779   :  { %3298 = vst.msk [vmem:[#allocation8] sm:$0xff] %vm169_vm1, %v3293_v15 }
0x277a   :  { %v3329_v16 = vpop.permute.xlu0 %3328 }
0x277b   :  { %3333 = vst.msk [vmem:[#allocation2 + $0x8] sm:$0xff] %vm169_vm1, %v3329_v16 }
0x277c   :  { %v3327_v8 = vpop.permute.xlu1 %3326 }
0x277d   :  { %3332 = vst.msk [vmem:[#allocation2] sm:$0xff] %vm169_vm1, %v3327_v8 }
0x277e PF:  { %v3342_v17 = vld [vmem:[#allocation3] sm:$0xff]  ;;  %4154 = vmatprep.subr.mxu0 %v4512_v27  ;;  %s4403_s27 = smov 32   ;;  %v3343_v18 = vld [vmem:[#allocation3 + $0x8] sm:$0xff]  ;;  %vm3354_vm5 = vcmask 523264   ;;  %s4404_s28 = smov [#allocation8]  }
0x277f   :  { %3346 = vrot.lane.b32.xlu0 %v3342_v17, %s4403_s27  ;;  %4155 = vmatpush3.msra.mxu0 %v4512_v27  ;;  %s3456_s29 = sshll.u32 %s4404_s28, 4  ;;  %s3457_s29 = int_to_ptr.vmem [resolvable:$true] %s3456_s29 }
0x2780   :  { %4156 = vmatprep.subr.mxu0 %v4510_v26  ;;  %s4343_s30 = scalar_lea.vmem %s3457_s29, 256  ;;  %p4348_p0 = scmp.lt.s32.totalorder %s3457_s29, %s3457_s29 }
0x2781   :  { %4157 = vmatpush3.msra.mxu0 %v4510_v26  ;;  %p4344_p13 = scmp.ne.s32.totalorder %s3457_s29, %s4343_s30  ;;  %p4349_p1 = scmp.lt.s32.totalorder %s4343_s30, %s4343_s30 }
0x2782   :  { %4158 = vmatprep.subr.mxu0 %v4508_v25  ;;  %v3341_v27 = vld [vmem:[#allocation2 + $0x8] sm:$0xff] }
0x2783   :  { %3348 = vrot.lane.b32.xlu0 %v3343_v18, %s4403_s27  ;;  %4159 = vmatpush3.msra.mxu0 %v4508_v25  ;;  %p4350_p2 = por %p4349_p1, %p4348_p0 }
0x2784   :  { %4160 = vmatprep.subr.mxu0 %v4506_v24  ;;  %v3340_v25 = vld [vmem:[#allocation2] sm:$0xff] }
0x2785   :  { %4161 = vmatpush3.msra.mxu0 %v4506_v24  ;;  %p4351_p3 = pnand %p4350_p2, %p4344_p13 }
0x2786   :  { %4162 = vmatprep.subr.mxu0 %v4504_v23 }
0x2787   :  { %4163 = vmatpush3.msra.mxu0 %v4504_v23 }
0x2788   :  { %4164 = vmatprep.subr.mxu0 %v4502_v22 }
0x2789   :  { %4165 = vmatpush3.msra.mxu0 %v4502_v22 }
0x278a   :  { %4166 = vmatprep.subr.mxu0 %v4500_v21 }
0x278b   :  { %4167 = vmatpush3.msra.mxu0 %v4500_v21 }
0x278c   :  { %4168 = vmatprep.subr.mxu0 %v4498_v20 }
0x278d   :  { %4169 = vmatpush3.msra.mxu0 %v4498_v20 }
0x27f1   :  { %v3347_v26 = vpop.permute.xlu0 %3346 }
0x27f2   :  { %v3352_v24 = vsel %vm169_vm1, %v3340_v25, %v3347_v26 }
0x27f3   :  { %4170 = vmatprep.mubr.msk.f32.mxu0 %vm3354_vm5, %v3352_v24 }
0x27f5   :  { %v3349_v23 = vpop.permute.xlu0 %3348 }
0x27f6   :  { %v3353_v19 = vsel %vm169_vm1, %v3341_v27, %v3349_v23 }
0x27f7   :  { %4171 = vmatmul.mubr.msk.f32.vlgmr.msra.gmra.mxu0 %vm3354_vm5, %v3353_v19 }
0x27f8   :  { %4354 = shalt.err (!%p4351_p3)
}
0x27f9   :  { %3462 = dma.vmem_to_hbm [thread:$0]  %s3457_s29, 256, %s5310_s6, [#allocation7], %s4368_s24, %s4368_s24, %s4369_s25   ;;  %vm3439_vm1 = vcmp.ge.s32.totalorder %v4454_v1, 1  ;;  %vm3441_vm6 = vcmp.le.s32.totalorder %v4454_v1, 8  ;;  %vm3438_vm7 = vcmp.ge.s32.totalorder %v4449_v0, 1  ;;  %vm3440_vm8 = vcmp.le.s32.totalorder %v4449_v0, 8 }
0x27fa   :  { %vm3443_vm9 = vmand %vm3439_vm1, %vm3441_vm6  ;;  %vm3446_vm10 = vcmask 7168  }
0x27fb   :  { %vm3442_vm11 = vmand %vm3438_vm7, %vm3440_vm8 }
0x28b7   :  { %v4172_v20 = vpop.f32.mrf.mxu0 }
0x28b8   :  { %v3437_v21 = vadd.f32 %v4172_v20, %v4534_v58 }
0x28b9   :  { %v3427_v22 = vpop.f32.mrf.mxu0 }
0x28ba   :  { %v3445_v57 = vsel %vm3443_vm9, %v3437_v21, 0.0  ;;  %v3436_v61 = vadd.f32 %v3427_v22, %v4538_v62 }
0x28bb   :  { %3448 = vst.msk [vmem:[%s5309_s5 + $0x8] sm:$0xff] %vm3446_vm10, %v3445_v57 }
0x28bc   :  { %v3444_v47 = vsel %vm3442_vm11, %v3436_v61, 0.0 }
0x28bd   :  { %3447 = vst.msk [vmem:[%s5309_s5] sm:$0xff] %vm3446_vm10, %v3444_v47 }
0x28be   :  { %4365 = dma.done.wait [#allocation7], 256  }
0x28bf   :  { %4366 = vsyncadd [#allocation7], 4294967040 }
0x28c0   :  { %3468 = vsyncpa [#allocation6], 1 }
0x28c1   :  { %3469 = vsyncpa [#allocation7], 1 }

</bundles_post_ra>
